<compile_context>
chip_gen: v7x
topology: tpu7x:2x2x1
jax: 0.10.0
libtpu: 0.0.40
codegen_flags: <defaults>
</compile_context>

<pallas_src>
import functools

import jax
import jax.numpy as jnp
from jax.experimental import pallas as pl
from jax.experimental.pallas import tpu as pltpu

# Constants from the PyTorch source.
DROPOUT_RATE = 0.3
E_WORD = 256                     # e_word  (output word-embedding size)
E_CHAR = 50                      # embed_size (char embedding size)
KSIZE = 5                        # kernel_size
M_WORD = 21                      # max word length
PAD_IDX = 0                      # vocab.char2id['<pad>']


def _round_up(x, m):
    return ((x + m - 1) // m) * m


def _char_cnn_highway_kernel(ids_ref, table_ref, bconv_ref, whw_ref, bhw_ref,
                             out_ref, *, vocab):
    """One grid step processes TM words.

    ids_ref   : (TM, M_WORD)        int32  raw char ids for TM words
    table_ref : (KV_PAD, E_WORD)    bf16   folded  emb @ w_conv[k]  at row k*V + v
    bconv_ref : (1, E_WORD)         f32
    whw_ref   : (E_WORD, 2*E_WORD)  bf16   [w_proj | w_gate]
    bhw_ref   : (1, 2*E_WORD)       f32    [b_proj | b_gate]
    out_ref   : (TM, E_WORD)        f32
    """
    tm, m_word = ids_ref.shape
    kv_pad, e_word = table_ref.shape
    t_conv = m_word - KSIZE + 1

    ids = ids_ref[...]                                    # (TM, m_word) int32
    table = table_ref[...]                                # (KV_PAD, E_WORD) bf16
    cls = jax.lax.broadcasted_iota(jnp.int32, (tm, kv_pad), 1)

    def window_dot(t):
        # Multi-hot (TM, KV_PAD) for conv window t: tap k matches class k*V + ids[:, t+k]
        # (the K tap bands are disjoint; padded classes >= K*V never match).
        hit = cls == ids[:, t:t + 1]                      # k = 0
        for k in range(1, KSIZE):
            hit = jnp.logical_or(hit, cls == (ids[:, t + k:t + k + 1] + k * vocab))
        # Fused char-embedding lookup + Conv1d tap-sum: a single MXU dot.
        return jnp.dot(hit.astype(jnp.bfloat16), table,
                       preferred_element_type=jnp.float32)   # (TM, E_WORD) f32

    # Running max over conv positions on the RAW dot output; bias + ReLU are applied
    # once after the pool (ReLU monotone, bias constant over t -> exactly equivalent).
    pool = window_dot(0)
    for t in range(1, t_conv):
        pool = jnp.maximum(pool, window_dot(t))

    x_conv = jax.nn.relu(pool + bconv_ref[...])              # (TM, E_WORD) f32

    # Highway: one fused (E, 2E) dot, proj/gate split on a 128-lane boundary.
    hw = jnp.dot(x_conv.astype(jnp.bfloat16), whw_ref[...],
                 preferred_element_type=jnp.float32) + bhw_ref[...]
    proj = jax.nn.relu(hw[:, :e_word])
    gate = jax.nn.sigmoid(hw[:, e_word:])
    # TODO(synk): nn.Dropout(0.3) is stochastic; eval-mode (identity) path implemented.
    out_ref[...] = (gate * proj + (1.0 - gate) * x_conv).astype(out_ref.dtype)


def model_embeddings_forward(padded_sents, params, *, block_words=256):
    """padded_sents: int32 (B, L, m_word) char ids -> float32 (B, L, E_WORD).

    block_words: words per grid block.  256 is a good cap on v7x; v5e/v6e (128 MiB
    VMEM, single TensorCore) can pass 512-1024 to amortize per-step overhead.
    """
    B, L, m_word = padded_sents.shape
    W = B * L

    emb = params["emb"].astype(jnp.float32)          # (V, E_CHAR)
    w_conv = params["w_conv"].astype(jnp.float32)    # (K, E_CHAR, E_WORD)
    vocab = emb.shape[0]
    kv = KSIZE * vocab
    kv_pad = _round_up(kv, 128)                      # lane-dense contraction dim

    # Words per block: sublane aligned, capped by block_words, and sized so the
    # ("parallel",) grid axis has >= 2 blocks whenever there is enough work
    # (v7x has 2 TensorCores to shard across; v5e/v6e are unaffected).
    tm = _round_up(min(block_words, max(pl.cdiv(W, 2), 8)), 8)
    w_pad = _round_up(W, tm)
    n_blocks = w_pad // tm

    # Raw char ids, one row per word: only 4*m_word = 84 B/word of HBM index traffic.
    ids = padded_sents.reshape(W, m_word).astype(jnp.int32)
    if w_pad != W:
        ids = jnp.pad(ids, ((0, w_pad - W), (0, 0)))           # pad words = <pad> chars

    # Fold the char-embedding table into the conv weight:
    #   table[k*V + v, :] = emb[v, :] @ w_conv[k, :, :]   (zero rows in the lane pad)
    table = jnp.einsum("vc,kco->kvo", emb, w_conv).reshape(kv, E_WORD)
    if kv_pad != kv:
        table = jnp.pad(table, ((0, kv_pad - kv), (0, 0)))
    table = table.astype(jnp.bfloat16)

    w_hw = jnp.concatenate([params["w_proj"], params["w_gate"]], axis=1).astype(jnp.bfloat16)
    b_hw = jnp.concatenate([params["b_proj"], params["b_gate"]], axis=1).astype(jnp.float32)
    b_conv = params["b_conv"].astype(jnp.float32).reshape(1, E_WORD)

    # Derived VMEM budget (pipeline buffers + in-kernel temporaries) with headroom;
    # stays far below every generation's physical VMEM after the per-t restructure.
    buf_bytes = (
        2 * tm * 128 * 4              # ids tile (21 lanes pad to 128), double-buffered
        + kv_pad * E_WORD * 2         # folded conv table (single-buffered)
        + E_WORD * 2 * E_WORD * 2     # fused highway weight (single-buffered)
        + 2 * tm * E_WORD * 4         # output tile, double-buffered
        + 6 * tm * E_WORD * 4         # multihot / per-t dot / running max / highway temps
    )
    vmem_limit = min(max(4 * buf_bytes, 16 * 1024 * 1024), 48 * 1024 * 1024)

    kernel = functools.partial(_char_cnn_highway_kernel, vocab=vocab)

    out = pl.pallas_call(
        kernel,
        out_shape=jax.ShapeDtypeStruct((w_pad, E_WORD), jnp.float32),
        grid=(n_blocks,),
        in_specs=[
            pl.BlockSpec((tm, m_word), lambda i: (i, 0)),
            # Grid-invariant operands: single-buffered (no wasted double-buffer VMEM).
            pl.BlockSpec((kv_pad, E_WORD), lambda i: (0, 0),
                         pipeline_mode=pl.Buffered(1)),
            pl.BlockSpec((1, E_WORD), lambda i: (0, 0),
                         pipeline_mode=pl.Buffered(1)),
            pl.BlockSpec((E_WORD, 2 * E_WORD), lambda i: (0, 0),
                         pipeline_mode=pl.Buffered(1)),
            pl.BlockSpec((1, 2 * E_WORD), lambda i: (0, 0),
                         pipeline_mode=pl.Buffered(1)),
        ],
        out_specs=pl.BlockSpec((tm, E_WORD), lambda i: (i, 0)),
        compiler_params=pltpu.CompilerParams(
            dimension_semantics=("parallel",),
            vmem_limit_bytes=vmem_limit,
        ),
    )(ids, table, b_conv, w_hw, b_hw)

    return out[:W].reshape(B, L, E_WORD)


def _reference_forward(padded_sents, params):
    """Pure-JAX f32 reference mirroring the PyTorch forward (eval mode)."""
    x = params["emb"][padded_sents].astype(jnp.float32)        # (B, L, m_word, E_CHAR)
    m_word = padded_sents.shape[-1]
    t_conv = m_word - KSIZE + 1
    wc = params["w_conv"]                                      # (K, E_CHAR, E_WORD)
    conv = sum(jnp.einsum("bltc,co->blto", x[:, :, dk:dk + t_conv, :], wc[dk])
               for dk in range(KSIZE))
    conv = conv + params["b_conv"][0]
    x_conv = jnp.max(jax.nn.relu(conv), axis=2)                # (B, L, E_WORD)
    proj = jax.nn.relu(x_conv @ params["w_proj"] + params["b_proj"][0])
    gate = jax.nn.sigmoid(x_conv @ params["w_gate"] + params["b_gate"][0])
    return gate * proj + (1.0 - gate) * x_conv


if __name__ == "__main__":
    B, L = 2, 6                     # small batch / short sentences (W=12 -> 2 blocks of 8)
    VOCAB = 30 + 4                  # len(vocab.char_list) + 4

    key = jax.random.PRNGKey(0)
    ks = jax.random.split(key, 8)

    emb = jax.random.normal(ks[0], (VOCAB, E_CHAR), jnp.float32) * 0.1
    emb = emb.at[PAD_IDX].set(0.0)  # nn.Embedding(padding_idx=...) zero row
    # torch Conv1d weight is (out_ch, in_ch, k); store as (k, in_ch, out_ch).
    w_conv_torch = jax.random.normal(ks[1], (E_WORD, E_CHAR, KSIZE), jnp.float32) * 0.05
    w_conv = jnp.transpose(w_conv_torch, (2, 1, 0))
    b_conv = (jax.random.normal(ks[2], (E_WORD,), jnp.float32) * 0.05).reshape(1, E_WORD)
    # Highway linears stored as (in, out) == torch weight transposed.
    w_proj = jax.random.normal(ks[3], (E_WORD, E_WORD), jnp.float32) * 0.05
    b_proj = (jax.random.normal(ks[4], (E_WORD,), jnp.float32) * 0.05).reshape(1, E_WORD)
    w_gate = jax.random.normal(ks[5], (E_WORD, E_WORD), jnp.float32) * 0.05
    b_gate = (jax.random.normal(ks[6], (E_WORD,), jnp.float32) * 0.05).reshape(1, E_WORD)

    params = dict(emb=emb, w_conv=w_conv, b_conv=b_conv,
                  w_proj=w_proj, b_proj=b_proj, w_gate=w_gate, b_gate=b_gate)

    padded_sents = jax.random.randint(ks[7], (B, L, M_WORD), 0, VOCAB, dtype=jnp.int32)

    fwd = jax.jit(model_embeddings_forward)
    out = jax.block_until_ready(fwd(padded_sents, params))

    ref = _reference_forward(padded_sents, params)
    assert out.shape == (B, L, E_WORD), out.shape
    assert out.dtype == jnp.float32
    max_err = jnp.max(jnp.abs(out - ref))
    assert jnp.allclose(out, ref, rtol=2e-2, atol=2e-2), f"max abs err {max_err}"

    print("KERNEL_OK")
</pallas_src>

<mosaic_0001>
module attributes {stable_mosaic.version = 11 : i64} {
  func.func @_char_cnn_highway_kernel(%arg0: i32, %arg1: memref<8x21xi32, #tpu.memory_space<vmem>>, %arg2: memref<256x256xbf16, #tpu.memory_space<vmem>>, %arg3: memref<1x256xf32, #tpu.memory_space<vmem>>, %arg4: memref<256x512xbf16, #tpu.memory_space<vmem>>, %arg5: memref<1x512xf32, #tpu.memory_space<vmem>>, %arg6: memref<8x256xf32, #tpu.memory_space<vmem>>) attributes {dimension_semantics = [#tpu.dimension_semantics<parallel>], iteration_bounds = array<i64: 2>, scalar_prefetch = 0 : i64, scratch_operands = 0 : i64, tpu.core_type = #tpu.core_type<tc>, window_params = [{transform_indices = @transform_0, window_bounds = array<i64: 8, 21>}, {pipeline_mode = #tpu.pipeline_mode<synchronous>, transform_indices = @transform_1, window_bounds = array<i64: 256, 256>}, {pipeline_mode = #tpu.pipeline_mode<synchronous>, transform_indices = @transform_2, window_bounds = array<i64: 1, 256>}, {pipeline_mode = #tpu.pipeline_mode<synchronous>, transform_indices = @transform_3, window_bounds = array<i64: 256, 512>}, {pipeline_mode = #tpu.pipeline_mode<synchronous>, transform_indices = @transform_4, window_bounds = array<i64: 1, 512>}, {transform_indices = @transform_5, window_bounds = array<i64: 8, 256>}]} {
    %c0 = arith.constant 0 : index
    %c0_0 = arith.constant 0 : index
    %0 = vector.load %arg1[%c0, %c0_0] : memref<8x21xi32, #tpu.memory_space<vmem>>, vector<8x21xi32>
    %c0_1 = arith.constant 0 : index
    %c0_2 = arith.constant 0 : index
    %1 = vector.load %arg2[%c0_1, %c0_2] : memref<256x256xbf16, #tpu.memory_space<vmem>>, vector<256x256xbf16>
    %2 = tpu.iota {dimensions = array<i32: 1>} : vector<8x256xi32>
    %3 = vector.extract_strided_slice %0 {offsets = [0, 0], sizes = [8, 1], strides = [1, 1]} : vector<8x21xi32> to vector<8x1xi32>
    %4 = vector.broadcast %3 : vector<8x1xi32> to vector<8x256xi32>
    %5 = arith.cmpi eq, %2, %4 : vector<8x256xi32>
    %6 = vector.extract_strided_slice %0 {offsets = [0, 1], sizes = [8, 1], strides = [1, 1]} : vector<8x21xi32> to vector<8x1xi32>
    %c34_i32 = arith.constant 34 : i32
    %7 = vector.broadcast %c34_i32 : i32 to vector<8x1xi32>
    %8 = arith.addi %6, %7 : vector<8x1xi32>
    %9 = vector.broadcast %8 : vector<8x1xi32> to vector<8x256xi32>
    %10 = arith.cmpi eq, %2, %9 : vector<8x256xi32>
    %11 = arith.ori %5, %10 : vector<8x256xi1>
    %12 = vector.extract_strided_slice %0 {offsets = [0, 2], sizes = [8, 1], strides = [1, 1]} : vector<8x21xi32> to vector<8x1xi32>
    %c68_i32 = arith.constant 68 : i32
    %13 = vector.broadcast %c68_i32 : i32 to vector<8x1xi32>
    %14 = arith.addi %12, %13 : vector<8x1xi32>
    %15 = vector.broadcast %14 : vector<8x1xi32> to vector<8x256xi32>
    %16 = arith.cmpi eq, %2, %15 : vector<8x256xi32>
    %17 = arith.ori %11, %16 : vector<8x256xi1>
    %18 = vector.extract_strided_slice %0 {offsets = [0, 3], sizes = [8, 1], strides = [1, 1]} : vector<8x21xi32> to vector<8x1xi32>
    %c102_i32 = arith.constant 102 : i32
    %19 = vector.broadcast %c102_i32 : i32 to vector<8x1xi32>
    %20 = arith.addi %18, %19 : vector<8x1xi32>
    %21 = vector.broadcast %20 : vector<8x1xi32> to vector<8x256xi32>
    %22 = arith.cmpi eq, %2, %21 : vector<8x256xi32>
    %23 = arith.ori %17, %22 : vector<8x256xi1>
    %24 = vector.extract_strided_slice %0 {offsets = [0, 4], sizes = [8, 1], strides = [1, 1]} : vector<8x21xi32> to vector<8x1xi32>
    %c136_i32 = arith.constant 136 : i32
    %25 = vector.broadcast %c136_i32 : i32 to vector<8x1xi32>
    %26 = arith.addi %24, %25 : vector<8x1xi32>
    %27 = vector.broadcast %26 : vector<8x1xi32> to vector<8x256xi32>
    %28 = arith.cmpi eq, %2, %27 : vector<8x256xi32>
    %29 = arith.ori %23, %28 : vector<8x256xi1>
    %30 = arith.extui %29 : vector<8x256xi1> to vector<8x256xi32>
    %31 = arith.sitofp %30 : vector<8x256xi32> to vector<8x256xf32>
    %32 = arith.truncf %31 : vector<8x256xf32> to vector<8x256xbf16>
    %cst = arith.constant dense<0.000000e+00> : vector<8x256xf32>
    %33 = tpu.matmul %32, %1, %cst {dimension_numbers = #tpu.dot_dimension_numbers<[1], [0], [0], [1], [0, 0, 1, 1], [], []>} : vector<8x256xbf16>, vector<256x256xbf16>, vector<8x256xf32> -> vector<8x256xf32>
    %34 = vector.extract_strided_slice %0 {offsets = [0, 1], sizes = [8, 1], strides = [1, 1]} : vector<8x21xi32> to vector<8x1xi32>
    %35 = vector.broadcast %34 : vector<8x1xi32> to vector<8x256xi32>
    %36 = arith.cmpi eq, %2, %35 : vector<8x256xi32>
    %37 = vector.extract_strided_slice %0 {offsets = [0, 2], sizes = [8, 1], strides = [1, 1]} : vector<8x21xi32> to vector<8x1xi32>
    %c34_i32_3 = arith.constant 34 : i32
    %38 = vector.broadcast %c34_i32_3 : i32 to vector<8x1xi32>
    %39 = arith.addi %37, %38 : vector<8x1xi32>
    %40 = vector.broadcast %39 : vector<8x1xi32> to vector<8x256xi32>
    %41 = arith.cmpi eq, %2, %40 : vector<8x256xi32>
    %42 = arith.ori %36, %41 : vector<8x256xi1>
    %43 = vector.extract_strided_slice %0 {offsets = [0, 3], sizes = [8, 1], strides = [1, 1]} : vector<8x21xi32> to vector<8x1xi32>
    %c68_i32_4 = arith.constant 68 : i32
    %44 = vector.broadcast %c68_i32_4 : i32 to vector<8x1xi32>
    %45 = arith.addi %43, %44 : vector<8x1xi32>
    %46 = vector.broadcast %45 : vector<8x1xi32> to vector<8x256xi32>
    %47 = arith.cmpi eq, %2, %46 : vector<8x256xi32>
    %48 = arith.ori %42, %47 : vector<8x256xi1>
    %49 = vector.extract_strided_slice %0 {offsets = [0, 4], sizes = [8, 1], strides = [1, 1]} : vector<8x21xi32> to vector<8x1xi32>
    %c102_i32_5 = arith.constant 102 : i32
    %50 = vector.broadcast %c102_i32_5 : i32 to vector<8x1xi32>
    %51 = arith.addi %49, %50 : vector<8x1xi32>
    %52 = vector.broadcast %51 : vector<8x1xi32> to vector<8x256xi32>
    %53 = arith.cmpi eq, %2, %52 : vector<8x256xi32>
    %54 = arith.ori %48, %53 : vector<8x256xi1>
    %55 = vector.extract_strided_slice %0 {offsets = [0, 5], sizes = [8, 1], strides = [1, 1]} : vector<8x21xi32> to vector<8x1xi32>
    %c136_i32_6 = arith.constant 136 : i32
    %56 = vector.broadcast %c136_i32_6 : i32 to vector<8x1xi32>
    %57 = arith.addi %55, %56 : vector<8x1xi32>
    %58 = vector.broadcast %57 : vector<8x1xi32> to vector<8x256xi32>
    %59 = arith.cmpi eq, %2, %58 : vector<8x256xi32>
    %60 = arith.ori %54, %59 : vector<8x256xi1>
    %61 = arith.extui %60 : vector<8x256xi1> to vector<8x256xi32>
    %62 = arith.sitofp %61 : vector<8x256xi32> to vector<8x256xf32>
    %63 = arith.truncf %62 : vector<8x256xf32> to vector<8x256xbf16>
    %cst_7 = arith.constant dense<0.000000e+00> : vector<8x256xf32>
    %64 = tpu.matmul %63, %1, %cst_7 {dimension_numbers = #tpu.dot_dimension_numbers<[1], [0], [0], [1], [0, 0, 1, 1], [], []>} : vector<8x256xbf16>, vector<256x256xbf16>, vector<8x256xf32> -> vector<8x256xf32>
    %65 = arith.maximumf %33, %64 : vector<8x256xf32>
    %66 = vector.extract_strided_slice %0 {offsets = [0, 2], sizes = [8, 1], strides = [1, 1]} : vector<8x21xi32> to vector<8x1xi32>
    %67 = vector.broadcast %66 : vector<8x1xi32> to vector<8x256xi32>
    %68 = arith.cmpi eq, %2, %67 : vector<8x256xi32>
    %69 = vector.extract_strided_slice %0 {offsets = [0, 3], sizes = [8, 1], strides = [1, 1]} : vector<8x21xi32> to vector<8x1xi32>
    %c34_i32_8 = arith.constant 34 : i32
    %70 = vector.broadcast %c34_i32_8 : i32 to vector<8x1xi32>
    %71 = arith.addi %69, %70 : vector<8x1xi32>
    %72 = vector.broadcast %71 : vector<8x1xi32> to vector<8x256xi32>
    %73 = arith.cmpi eq, %2, %72 : vector<8x256xi32>
    %74 = arith.ori %68, %73 : vector<8x256xi1>
    %75 = vector.extract_strided_slice %0 {offsets = [0, 4], sizes = [8, 1], strides = [1, 1]} : vector<8x21xi32> to vector<8x1xi32>
    %c68_i32_9 = arith.constant 68 : i32
    %76 = vector.broadcast %c68_i32_9 : i32 to vector<8x1xi32>
    %77 = arith.addi %75, %76 : vector<8x1xi32>
    %78 = vector.broadcast %77 : vector<8x1xi32> to vector<8x256xi32>
    %79 = arith.cmpi eq, %2, %78 : vector<8x256xi32>
    %80 = arith.ori %74, %79 : vector<8x256xi1>
    %81 = vector.extract_strided_slice %0 {offsets = [0, 5], sizes = [8, 1], strides = [1, 1]} : vector<8x21xi32> to vector<8x1xi32>
    %c102_i32_10 = arith.constant 102 : i32
    %82 = vector.broadcast %c102_i32_10 : i32 to vector<8x1xi32>
    %83 = arith.addi %81, %82 : vector<8x1xi32>
    %84 = vector.broadcast %83 : vector<8x1xi32> to vector<8x256xi32>
    %85 = arith.cmpi eq, %2, %84 : vector<8x256xi32>
    %86 = arith.ori %80, %85 : vector<8x256xi1>
    %87 = vector.extract_strided_slice %0 {offsets = [0, 6], sizes = [8, 1], strides = [1, 1]} : vector<8x21xi32> to vector<8x1xi32>
    %c136_i32_11 = arith.constant 136 : i32
    %88 = vector.broadcast %c136_i32_11 : i32 to vector<8x1xi32>
    %89 = arith.addi %87, %88 : vector<8x1xi32>
    %90 = vector.broadcast %89 : vector<8x1xi32> to vector<8x256xi32>
    %91 = arith.cmpi eq, %2, %90 : vector<8x256xi32>
    %92 = arith.ori %86, %91 : vector<8x256xi1>
    %93 = arith.extui %92 : vector<8x256xi1> to vector<8x256xi32>
    %94 = arith.sitofp %93 : vector<8x256xi32> to vector<8x256xf32>
    %95 = arith.truncf %94 : vector<8x256xf32> to vector<8x256xbf16>
    %cst_12 = arith.constant dense<0.000000e+00> : vector<8x256xf32>
    %96 = tpu.matmul %95, %1, %cst_12 {dimension_numbers = #tpu.dot_dimension_numbers<[1], [0], [0], [1], [0, 0, 1, 1], [], []>} : vector<8x256xbf16>, vector<256x256xbf16>, vector<8x256xf32> -> vector<8x256xf32>
    %97 = arith.maximumf %65, %96 : vector<8x256xf32>
    %98 = vector.extract_strided_slice %0 {offsets = [0, 3], sizes = [8, 1], strides = [1, 1]} : vector<8x21xi32> to vector<8x1xi32>
    %99 = vector.broadcast %98 : vector<8x1xi32> to vector<8x256xi32>
    %100 = arith.cmpi eq, %2, %99 : vector<8x256xi32>
    %101 = vector.extract_strided_slice %0 {offsets = [0, 4], sizes = [8, 1], strides = [1, 1]} : vector<8x21xi32> to vector<8x1xi32>
    %c34_i32_13 = arith.constant 34 : i32
    %102 = vector.broadcast %c34_i32_13 : i32 to vector<8x1xi32>
    %103 = arith.addi %101, %102 : vector<8x1xi32>
    %104 = vector.broadcast %103 : vector<8x1xi32> to vector<8x256xi32>
    %105 = arith.cmpi eq, %2, %104 : vector<8x256xi32>
    %106 = arith.ori %100, %105 : vector<8x256xi1>
    %107 = vector.extract_strided_slice %0 {offsets = [0, 5], sizes = [8, 1], strides = [1, 1]} : vector<8x21xi32> to vector<8x1xi32>
    %c68_i32_14 = arith.constant 68 : i32
    %108 = vector.broadcast %c68_i32_14 : i32 to vector<8x1xi32>
    %109 = arith.addi %107, %108 : vector<8x1xi32>
    %110 = vector.broadcast %109 : vector<8x1xi32> to vector<8x256xi32>
    %111 = arith.cmpi eq, %2, %110 : vector<8x256xi32>
    %112 = arith.ori %106, %111 : vector<8x256xi1>
    %113 = vector.extract_strided_slice %0 {offsets = [0, 6], sizes = [8, 1], strides = [1, 1]} : vector<8x21xi32> to vector<8x1xi32>
    %c102_i32_15 = arith.constant 102 : i32
    %114 = vector.broadcast %c102_i32_15 : i32 to vector<8x1xi32>
    %115 = arith.addi %113, %114 : vector<8x1xi32>
    %116 = vector.broadcast %115 : vector<8x1xi32> to vector<8x256xi32>
    %117 = arith.cmpi eq, %2, %116 : vector<8x256xi32>
    %118 = arith.ori %112, %117 : vector<8x256xi1>
    %119 = vector.extract_strided_slice %0 {offsets = [0, 7], sizes = [8, 1], strides = [1, 1]} : vector<8x21xi32> to vector<8x1xi32>
    %c136_i32_16 = arith.constant 136 : i32
    %120 = vector.broadcast %c136_i32_16 : i32 to vector<8x1xi32>
    %121 = arith.addi %119, %120 : vector<8x1xi32>
    %122 = vector.broadcast %121 : vector<8x1xi32> to vector<8x256xi32>
    %123 = arith.cmpi eq, %2, %122 : vector<8x256xi32>
    %124 = arith.ori %118, %123 : vector<8x256xi1>
    %125 = arith.extui %124 : vector<8x256xi1> to vector<8x256xi32>
    %126 = arith.sitofp %125 : vector<8x256xi32> to vector<8x256xf32>
    %127 = arith.truncf %126 : vector<8x256xf32> to vector<8x256xbf16>
    %cst_17 = arith.constant dense<0.000000e+00> : vector<8x256xf32>
    %128 = tpu.matmul %127, %1, %cst_17 {dimension_numbers = #tpu.dot_dimension_numbers<[1], [0], [0], [1], [0, 0, 1, 1], [], []>} : vector<8x256xbf16>, vector<256x256xbf16>, vector<8x256xf32> -> vector<8x256xf32>
    %129 = arith.maximumf %97, %128 : vector<8x256xf32>
    %130 = vector.extract_strided_slice %0 {offsets = [0, 4], sizes = [8, 1], strides = [1, 1]} : vector<8x21xi32> to vector<8x1xi32>
    %131 = vector.broadcast %130 : vector<8x1xi32> to vector<8x256xi32>
    %132 = arith.cmpi eq, %2, %131 : vector<8x256xi32>
    %133 = vector.extract_strided_slice %0 {offsets = [0, 5], sizes = [8, 1], strides = [1, 1]} : vector<8x21xi32> to vector<8x1xi32>
    %c34_i32_18 = arith.constant 34 : i32
    %134 = vector.broadcast %c34_i32_18 : i32 to vector<8x1xi32>
    %135 = arith.addi %133, %134 : vector<8x1xi32>
    %136 = vector.broadcast %135 : vector<8x1xi32> to vector<8x256xi32>
    %137 = arith.cmpi eq, %2, %136 : vector<8x256xi32>
    %138 = arith.ori %132, %137 : vector<8x256xi1>
    %139 = vector.extract_strided_slice %0 {offsets = [0, 6], sizes = [8, 1], strides = [1, 1]} : vector<8x21xi32> to vector<8x1xi32>
    %c68_i32_19 = arith.constant 68 : i32
    %140 = vector.broadcast %c68_i32_19 : i32 to vector<8x1xi32>
    %141 = arith.addi %139, %140 : vector<8x1xi32>
    %142 = vector.broadcast %141 : vector<8x1xi32> to vector<8x256xi32>
    %143 = arith.cmpi eq, %2, %142 : vector<8x256xi32>
    %144 = arith.ori %138, %143 : vector<8x256xi1>
    %145 = vector.extract_strided_slice %0 {offsets = [0, 7], sizes = [8, 1], strides = [1, 1]} : vector<8x21xi32> to vector<8x1xi32>
    %c102_i32_20 = arith.constant 102 : i32
    %146 = vector.broadcast %c102_i32_20 : i32 to vector<8x1xi32>
    %147 = arith.addi %145, %146 : vector<8x1xi32>
    %148 = vector.broadcast %147 : vector<8x1xi32> to vector<8x256xi32>
    %149 = arith.cmpi eq, %2, %148 : vector<8x256xi32>
    %150 = arith.ori %144, %149 : vector<8x256xi1>
    %151 = vector.extract_strided_slice %0 {offsets = [0, 8], sizes = [8, 1], strides = [1, 1]} : vector<8x21xi32> to vector<8x1xi32>
    %c136_i32_21 = arith.constant 136 : i32
    %152 = vector.broadcast %c136_i32_21 : i32 to vector<8x1xi32>
    %153 = arith.addi %151, %152 : vector<8x1xi32>
    %154 = vector.broadcast %153 : vector<8x1xi32> to vector<8x256xi32>
    %155 = arith.cmpi eq, %2, %154 : vector<8x256xi32>
    %156 = arith.ori %150, %155 : vector<8x256xi1>
    %157 = arith.extui %156 : vector<8x256xi1> to vector<8x256xi32>
    %158 = arith.sitofp %157 : vector<8x256xi32> to vector<8x256xf32>
    %159 = arith.truncf %158 : vector<8x256xf32> to vector<8x256xbf16>
    %cst_22 = arith.constant dense<0.000000e+00> : vector<8x256xf32>
    %160 = tpu.matmul %159, %1, %cst_22 {dimension_numbers = #tpu.dot_dimension_numbers<[1], [0], [0], [1], [0, 0, 1, 1], [], []>} : vector<8x256xbf16>, vector<256x256xbf16>, vector<8x256xf32> -> vector<8x256xf32>
    %161 = arith.maximumf %129, %160 : vector<8x256xf32>
    %162 = vector.extract_strided_slice %0 {offsets = [0, 5], sizes = [8, 1], strides = [1, 1]} : vector<8x21xi32> to vector<8x1xi32>
    %163 = vector.broadcast %162 : vector<8x1xi32> to vector<8x256xi32>
    %164 = arith.cmpi eq, %2, %163 : vector<8x256xi32>
    %165 = vector.extract_strided_slice %0 {offsets = [0, 6], sizes = [8, 1], strides = [1, 1]} : vector<8x21xi32> to vector<8x1xi32>
    %c34_i32_23 = arith.constant 34 : i32
    %166 = vector.broadcast %c34_i32_23 : i32 to vector<8x1xi32>
    %167 = arith.addi %165, %166 : vector<8x1xi32>
    %168 = vector.broadcast %167 : vector<8x1xi32> to vector<8x256xi32>
    %169 = arith.cmpi eq, %2, %168 : vector<8x256xi32>
    %170 = arith.ori %164, %169 : vector<8x256xi1>
    %171 = vector.extract_strided_slice %0 {offsets = [0, 7], sizes = [8, 1], strides = [1, 1]} : vector<8x21xi32> to vector<8x1xi32>
    %c68_i32_24 = arith.constant 68 : i32
    %172 = vector.broadcast %c68_i32_24 : i32 to vector<8x1xi32>
    %173 = arith.addi %171, %172 : vector<8x1xi32>
    %174 = vector.broadcast %173 : vector<8x1xi32> to vector<8x256xi32>
    %175 = arith.cmpi eq, %2, %174 : vector<8x256xi32>
    %176 = arith.ori %170, %175 : vector<8x256xi1>
    %177 = vector.extract_strided_slice %0 {offsets = [0, 8], sizes = [8, 1], strides = [1, 1]} : vector<8x21xi32> to vector<8x1xi32>
    %c102_i32_25 = arith.constant 102 : i32
    %178 = vector.broadcast %c102_i32_25 : i32 to vector<8x1xi32>
    %179 = arith.addi %177, %178 : vector<8x1xi32>
    %180 = vector.broadcast %179 : vector<8x1xi32> to vector<8x256xi32>
    %181 = arith.cmpi eq, %2, %180 : vector<8x256xi32>
    %182 = arith.ori %176, %181 : vector<8x256xi1>
    %183 = vector.extract_strided_slice %0 {offsets = [0, 9], sizes = [8, 1], strides = [1, 1]} : vector<8x21xi32> to vector<8x1xi32>
    %c136_i32_26 = arith.constant 136 : i32
    %184 = vector.broadcast %c136_i32_26 : i32 to vector<8x1xi32>
    %185 = arith.addi %183, %184 : vector<8x1xi32>
    %186 = vector.broadcast %185 : vector<8x1xi32> to vector<8x256xi32>
    %187 = arith.cmpi eq, %2, %186 : vector<8x256xi32>
    %188 = arith.ori %182, %187 : vector<8x256xi1>
    %189 = arith.extui %188 : vector<8x256xi1> to vector<8x256xi32>
    %190 = arith.sitofp %189 : vector<8x256xi32> to vector<8x256xf32>
    %191 = arith.truncf %190 : vector<8x256xf32> to vector<8x256xbf16>
    %cst_27 = arith.constant dense<0.000000e+00> : vector<8x256xf32>
    %192 = tpu.matmul %191, %1, %cst_27 {dimension_numbers = #tpu.dot_dimension_numbers<[1], [0], [0], [1], [0, 0, 1, 1], [], []>} : vector<8x256xbf16>, vector<256x256xbf16>, vector<8x256xf32> -> vector<8x256xf32>
    %193 = arith.maximumf %161, %192 : vector<8x256xf32>
    %194 = vector.extract_strided_slice %0 {offsets = [0, 6], sizes = [8, 1], strides = [1, 1]} : vector<8x21xi32> to vector<8x1xi32>
    %195 = vector.broadcast %194 : vector<8x1xi32> to vector<8x256xi32>
    %196 = arith.cmpi eq, %2, %195 : vector<8x256xi32>
    %197 = vector.extract_strided_slice %0 {offsets = [0, 7], sizes = [8, 1], strides = [1, 1]} : vector<8x21xi32> to vector<8x1xi32>
    %c34_i32_28 = arith.constant 34 : i32
    %198 = vector.broadcast %c34_i32_28 : i32 to vector<8x1xi32>
    %199 = arith.addi %197, %198 : vector<8x1xi32>
    %200 = vector.broadcast %199 : vector<8x1xi32> to vector<8x256xi32>
    %201 = arith.cmpi eq, %2, %200 : vector<8x256xi32>
    %202 = arith.ori %196, %201 : vector<8x256xi1>
    %203 = vector.extract_strided_slice %0 {offsets = [0, 8], sizes = [8, 1], strides = [1, 1]} : vector<8x21xi32> to vector<8x1xi32>
    %c68_i32_29 = arith.constant 68 : i32
    %204 = vector.broadcast %c68_i32_29 : i32 to vector<8x1xi32>
    %205 = arith.addi %203, %204 : vector<8x1xi32>
    %206 = vector.broadcast %205 : vector<8x1xi32> to vector<8x256xi32>
    %207 = arith.cmpi eq, %2, %206 : vector<8x256xi32>
    %208 = arith.ori %202, %207 : vector<8x256xi1>
    %209 = vector.extract_strided_slice %0 {offsets = [0, 9], sizes = [8, 1], strides = [1, 1]} : vector<8x21xi32> to vector<8x1xi32>
    %c102_i32_30 = arith.constant 102 : i32
    %210 = vector.broadcast %c102_i32_30 : i32 to vector<8x1xi32>
    %211 = arith.addi %209, %210 : vector<8x1xi32>
    %212 = vector.broadcast %211 : vector<8x1xi32> to vector<8x256xi32>
    %213 = arith.cmpi eq, %2, %212 : vector<8x256xi32>
    %214 = arith.ori %208, %213 : vector<8x256xi1>
    %215 = vector.extract_strided_slice %0 {offsets = [0, 10], sizes = [8, 1], strides = [1, 1]} : vector<8x21xi32> to vector<8x1xi32>
    %c136_i32_31 = arith.constant 136 : i32
    %216 = vector.broadcast %c136_i32_31 : i32 to vector<8x1xi32>
    %217 = arith.addi %215, %216 : vector<8x1xi32>
    %218 = vector.broadcast %217 : vector<8x1xi32> to vector<8x256xi32>
    %219 = arith.cmpi eq, %2, %218 : vector<8x256xi32>
    %220 = arith.ori %214, %219 : vector<8x256xi1>
    %221 = arith.extui %220 : vector<8x256xi1> to vector<8x256xi32>
    %222 = arith.sitofp %221 : vector<8x256xi32> to vector<8x256xf32>
    %223 = arith.truncf %222 : vector<8x256xf32> to vector<8x256xbf16>
    %cst_32 = arith.constant dense<0.000000e+00> : vector<8x256xf32>
    %224 = tpu.matmul %223, %1, %cst_32 {dimension_numbers = #tpu.dot_dimension_numbers<[1], [0], [0], [1], [0, 0, 1, 1], [], []>} : vector<8x256xbf16>, vector<256x256xbf16>, vector<8x256xf32> -> vector<8x256xf32>
    %225 = arith.maximumf %193, %224 : vector<8x256xf32>
    %226 = vector.extract_strided_slice %0 {offsets = [0, 7], sizes = [8, 1], strides = [1, 1]} : vector<8x21xi32> to vector<8x1xi32>
    %227 = vector.broadcast %226 : vector<8x1xi32> to vector<8x256xi32>
    %228 = arith.cmpi eq, %2, %227 : vector<8x256xi32>
    %229 = vector.extract_strided_slice %0 {offsets = [0, 8], sizes = [8, 1], strides = [1, 1]} : vector<8x21xi32> to vector<8x1xi32>
    %c34_i32_33 = arith.constant 34 : i32
    %230 = vector.broadcast %c34_i32_33 : i32 to vector<8x1xi32>
    %231 = arith.addi %229, %230 : vector<8x1xi32>
    %232 = vector.broadcast %231 : vector<8x1xi32> to vector<8x256xi32>
    %233 = arith.cmpi eq, %2, %232 : vector<8x256xi32>
    %234 = arith.ori %228, %233 : vector<8x256xi1>
    %235 = vector.extract_strided_slice %0 {offsets = [0, 9], sizes = [8, 1], strides = [1, 1]} : vector<8x21xi32> to vector<8x1xi32>
    %c68_i32_34 = arith.constant 68 : i32
    %236 = vector.broadcast %c68_i32_34 : i32 to vector<8x1xi32>
    %237 = arith.addi %235, %236 : vector<8x1xi32>
    %238 = vector.broadcast %237 : vector<8x1xi32> to vector<8x256xi32>
    %239 = arith.cmpi eq, %2, %238 : vector<8x256xi32>
    %240 = arith.ori %234, %239 : vector<8x256xi1>
    %241 = vector.extract_strided_slice %0 {offsets = [0, 10], sizes = [8, 1], strides = [1, 1]} : vector<8x21xi32> to vector<8x1xi32>
    %c102_i32_35 = arith.constant 102 : i32
    %242 = vector.broadcast %c102_i32_35 : i32 to vector<8x1xi32>
    %243 = arith.addi %241, %242 : vector<8x1xi32>
    %244 = vector.broadcast %243 : vector<8x1xi32> to vector<8x256xi32>
    %245 = arith.cmpi eq, %2, %244 : vector<8x256xi32>
    %246 = arith.ori %240, %245 : vector<8x256xi1>
    %247 = vector.extract_strided_slice %0 {offsets = [0, 11], sizes = [8, 1], strides = [1, 1]} : vector<8x21xi32> to vector<8x1xi32>
    %c136_i32_36 = arith.constant 136 : i32
    %248 = vector.broadcast %c136_i32_36 : i32 to vector<8x1xi32>
    %249 = arith.addi %247, %248 : vector<8x1xi32>
    %250 = vector.broadcast %249 : vector<8x1xi32> to vector<8x256xi32>
    %251 = arith.cmpi eq, %2, %250 : vector<8x256xi32>
    %252 = arith.ori %246, %251 : vector<8x256xi1>
    %253 = arith.extui %252 : vector<8x256xi1> to vector<8x256xi32>
    %254 = arith.sitofp %253 : vector<8x256xi32> to vector<8x256xf32>
    %255 = arith.truncf %254 : vector<8x256xf32> to vector<8x256xbf16>
    %cst_37 = arith.constant dense<0.000000e+00> : vector<8x256xf32>
    %256 = tpu.matmul %255, %1, %cst_37 {dimension_numbers = #tpu.dot_dimension_numbers<[1], [0], [0], [1], [0, 0, 1, 1], [], []>} : vector<8x256xbf16>, vector<256x256xbf16>, vector<8x256xf32> -> vector<8x256xf32>
    %257 = arith.maximumf %225, %256 : vector<8x256xf32>
    %258 = vector.extract_strided_slice %0 {offsets = [0, 8], sizes = [8, 1], strides = [1, 1]} : vector<8x21xi32> to vector<8x1xi32>
    %259 = vector.broadcast %258 : vector<8x1xi32> to vector<8x256xi32>
    %260 = arith.cmpi eq, %2, %259 : vector<8x256xi32>
    %261 = vector.extract_strided_slice %0 {offsets = [0, 9], sizes = [8, 1], strides = [1, 1]} : vector<8x21xi32> to vector<8x1xi32>
    %c34_i32_38 = arith.constant 34 : i32
    %262 = vector.broadcast %c34_i32_38 : i32 to vector<8x1xi32>
    %263 = arith.addi %261, %262 : vector<8x1xi32>
    %264 = vector.broadcast %263 : vector<8x1xi32> to vector<8x256xi32>
    %265 = arith.cmpi eq, %2, %264 : vector<8x256xi32>
    %266 = arith.ori %260, %265 : vector<8x256xi1>
    %267 = vector.extract_strided_slice %0 {offsets = [0, 10], sizes = [8, 1], strides = [1, 1]} : vector<8x21xi32> to vector<8x1xi32>
    %c68_i32_39 = arith.constant 68 : i32
    %268 = vector.broadcast %c68_i32_39 : i32 to vector<8x1xi32>
    %269 = arith.addi %267, %268 : vector<8x1xi32>
    %270 = vector.broadcast %269 : vector<8x1xi32> to vector<8x256xi32>
    %271 = arith.cmpi eq, %2, %270 : vector<8x256xi32>
    %272 = arith.ori %266, %271 : vector<8x256xi1>
    %273 = vector.extract_strided_slice %0 {offsets = [0, 11], sizes = [8, 1], strides = [1, 1]} : vector<8x21xi32> to vector<8x1xi32>
    %c102_i32_40 = arith.constant 102 : i32
    %274 = vector.broadcast %c102_i32_40 : i32 to vector<8x1xi32>
    %275 = arith.addi %273, %274 : vector<8x1xi32>
    %276 = vector.broadcast %275 : vector<8x1xi32> to vector<8x256xi32>
    %277 = arith.cmpi eq, %2, %276 : vector<8x256xi32>
    %278 = arith.ori %272, %277 : vector<8x256xi1>
    %279 = vector.extract_strided_slice %0 {offsets = [0, 12], sizes = [8, 1], strides = [1, 1]} : vector<8x21xi32> to vector<8x1xi32>
    %c136_i32_41 = arith.constant 136 : i32
    %280 = vector.broadcast %c136_i32_41 : i32 to vector<8x1xi32>
    %281 = arith.addi %279, %280 : vector<8x1xi32>
    %282 = vector.broadcast %281 : vector<8x1xi32> to vector<8x256xi32>
    %283 = arith.cmpi eq, %2, %282 : vector<8x256xi32>
    %284 = arith.ori %278, %283 : vector<8x256xi1>
    %285 = arith.extui %284 : vector<8x256xi1> to vector<8x256xi32>
    %286 = arith.sitofp %285 : vector<8x256xi32> to vector<8x256xf32>
    %287 = arith.truncf %286 : vector<8x256xf32> to vector<8x256xbf16>
    %cst_42 = arith.constant dense<0.000000e+00> : vector<8x256xf32>
    %288 = tpu.matmul %287, %1, %cst_42 {dimension_numbers = #tpu.dot_dimension_numbers<[1], [0], [0], [1], [0, 0, 1, 1], [], []>} : vector<8x256xbf16>, vector<256x256xbf16>, vector<8x256xf32> -> vector<8x256xf32>
    %289 = arith.maximumf %257, %288 : vector<8x256xf32>
    %290 = vector.extract_strided_slice %0 {offsets = [0, 9], sizes = [8, 1], strides = [1, 1]} : vector<8x21xi32> to vector<8x1xi32>
    %291 = vector.broadcast %290 : vector<8x1xi32> to vector<8x256xi32>
    %292 = arith.cmpi eq, %2, %291 : vector<8x256xi32>
    %293 = vector.extract_strided_slice %0 {offsets = [0, 10], sizes = [8, 1], strides = [1, 1]} : vector<8x21xi32> to vector<8x1xi32>
    %c34_i32_43 = arith.constant 34 : i32
    %294 = vector.broadcast %c34_i32_43 : i32 to vector<8x1xi32>
    %295 = arith.addi %293, %294 : vector<8x1xi32>
    %296 = vector.broadcast %295 : vector<8x1xi32> to vector<8x256xi32>
    %297 = arith.cmpi eq, %2, %296 : vector<8x256xi32>
    %298 = arith.ori %292, %297 : vector<8x256xi1>
    %299 = vector.extract_strided_slice %0 {offsets = [0, 11], sizes = [8, 1], strides = [1, 1]} : vector<8x21xi32> to vector<8x1xi32>
    %c68_i32_44 = arith.constant 68 : i32
    %300 = vector.broadcast %c68_i32_44 : i32 to vector<8x1xi32>
    %301 = arith.addi %299, %300 : vector<8x1xi32>
    %302 = vector.broadcast %301 : vector<8x1xi32> to vector<8x256xi32>
    %303 = arith.cmpi eq, %2, %302 : vector<8x256xi32>
    %304 = arith.ori %298, %303 : vector<8x256xi1>
    %305 = vector.extract_strided_slice %0 {offsets = [0, 12], sizes = [8, 1], strides = [1, 1]} : vector<8x21xi32> to vector<8x1xi32>
    %c102_i32_45 = arith.constant 102 : i32
    %306 = vector.broadcast %c102_i32_45 : i32 to vector<8x1xi32>
    %307 = arith.addi %305, %306 : vector<8x1xi32>
    %308 = vector.broadcast %307 : vector<8x1xi32> to vector<8x256xi32>
    %309 = arith.cmpi eq, %2, %308 : vector<8x256xi32>
    %310 = arith.ori %304, %309 : vector<8x256xi1>
    %311 = vector.extract_strided_slice %0 {offsets = [0, 13], sizes = [8, 1], strides = [1, 1]} : vector<8x21xi32> to vector<8x1xi32>
    %c136_i32_46 = arith.constant 136 : i32
    %312 = vector.broadcast %c136_i32_46 : i32 to vector<8x1xi32>
    %313 = arith.addi %311, %312 : vector<8x1xi32>
    %314 = vector.broadcast %313 : vector<8x1xi32> to vector<8x256xi32>
    %315 = arith.cmpi eq, %2, %314 : vector<8x256xi32>
    %316 = arith.ori %310, %315 : vector<8x256xi1>
    %317 = arith.extui %316 : vector<8x256xi1> to vector<8x256xi32>
    %318 = arith.sitofp %317 : vector<8x256xi32> to vector<8x256xf32>
    %319 = arith.truncf %318 : vector<8x256xf32> to vector<8x256xbf16>
    %cst_47 = arith.constant dense<0.000000e+00> : vector<8x256xf32>
    %320 = tpu.matmul %319, %1, %cst_47 {dimension_numbers = #tpu.dot_dimension_numbers<[1], [0], [0], [1], [0, 0, 1, 1], [], []>} : vector<8x256xbf16>, vector<256x256xbf16>, vector<8x256xf32> -> vector<8x256xf32>
    %321 = arith.maximumf %289, %320 : vector<8x256xf32>
    %322 = vector.extract_strided_slice %0 {offsets = [0, 10], sizes = [8, 1], strides = [1, 1]} : vector<8x21xi32> to vector<8x1xi32>
    %323 = vector.broadcast %322 : vector<8x1xi32> to vector<8x256xi32>
    %324 = arith.cmpi eq, %2, %323 : vector<8x256xi32>
    %325 = vector.extract_strided_slice %0 {offsets = [0, 11], sizes = [8, 1], strides = [1, 1]} : vector<8x21xi32> to vector<8x1xi32>
    %c34_i32_48 = arith.constant 34 : i32
    %326 = vector.broadcast %c34_i32_48 : i32 to vector<8x1xi32>
    %327 = arith.addi %325, %326 : vector<8x1xi32>
    %328 = vector.broadcast %327 : vector<8x1xi32> to vector<8x256xi32>
    %329 = arith.cmpi eq, %2, %328 : vector<8x256xi32>
    %330 = arith.ori %324, %329 : vector<8x256xi1>
    %331 = vector.extract_strided_slice %0 {offsets = [0, 12], sizes = [8, 1], strides = [1, 1]} : vector<8x21xi32> to vector<8x1xi32>
    %c68_i32_49 = arith.constant 68 : i32
    %332 = vector.broadcast %c68_i32_49 : i32 to vector<8x1xi32>
    %333 = arith.addi %331, %332 : vector<8x1xi32>
    %334 = vector.broadcast %333 : vector<8x1xi32> to vector<8x256xi32>
    %335 = arith.cmpi eq, %2, %334 : vector<8x256xi32>
    %336 = arith.ori %330, %335 : vector<8x256xi1>
    %337 = vector.extract_strided_slice %0 {offsets = [0, 13], sizes = [8, 1], strides = [1, 1]} : vector<8x21xi32> to vector<8x1xi32>
    %c102_i32_50 = arith.constant 102 : i32
    %338 = vector.broadcast %c102_i32_50 : i32 to vector<8x1xi32>
    %339 = arith.addi %337, %338 : vector<8x1xi32>
    %340 = vector.broadcast %339 : vector<8x1xi32> to vector<8x256xi32>
    %341 = arith.cmpi eq, %2, %340 : vector<8x256xi32>
    %342 = arith.ori %336, %341 : vector<8x256xi1>
    %343 = vector.extract_strided_slice %0 {offsets = [0, 14], sizes = [8, 1], strides = [1, 1]} : vector<8x21xi32> to vector<8x1xi32>
    %c136_i32_51 = arith.constant 136 : i32
    %344 = vector.broadcast %c136_i32_51 : i32 to vector<8x1xi32>
    %345 = arith.addi %343, %344 : vector<8x1xi32>
    %346 = vector.broadcast %345 : vector<8x1xi32> to vector<8x256xi32>
    %347 = arith.cmpi eq, %2, %346 : vector<8x256xi32>
    %348 = arith.ori %342, %347 : vector<8x256xi1>
    %349 = arith.extui %348 : vector<8x256xi1> to vector<8x256xi32>
    %350 = arith.sitofp %349 : vector<8x256xi32> to vector<8x256xf32>
    %351 = arith.truncf %350 : vector<8x256xf32> to vector<8x256xbf16>
    %cst_52 = arith.constant dense<0.000000e+00> : vector<8x256xf32>
    %352 = tpu.matmul %351, %1, %cst_52 {dimension_numbers = #tpu.dot_dimension_numbers<[1], [0], [0], [1], [0, 0, 1, 1], [], []>} : vector<8x256xbf16>, vector<256x256xbf16>, vector<8x256xf32> -> vector<8x256xf32>
    %353 = arith.maximumf %321, %352 : vector<8x256xf32>
    %354 = vector.extract_strided_slice %0 {offsets = [0, 11], sizes = [8, 1], strides = [1, 1]} : vector<8x21xi32> to vector<8x1xi32>
    %355 = vector.broadcast %354 : vector<8x1xi32> to vector<8x256xi32>
    %356 = arith.cmpi eq, %2, %355 : vector<8x256xi32>
    %357 = vector.extract_strided_slice %0 {offsets = [0, 12], sizes = [8, 1], strides = [1, 1]} : vector<8x21xi32> to vector<8x1xi32>
    %c34_i32_53 = arith.constant 34 : i32
    %358 = vector.broadcast %c34_i32_53 : i32 to vector<8x1xi32>
    %359 = arith.addi %357, %358 : vector<8x1xi32>
    %360 = vector.broadcast %359 : vector<8x1xi32> to vector<8x256xi32>
    %361 = arith.cmpi eq, %2, %360 : vector<8x256xi32>
    %362 = arith.ori %356, %361 : vector<8x256xi1>
    %363 = vector.extract_strided_slice %0 {offsets = [0, 13], sizes = [8, 1], strides = [1, 1]} : vector<8x21xi32> to vector<8x1xi32>
    %c68_i32_54 = arith.constant 68 : i32
    %364 = vector.broadcast %c68_i32_54 : i32 to vector<8x1xi32>
    %365 = arith.addi %363, %364 : vector<8x1xi32>
    %366 = vector.broadcast %365 : vector<8x1xi32> to vector<8x256xi32>
    %367 = arith.cmpi eq, %2, %366 : vector<8x256xi32>
    %368 = arith.ori %362, %367 : vector<8x256xi1>
    %369 = vector.extract_strided_slice %0 {offsets = [0, 14], sizes = [8, 1], strides = [1, 1]} : vector<8x21xi32> to vector<8x1xi32>
    %c102_i32_55 = arith.constant 102 : i32
    %370 = vector.broadcast %c102_i32_55 : i32 to vector<8x1xi32>
    %371 = arith.addi %369, %370 : vector<8x1xi32>
    %372 = vector.broadcast %371 : vector<8x1xi32> to vector<8x256xi32>
    %373 = arith.cmpi eq, %2, %372 : vector<8x256xi32>
    %374 = arith.ori %368, %373 : vector<8x256xi1>
    %375 = vector.extract_strided_slice %0 {offsets = [0, 15], sizes = [8, 1], strides = [1, 1]} : vector<8x21xi32> to vector<8x1xi32>
    %c136_i32_56 = arith.constant 136 : i32
    %376 = vector.broadcast %c136_i32_56 : i32 to vector<8x1xi32>
    %377 = arith.addi %375, %376 : vector<8x1xi32>
    %378 = vector.broadcast %377 : vector<8x1xi32> to vector<8x256xi32>
    %379 = arith.cmpi eq, %2, %378 : vector<8x256xi32>
    %380 = arith.ori %374, %379 : vector<8x256xi1>
    %381 = arith.extui %380 : vector<8x256xi1> to vector<8x256xi32>
    %382 = arith.sitofp %381 : vector<8x256xi32> to vector<8x256xf32>
    %383 = arith.truncf %382 : vector<8x256xf32> to vector<8x256xbf16>
    %cst_57 = arith.constant dense<0.000000e+00> : vector<8x256xf32>
    %384 = tpu.matmul %383, %1, %cst_57 {dimension_numbers = #tpu.dot_dimension_numbers<[1], [0], [0], [1], [0, 0, 1, 1], [], []>} : vector<8x256xbf16>, vector<256x256xbf16>, vector<8x256xf32> -> vector<8x256xf32>
    %385 = arith.maximumf %353, %384 : vector<8x256xf32>
    %386 = vector.extract_strided_slice %0 {offsets = [0, 12], sizes = [8, 1], strides = [1, 1]} : vector<8x21xi32> to vector<8x1xi32>
    %387 = vector.broadcast %386 : vector<8x1xi32> to vector<8x256xi32>
    %388 = arith.cmpi eq, %2, %387 : vector<8x256xi32>
    %389 = vector.extract_strided_slice %0 {offsets = [0, 13], sizes = [8, 1], strides = [1, 1]} : vector<8x21xi32> to vector<8x1xi32>
    %c34_i32_58 = arith.constant 34 : i32
    %390 = vector.broadcast %c34_i32_58 : i32 to vector<8x1xi32>
    %391 = arith.addi %389, %390 : vector<8x1xi32>
    %392 = vector.broadcast %391 : vector<8x1xi32> to vector<8x256xi32>
    %393 = arith.cmpi eq, %2, %392 : vector<8x256xi32>
    %394 = arith.ori %388, %393 : vector<8x256xi1>
    %395 = vector.extract_strided_slice %0 {offsets = [0, 14], sizes = [8, 1], strides = [1, 1]} : vector<8x21xi32> to vector<8x1xi32>
    %c68_i32_59 = arith.constant 68 : i32
    %396 = vector.broadcast %c68_i32_59 : i32 to vector<8x1xi32>
    %397 = arith.addi %395, %396 : vector<8x1xi32>
    %398 = vector.broadcast %397 : vector<8x1xi32> to vector<8x256xi32>
    %399 = arith.cmpi eq, %2, %398 : vector<8x256xi32>
    %400 = arith.ori %394, %399 : vector<8x256xi1>
    %401 = vector.extract_strided_slice %0 {offsets = [0, 15], sizes = [8, 1], strides = [1, 1]} : vector<8x21xi32> to vector<8x1xi32>
    %c102_i32_60 = arith.constant 102 : i32
    %402 = vector.broadcast %c102_i32_60 : i32 to vector<8x1xi32>
    %403 = arith.addi %401, %402 : vector<8x1xi32>
    %404 = vector.broadcast %403 : vector<8x1xi32> to vector<8x256xi32>
    %405 = arith.cmpi eq, %2, %404 : vector<8x256xi32>
    %406 = arith.ori %400, %405 : vector<8x256xi1>
    %407 = vector.extract_strided_slice %0 {offsets = [0, 16], sizes = [8, 1], strides = [1, 1]} : vector<8x21xi32> to vector<8x1xi32>
    %c136_i32_61 = arith.constant 136 : i32
    %408 = vector.broadcast %c136_i32_61 : i32 to vector<8x1xi32>
    %409 = arith.addi %407, %408 : vector<8x1xi32>
    %410 = vector.broadcast %409 : vector<8x1xi32> to vector<8x256xi32>
    %411 = arith.cmpi eq, %2, %410 : vector<8x256xi32>
    %412 = arith.ori %406, %411 : vector<8x256xi1>
    %413 = arith.extui %412 : vector<8x256xi1> to vector<8x256xi32>
    %414 = arith.sitofp %413 : vector<8x256xi32> to vector<8x256xf32>
    %415 = arith.truncf %414 : vector<8x256xf32> to vector<8x256xbf16>
    %cst_62 = arith.constant dense<0.000000e+00> : vector<8x256xf32>
    %416 = tpu.matmul %415, %1, %cst_62 {dimension_numbers = #tpu.dot_dimension_numbers<[1], [0], [0], [1], [0, 0, 1, 1], [], []>} : vector<8x256xbf16>, vector<256x256xbf16>, vector<8x256xf32> -> vector<8x256xf32>
    %417 = arith.maximumf %385, %416 : vector<8x256xf32>
    %418 = vector.extract_strided_slice %0 {offsets = [0, 13], sizes = [8, 1], strides = [1, 1]} : vector<8x21xi32> to vector<8x1xi32>
    %419 = vector.broadcast %418 : vector<8x1xi32> to vector<8x256xi32>
    %420 = arith.cmpi eq, %2, %419 : vector<8x256xi32>
    %421 = vector.extract_strided_slice %0 {offsets = [0, 14], sizes = [8, 1], strides = [1, 1]} : vector<8x21xi32> to vector<8x1xi32>
    %c34_i32_63 = arith.constant 34 : i32
    %422 = vector.broadcast %c34_i32_63 : i32 to vector<8x1xi32>
    %423 = arith.addi %421, %422 : vector<8x1xi32>
    %424 = vector.broadcast %423 : vector<8x1xi32> to vector<8x256xi32>
    %425 = arith.cmpi eq, %2, %424 : vector<8x256xi32>
    %426 = arith.ori %420, %425 : vector<8x256xi1>
    %427 = vector.extract_strided_slice %0 {offsets = [0, 15], sizes = [8, 1], strides = [1, 1]} : vector<8x21xi32> to vector<8x1xi32>
    %c68_i32_64 = arith.constant 68 : i32
    %428 = vector.broadcast %c68_i32_64 : i32 to vector<8x1xi32>
    %429 = arith.addi %427, %428 : vector<8x1xi32>
    %430 = vector.broadcast %429 : vector<8x1xi32> to vector<8x256xi32>
    %431 = arith.cmpi eq, %2, %430 : vector<8x256xi32>
    %432 = arith.ori %426, %431 : vector<8x256xi1>
    %433 = vector.extract_strided_slice %0 {offsets = [0, 16], sizes = [8, 1], strides = [1, 1]} : vector<8x21xi32> to vector<8x1xi32>
    %c102_i32_65 = arith.constant 102 : i32
    %434 = vector.broadcast %c102_i32_65 : i32 to vector<8x1xi32>
    %435 = arith.addi %433, %434 : vector<8x1xi32>
    %436 = vector.broadcast %435 : vector<8x1xi32> to vector<8x256xi32>
    %437 = arith.cmpi eq, %2, %436 : vector<8x256xi32>
    %438 = arith.ori %432, %437 : vector<8x256xi1>
    %439 = vector.extract_strided_slice %0 {offsets = [0, 17], sizes = [8, 1], strides = [1, 1]} : vector<8x21xi32> to vector<8x1xi32>
    %c136_i32_66 = arith.constant 136 : i32
    %440 = vector.broadcast %c136_i32_66 : i32 to vector<8x1xi32>
    %441 = arith.addi %439, %440 : vector<8x1xi32>
    %442 = vector.broadcast %441 : vector<8x1xi32> to vector<8x256xi32>
    %443 = arith.cmpi eq, %2, %442 : vector<8x256xi32>
    %444 = arith.ori %438, %443 : vector<8x256xi1>
    %445 = arith.extui %444 : vector<8x256xi1> to vector<8x256xi32>
    %446 = arith.sitofp %445 : vector<8x256xi32> to vector<8x256xf32>
    %447 = arith.truncf %446 : vector<8x256xf32> to vector<8x256xbf16>
    %cst_67 = arith.constant dense<0.000000e+00> : vector<8x256xf32>
    %448 = tpu.matmul %447, %1, %cst_67 {dimension_numbers = #tpu.dot_dimension_numbers<[1], [0], [0], [1], [0, 0, 1, 1], [], []>} : vector<8x256xbf16>, vector<256x256xbf16>, vector<8x256xf32> -> vector<8x256xf32>
    %449 = arith.maximumf %417, %448 : vector<8x256xf32>
    %450 = vector.extract_strided_slice %0 {offsets = [0, 14], sizes = [8, 1], strides = [1, 1]} : vector<8x21xi32> to vector<8x1xi32>
    %451 = vector.broadcast %450 : vector<8x1xi32> to vector<8x256xi32>
    %452 = arith.cmpi eq, %2, %451 : vector<8x256xi32>
    %453 = vector.extract_strided_slice %0 {offsets = [0, 15], sizes = [8, 1], strides = [1, 1]} : vector<8x21xi32> to vector<8x1xi32>
    %c34_i32_68 = arith.constant 34 : i32
    %454 = vector.broadcast %c34_i32_68 : i32 to vector<8x1xi32>
    %455 = arith.addi %453, %454 : vector<8x1xi32>
    %456 = vector.broadcast %455 : vector<8x1xi32> to vector<8x256xi32>
    %457 = arith.cmpi eq, %2, %456 : vector<8x256xi32>
    %458 = arith.ori %452, %457 : vector<8x256xi1>
    %459 = vector.extract_strided_slice %0 {offsets = [0, 16], sizes = [8, 1], strides = [1, 1]} : vector<8x21xi32> to vector<8x1xi32>
    %c68_i32_69 = arith.constant 68 : i32
    %460 = vector.broadcast %c68_i32_69 : i32 to vector<8x1xi32>
    %461 = arith.addi %459, %460 : vector<8x1xi32>
    %462 = vector.broadcast %461 : vector<8x1xi32> to vector<8x256xi32>
    %463 = arith.cmpi eq, %2, %462 : vector<8x256xi32>
    %464 = arith.ori %458, %463 : vector<8x256xi1>
    %465 = vector.extract_strided_slice %0 {offsets = [0, 17], sizes = [8, 1], strides = [1, 1]} : vector<8x21xi32> to vector<8x1xi32>
    %c102_i32_70 = arith.constant 102 : i32
    %466 = vector.broadcast %c102_i32_70 : i32 to vector<8x1xi32>
    %467 = arith.addi %465, %466 : vector<8x1xi32>
    %468 = vector.broadcast %467 : vector<8x1xi32> to vector<8x256xi32>
    %469 = arith.cmpi eq, %2, %468 : vector<8x256xi32>
    %470 = arith.ori %464, %469 : vector<8x256xi1>
    %471 = vector.extract_strided_slice %0 {offsets = [0, 18], sizes = [8, 1], strides = [1, 1]} : vector<8x21xi32> to vector<8x1xi32>
    %c136_i32_71 = arith.constant 136 : i32
    %472 = vector.broadcast %c136_i32_71 : i32 to vector<8x1xi32>
    %473 = arith.addi %471, %472 : vector<8x1xi32>
    %474 = vector.broadcast %473 : vector<8x1xi32> to vector<8x256xi32>
    %475 = arith.cmpi eq, %2, %474 : vector<8x256xi32>
    %476 = arith.ori %470, %475 : vector<8x256xi1>
    %477 = arith.extui %476 : vector<8x256xi1> to vector<8x256xi32>
    %478 = arith.sitofp %477 : vector<8x256xi32> to vector<8x256xf32>
    %479 = arith.truncf %478 : vector<8x256xf32> to vector<8x256xbf16>
    %cst_72 = arith.constant dense<0.000000e+00> : vector<8x256xf32>
    %480 = tpu.matmul %479, %1, %cst_72 {dimension_numbers = #tpu.dot_dimension_numbers<[1], [0], [0], [1], [0, 0, 1, 1], [], []>} : vector<8x256xbf16>, vector<256x256xbf16>, vector<8x256xf32> -> vector<8x256xf32>
    %481 = arith.maximumf %449, %480 : vector<8x256xf32>
    %482 = vector.extract_strided_slice %0 {offsets = [0, 15], sizes = [8, 1], strides = [1, 1]} : vector<8x21xi32> to vector<8x1xi32>
    %483 = vector.broadcast %482 : vector<8x1xi32> to vector<8x256xi32>
    %484 = arith.cmpi eq, %2, %483 : vector<8x256xi32>
    %485 = vector.extract_strided_slice %0 {offsets = [0, 16], sizes = [8, 1], strides = [1, 1]} : vector<8x21xi32> to vector<8x1xi32>
    %c34_i32_73 = arith.constant 34 : i32
    %486 = vector.broadcast %c34_i32_73 : i32 to vector<8x1xi32>
    %487 = arith.addi %485, %486 : vector<8x1xi32>
    %488 = vector.broadcast %487 : vector<8x1xi32> to vector<8x256xi32>
    %489 = arith.cmpi eq, %2, %488 : vector<8x256xi32>
    %490 = arith.ori %484, %489 : vector<8x256xi1>
    %491 = vector.extract_strided_slice %0 {offsets = [0, 17], sizes = [8, 1], strides = [1, 1]} : vector<8x21xi32> to vector<8x1xi32>
    %c68_i32_74 = arith.constant 68 : i32
    %492 = vector.broadcast %c68_i32_74 : i32 to vector<8x1xi32>
    %493 = arith.addi %491, %492 : vector<8x1xi32>
    %494 = vector.broadcast %493 : vector<8x1xi32> to vector<8x256xi32>
    %495 = arith.cmpi eq, %2, %494 : vector<8x256xi32>
    %496 = arith.ori %490, %495 : vector<8x256xi1>
    %497 = vector.extract_strided_slice %0 {offsets = [0, 18], sizes = [8, 1], strides = [1, 1]} : vector<8x21xi32> to vector<8x1xi32>
    %c102_i32_75 = arith.constant 102 : i32
    %498 = vector.broadcast %c102_i32_75 : i32 to vector<8x1xi32>
    %499 = arith.addi %497, %498 : vector<8x1xi32>
    %500 = vector.broadcast %499 : vector<8x1xi32> to vector<8x256xi32>
    %501 = arith.cmpi eq, %2, %500 : vector<8x256xi32>
    %502 = arith.ori %496, %501 : vector<8x256xi1>
    %503 = vector.extract_strided_slice %0 {offsets = [0, 19], sizes = [8, 1], strides = [1, 1]} : vector<8x21xi32> to vector<8x1xi32>
    %c136_i32_76 = arith.constant 136 : i32
    %504 = vector.broadcast %c136_i32_76 : i32 to vector<8x1xi32>
    %505 = arith.addi %503, %504 : vector<8x1xi32>
    %506 = vector.broadcast %505 : vector<8x1xi32> to vector<8x256xi32>
    %507 = arith.cmpi eq, %2, %506 : vector<8x256xi32>
    %508 = arith.ori %502, %507 : vector<8x256xi1>
    %509 = arith.extui %508 : vector<8x256xi1> to vector<8x256xi32>
    %510 = arith.sitofp %509 : vector<8x256xi32> to vector<8x256xf32>
    %511 = arith.truncf %510 : vector<8x256xf32> to vector<8x256xbf16>
    %cst_77 = arith.constant dense<0.000000e+00> : vector<8x256xf32>
    %512 = tpu.matmul %511, %1, %cst_77 {dimension_numbers = #tpu.dot_dimension_numbers<[1], [0], [0], [1], [0, 0, 1, 1], [], []>} : vector<8x256xbf16>, vector<256x256xbf16>, vector<8x256xf32> -> vector<8x256xf32>
    %513 = arith.maximumf %481, %512 : vector<8x256xf32>
    %514 = vector.extract_strided_slice %0 {offsets = [0, 16], sizes = [8, 1], strides = [1, 1]} : vector<8x21xi32> to vector<8x1xi32>
    %515 = vector.broadcast %514 : vector<8x1xi32> to vector<8x256xi32>
    %516 = arith.cmpi eq, %2, %515 : vector<8x256xi32>
    %517 = vector.extract_strided_slice %0 {offsets = [0, 17], sizes = [8, 1], strides = [1, 1]} : vector<8x21xi32> to vector<8x1xi32>
    %c34_i32_78 = arith.constant 34 : i32
    %518 = vector.broadcast %c34_i32_78 : i32 to vector<8x1xi32>
    %519 = arith.addi %517, %518 : vector<8x1xi32>
    %520 = vector.broadcast %519 : vector<8x1xi32> to vector<8x256xi32>
    %521 = arith.cmpi eq, %2, %520 : vector<8x256xi32>
    %522 = arith.ori %516, %521 : vector<8x256xi1>
    %523 = vector.extract_strided_slice %0 {offsets = [0, 18], sizes = [8, 1], strides = [1, 1]} : vector<8x21xi32> to vector<8x1xi32>
    %c68_i32_79 = arith.constant 68 : i32
    %524 = vector.broadcast %c68_i32_79 : i32 to vector<8x1xi32>
    %525 = arith.addi %523, %524 : vector<8x1xi32>
    %526 = vector.broadcast %525 : vector<8x1xi32> to vector<8x256xi32>
    %527 = arith.cmpi eq, %2, %526 : vector<8x256xi32>
    %528 = arith.ori %522, %527 : vector<8x256xi1>
    %529 = vector.extract_strided_slice %0 {offsets = [0, 19], sizes = [8, 1], strides = [1, 1]} : vector<8x21xi32> to vector<8x1xi32>
    %c102_i32_80 = arith.constant 102 : i32
    %530 = vector.broadcast %c102_i32_80 : i32 to vector<8x1xi32>
    %531 = arith.addi %529, %530 : vector<8x1xi32>
    %532 = vector.broadcast %531 : vector<8x1xi32> to vector<8x256xi32>
    %533 = arith.cmpi eq, %2, %532 : vector<8x256xi32>
    %534 = arith.ori %528, %533 : vector<8x256xi1>
    %535 = vector.extract_strided_slice %0 {offsets = [0, 20], sizes = [8, 1], strides = [1, 1]} : vector<8x21xi32> to vector<8x1xi32>
    %c136_i32_81 = arith.constant 136 : i32
    %536 = vector.broadcast %c136_i32_81 : i32 to vector<8x1xi32>
    %537 = arith.addi %535, %536 : vector<8x1xi32>
    %538 = vector.broadcast %537 : vector<8x1xi32> to vector<8x256xi32>
    %539 = arith.cmpi eq, %2, %538 : vector<8x256xi32>
    %540 = arith.ori %534, %539 : vector<8x256xi1>
    %541 = arith.extui %540 : vector<8x256xi1> to vector<8x256xi32>
    %542 = arith.sitofp %541 : vector<8x256xi32> to vector<8x256xf32>
    %543 = arith.truncf %542 : vector<8x256xf32> to vector<8x256xbf16>
    %cst_82 = arith.constant dense<0.000000e+00> : vector<8x256xf32>
    %544 = tpu.matmul %543, %1, %cst_82 {dimension_numbers = #tpu.dot_dimension_numbers<[1], [0], [0], [1], [0, 0, 1, 1], [], []>} : vector<8x256xbf16>, vector<256x256xbf16>, vector<8x256xf32> -> vector<8x256xf32>
    %545 = arith.maximumf %513, %544 : vector<8x256xf32>
    %c0_83 = arith.constant 0 : index
    %c0_84 = arith.constant 0 : index
    %546 = vector.load %arg3[%c0_83, %c0_84] : memref<1x256xf32, #tpu.memory_space<vmem>>, vector<1x256xf32>
    %547 = vector.broadcast %546 : vector<1x256xf32> to vector<8x256xf32>
    %548 = arith.addf %545, %547 : vector<8x256xf32>
    %cst_85 = arith.constant 0.000000e+00 : f32
    %549 = vector.broadcast %cst_85 : f32 to vector<8x256xf32>
    %550 = arith.maximumf %548, %549 : vector<8x256xf32>
    %551 = arith.truncf %550 : vector<8x256xf32> to vector<8x256xbf16>
    %c0_86 = arith.constant 0 : index
    %c0_87 = arith.constant 0 : index
    %552 = vector.load %arg4[%c0_86, %c0_87] : memref<256x512xbf16, #tpu.memory_space<vmem>>, vector<256x512xbf16>
    %cst_88 = arith.constant dense<0.000000e+00> : vector<8x512xf32>
    %553 = tpu.matmul %551, %552, %cst_88 {dimension_numbers = #tpu.dot_dimension_numbers<[1], [0], [0], [1], [0, 0, 1, 1], [], []>} : vector<8x256xbf16>, vector<256x512xbf16>, vector<8x512xf32> -> vector<8x512xf32>
    %c0_89 = arith.constant 0 : index
    %c0_90 = arith.constant 0 : index
    %554 = vector.load %arg5[%c0_89, %c0_90] : memref<1x512xf32, #tpu.memory_space<vmem>>, vector<1x512xf32>
    %555 = vector.broadcast %554 : vector<1x512xf32> to vector<8x512xf32>
    %556 = arith.addf %553, %555 : vector<8x512xf32>
    %557 = vector.extract_strided_slice %556 {offsets = [0, 0], sizes = [8, 256], strides = [1, 1]} : vector<8x512xf32> to vector<8x256xf32>
    %cst_91 = arith.constant 0.000000e+00 : f32
    %558 = vector.broadcast %cst_91 : f32 to vector<8x256xf32>
    %559 = arith.maximumf %557, %558 : vector<8x256xf32>
    %560 = vector.extract_strided_slice %556 {offsets = [0, 256], sizes = [8, 256], strides = [1, 1]} : vector<8x512xf32> to vector<8x256xf32>
    %561 = arith.negf %560 : vector<8x256xf32>
    %562 = math.exp %561 : vector<8x256xf32>
    %cst_92 = arith.constant 1.000000e+00 : f32
    %563 = vector.broadcast %cst_92 : f32 to vector<8x256xf32>
    %564 = arith.addf %563, %562 : vector<8x256xf32>
    %565 = arith.divf %563, %564 : vector<8x256xf32>
    %566 = arith.mulf %565, %559 : vector<8x256xf32>
    %cst_93 = arith.constant 1.000000e+00 : f32
    %567 = vector.broadcast %cst_93 : f32 to vector<8x256xf32>
    %568 = arith.subf %567, %565 : vector<8x256xf32>
    %569 = arith.mulf %568, %550 : vector<8x256xf32>
    %570 = arith.addf %566, %569 : vector<8x256xf32>
    %c0_94 = arith.constant 0 : index
    %c0_95 = arith.constant 0 : index
    %571 = vector.load %arg6[%c0_94, %c0_95] : memref<8x256xf32, #tpu.memory_space<vmem>>, vector<8x256xf32>
    tpu.vector_store %arg6[%c0_94, %c0_95], %570 {strides = array<i32>} : memref<8x256xf32, #tpu.memory_space<vmem>>, vector<8x256xf32>,
    return
  }
  func.func @transform_0(%arg0: i32) -> (i32, i32) {
    %c0_i32 = arith.constant 0 : i32
    %c0_i32_0 = arith.constant 0 : i32
    return %arg0, %c0_i32 : i32, i32
  }
  func.func @transform_1(%arg0: i32) -> (i32, i32) {
    %c0_i32 = arith.constant 0 : i32
    %c0_i32_0 = arith.constant 0 : i32
    %c0_i32_1 = arith.constant 0 : i32
    return %c0_i32, %c0_i32_0 : i32, i32
  }
  func.func @transform_2(%arg0: i32) -> (i32, i32) {
    %c0_i32 = arith.constant 0 : i32
    %c0_i32_0 = arith.constant 0 : i32
    %c0_i32_1 = arith.constant 0 : i32
    return %c0_i32, %c0_i32_0 : i32, i32
  }
  func.func @transform_3(%arg0: i32) -> (i32, i32) {
    %c0_i32 = arith.constant 0 : i32
    %c0_i32_0 = arith.constant 0 : i32
    %c0_i32_1 = arith.constant 0 : i32
    return %c0_i32, %c0_i32_0 : i32, i32
  }
  func.func @transform_4(%arg0: i32) -> (i32, i32) {
    %c0_i32 = arith.constant 0 : i32
    %c0_i32_0 = arith.constant 0 : i32
    %c0_i32_1 = arith.constant 0 : i32
    return %c0_i32, %c0_i32_0 : i32, i32
  }
  func.func @transform_5(%arg0: i32) -> (i32, i32) {
    %c0_i32 = arith.constant 0 : i32
    %c0_i32_0 = arith.constant 0 : i32
    return %arg0, %c0_i32 : i32, i32
  }
}

</mosaic_0001>

<bundles_post_ra>
// kernel: model_embeddings_forward.1
= control target key start
LH: loop header
LB: loop body
LE: loop exit
PB: predicated region body
PF: predicated region fallthrough
CT: control target
= control target key end

     0   :  { %s2925_s18 = smov 0   ;;  %s5062_s0 = inlined_call_operand.vmem [shape: s32[16,21], index: 0, kind: input, shape index: {}]   ;;  %s5063_s1 = inlined_call_operand.vmem [shape: bf16[256,256], index: 1, kind: input, shape index: {}]   ;;  %s5064_s2 = inlined_call_operand.vmem [shape: f32[1,256], index: 2, kind: input, shape index: {}]   ;;  %s5065_s3 = inlined_call_operand.vmem [shape: bf16[256,512], index: 3, kind: input, shape index: {}]   ;;  %s5066_s4 = inlined_call_operand.vmem [shape: f32[1,512], index: 4, kind: input, shape index: {}]   ;;  %s5067_s5 = inlined_call_operand.vmem [shape: f32[16,256], index: 5, kind: output, shape index: {}]  }
   0x1 LB: > { %s2399_s19 = sadd.s32 4294967295, %s2871_s18   ;;  %p2403_p0 = scmp.ge.s32.totalorder %s2871_s18, 1  ;;  %s2871_s18 = sphi %s2925_s18, %s15_s18  }
   0x2   : > { %p186_p1 = scmp.lt.s32.totalorder %s2871_s18, 3 }
   0x4   : > { %p187_p2 = pnand %p2403_p0, %p186_p1 }
   0x5   : > { %p213_p3 = scmp.lt.s32.totalorder (!%p187_p2), %s2399_s19, 1  ;;  %v2873_v0 = vmov (!%p187_p2), 0   ;;  %v2874_v1 = vmov (!%p187_p2), 2   ;;  %v2937_v2 = vld [vmem:[%s5063_s1 + $0x4] ss:$8 sps:$4 sm:$0xff] (!%p187_p2)   ;;  %v2875_v13 = vmov (!%p187_p2), 1   ;;  %v5068_v49 = vlaneseq (!%p187_p2) }
   0x6   : > { %190 = sbr.rel (%p187_p2) target bundleno = 1146 (0x47a), region = 40  ;;  %2572 = vset.pattern.permute.xlu0 (!%p187_p2), %v2873_v0  ;;  %2574 = vset.pattern.permute.xlu1 (!%p187_p2), %v2874_v1  ;;  %v2944_v3 = vld [vmem:[%s5063_s1] ss:$8 sps:$4 sm:$0xff] (!%p187_p2)   ;;  %v2950_v4 = vld [vmem:[%s5063_s1 + $0x14] ss:$8 sps:$4 sm:$0xff] (!%p187_p2)   ;;  %v2876_v15 = vmov (!%p187_p2), 3  }
   0x7   : > { %461 = vmatprep.subr.bf16.mxu0 (!%p187_p2), %v2937_v2  ;;  %541 = vmatprep.subr.bf16.mxu1 (!%p187_p2), %v2937_v2  ;;  %v2958_v5 = vld [vmem:[%s5063_s1 + $0x10] ss:$8 sps:$4 sm:$0xff] (!%p187_p2)   ;;  %v2970_v6 = vld [vmem:[%s5063_s1 + $0x24] ss:$8 sps:$4 sm:$0xff] (!%p187_p2)   ;;  %v2987_v10 = vld [vmem:[%s5063_s1 + $0x20] ss:$8 sps:$4 sm:$0xff] (!%p187_p2)  }
   0x8   : > { %462 = vmatpush1.bf16.msra.mxu0 (!%p187_p2), %v2944_v3  ;;  %542 = vmatpush1.bf16.msra.mxu1 (!%p187_p2), %v2944_v3  ;;  %v2995_v11 = vld [vmem:[%s5063_s1 + $0x34] ss:$8 sps:$4 sm:$0xff] (!%p187_p2)   ;;  %v3006_v14 = vld [vmem:[%s5063_s1 + $0x30] ss:$8 sps:$4 sm:$0xff] (!%p187_p2)   ;;  %v3012_v16 = vld [vmem:[%s5063_s1 + $0x44] ss:$8 sps:$4 sm:$0xff] (!%p187_p2)  }
   0x9   : > { %463 = vmatprep.subr.bf16.mxu0 (!%p187_p2), %v2950_v4  ;;  %543 = vmatprep.subr.bf16.mxu1 (!%p187_p2), %v2950_v4  ;;  %v3025_v18 = vld [vmem:[%s5063_s1 + $0x40] ss:$8 sps:$4 sm:$0xff] (!%p187_p2)   ;;  %v3031_v19 = vld [vmem:[%s5063_s1 + $0x54] ss:$8 sps:$4 sm:$0xff] (!%p187_p2)   ;;  %v2877_v20 = vmov (!%p187_p2), 4   ;;  %v2878_v31 = vmov (!%p187_p2), 5  }
   0xa   : > { %v3041_v21 = vld [vmem:[%s5063_s1 + $0x50] ss:$8 sps:$4 sm:$0xff] (!%p187_p2)   ;;  %v3048_v22 = vld [vmem:[%s5063_s1 + $0x64] ss:$8 sps:$4 sm:$0xff] (!%p187_p2)   ;;  %v3053_v23 = vld [vmem:[%s5063_s1 + $0x60] ss:$8 sps:$4 sm:$0xff] (!%p187_p2)  }
   0xb   : > { %v3063_v24 = vld [vmem:[%s5063_s1 + $0x74] ss:$8 sps:$4 sm:$0xff] (!%p187_p2)   ;;  %v3070_v25 = vld [vmem:[%s5063_s1 + $0x70] ss:$8 sps:$4 sm:$0xff] (!%p187_p2)   ;;  %v3076_v26 = vld [vmem:[%s5063_s1 + $0x84] ss:$8 sps:$4 sm:$0xff] (!%p187_p2)  }
   0xc   : > { %464 = vmatpush1.bf16.msra.mxu0 (!%p187_p2), %v2958_v5  ;;  %544 = vmatpush1.bf16.msra.mxu1 (!%p187_p2), %v2958_v5  ;;  %v3088_v27 = vld [vmem:[%s5063_s1 + $0x80] ss:$8 sps:$4 sm:$0xff] (!%p187_p2)   ;;  %v3093_v28 = vld [vmem:[%s5063_s1 + $0x94] ss:$8 sps:$4 sm:$0xff] (!%p187_p2)   ;;  %v3104_v29 = vld [vmem:[%s5063_s1 + $0x90] ss:$8 sps:$4 sm:$0xff] (!%p187_p2)  }
   0xd   : > { %s5123_s19 = smov (!%p213_p3, %s2399_s19), 1  ;;  %465 = vmatprep.subr.bf16.mxu0 %v2970_v6  ;;  %545 = vmatprep.subr.bf16.mxu1 %v2970_v6  ;;  %v3110_v30 = vld [vmem:[%s5063_s1 + $0xa4] ss:$8 sps:$4 sm:$0xff]   ;;  %v3120_v32 = vld [vmem:[%s5063_s1 + $0xa0] ss:$8 sps:$4 sm:$0xff]   ;;  %v2879_v33 = vmov 6  }
   0xe   : > { %s2404_s26 = sshll.u32 %s5123_s19, 3  ;;  %v3127_v34 = vld [vmem:[%s5063_s1 + $0xb4] ss:$8 sps:$4 sm:$0xff]   ;;  %v2880_v35 = vmov 7   ;;  %v3139_v36 = vld [vmem:[%s5063_s1 + $0xb0] ss:$8 sps:$4 sm:$0xff]  }
   0xf   : > { %s2964_s6 = scalar_lea.vmem %s5062_s0, %s2404_s26  ;;  %v3146_v37 = vld [vmem:[%s5063_s1 + $0xc4] ss:$8 sps:$4 sm:$0xff]   ;;  %v3156_v38 = vld [vmem:[%s5063_s1 + $0xc0] ss:$8 sps:$4 sm:$0xff]   ;;  %v2881_v39 = vmov 8   ;;  %v2882_v46 = vmov 10  }
  0x10   : > { %v2974_v7 = vld [vmem:[%s2964_s6] sm:$0xff]  ;;  %466 = vmatpush1.bf16.msra.mxu0 %v2987_v10  ;;  %546 = vmatpush1.bf16.msra.mxu1 %v2987_v10  ;;  %v3163_v40 = vld [vmem:[%s5063_s1 + $0xd4] ss:$8 sps:$4 sm:$0xff]   ;;  %v3173_v41 = vld [vmem:[%s5063_s1 + $0xd0] ss:$8 sps:$4 sm:$0xff]   ;;  %v2883_v47 = vmov 11  }
  0x11   : > { %259 = vperm.xlu0 %2572, %v2974_v7   ;;  %v2978_v8 = vadd.s32 68, %v2974_v7  ;;  %v2981_v9 = vadd.s32 34, %v2974_v7  ;;  %v2998_v12 = vadd.s32 102, %v2974_v7  ;;  %467 = vmatprep.subr.bf16.mxu0 %v2995_v11  ;;  %v3017_v17 = vadd.s32 136, %v2974_v7  ;;  %v3180_v42 = vld [vmem:[%s5063_s1 + $0xe4] ss:$8 sps:$4 sm:$0xff]  }
  0x12   : > { %547 = vmatprep.subr.bf16.mxu1 %v2995_v11  ;;  %v3189_v43 = vld [vmem:[%s5063_s1 + $0xe0] ss:$8 sps:$4 sm:$0xff]   ;;  %v3196_v44 = vld [vmem:[%s5063_s1 + $0xf4] ss:$8 sps:$4 sm:$0xff]   ;;  %v3206_v45 = vld [vmem:[%s5063_s1 + $0xf0] ss:$8 sps:$4 sm:$0xff]  }
  0x13   : > { %273 = vperm.xlu1 %2574, %v2978_v8   ;;  %v2884_v48 = vmov 9   ;;  %v3250_v50 = vand.u32 127, %v5068_v49  ;;  %v2885_v51 = vmov 12   ;;  %v2886_v58 = vmov 0.0   ;;  %s2541_s28 = sshll.u32 %s5123_s19, 4 }
  0x14   : > { %468 = vmatpush1.bf16.msra.mxu0 %v3006_v14  ;;  %548 = vmatpush1.bf16.msra.mxu1 %v3006_v14  ;;  %s221_s7 = scalar_lea.vmem %s5067_s5, %s2541_s28 }
  0x15   : > { %2573 = vset.pattern.permute.xlu0 %v2875_v13  ;;  %469 = vmatprep.subr.bf16.mxu0 %v3012_v16  ;;  %v3256_v54 = vadd.s32 128, %v3250_v50 }
  0x16   : > { %265 = vperm.xlu0 %2573, %v2981_v9   ;;  %549 = vmatprep.subr.bf16.mxu1 %v3012_v16 }
  0x17   : > { %2575 = vset.pattern.permute.xlu1 %v2876_v15 }
  0x18   : > { %281 = vperm.xlu1 %2575, %v2998_v12   ;;  %470 = vmatpush1.bf16.msra.mxu0 %v3025_v18 }
  0x19   : > { %471 = vmatprep.subr.bf16.mxu0 %v3031_v19  ;;  %550 = vmatpush1.bf16.msra.mxu1 %v3025_v18 }
  0x1a   : > { %503 = vperm.xlu0 %2573, %v2974_v7   ;;  %551 = vmatprep.subr.bf16.mxu1 %v3031_v19 }
  0x1c   : > { %2576 = vset.pattern.permute.xlu1 %v2877_v20  ;;  %472 = vmatpush1.bf16.msra.mxu0 %v3041_v21 }
  0x1d   : > { %289 = vperm.xlu1 %2576, %v3017_v17   ;;  %473 = vmatprep.subr.bf16.mxu0 %v3048_v22 }
  0x1e   : > { %2578 = vset.pattern.permute.xlu0 %v2876_v15  ;;  %552 = vmatpush1.bf16.msra.mxu1 %v3041_v21 }
  0x1f   : > { %515 = vperm.xlu0 %2578, %v2978_v8   ;;  %553 = vmatprep.subr.bf16.mxu1 %v3048_v22 }
  0x20   : > { %474 = vmatpush1.bf16.msra.mxu0 %v3053_v23 }
  0x21   : > { %2577 = vset.pattern.permute.xlu1 %v2874_v1  ;;  %475 = vmatprep.subr.bf16.mxu0 %v3063_v24 }
  0x22   : > { %508 = vperm.xlu1 %2577, %v2981_v9   ;;  %554 = vmatpush1.bf16.msra.mxu1 %v3053_v23 }
  0x23   : > { %590 = vperm.xlu0 %2578, %v2981_v9   ;;  %555 = vmatprep.subr.bf16.mxu1 %v3063_v24 }
  0x24   : > { %476 = vmatpush1.bf16.msra.mxu0 %v3070_v25 }
  0x25   : > { %477 = vmatprep.subr.bf16.mxu0 %v3076_v26 }
  0x26   : > { %2579 = vset.pattern.permute.xlu1 %v2877_v20  ;;  %556 = vmatpush1.bf16.msra.mxu1 %v3070_v25 }
  0x27   : > { %522 = vperm.xlu1 %2579, %v2998_v12   ;;  %2582 = vset.pattern.permute.xlu0 %v2877_v20 }
  0x28   : > { %597 = vperm.xlu0 %2582, %v2978_v8   ;;  %478 = vmatpush1.bf16.msra.mxu0 %v3088_v27 }
  0x29   : > { %557 = vmatprep.subr.bf16.mxu1 %v3076_v26  ;;  %479 = vmatprep.subr.bf16.mxu0 %v3093_v28 }
  0x2a   : > { %558 = vmatpush1.bf16.msra.mxu1 %v3088_v27 }
  0x2b   : > { %2580 = vset.pattern.permute.xlu1 %v2874_v1  ;;  %559 = vmatprep.subr.bf16.mxu1 %v3093_v28 }
  0x2c   : > { %585 = vperm.xlu1 %2580, %v2974_v7   ;;  %2584 = vset.pattern.permute.xlu0 %v2876_v15 }
  0x2d   : > { %667 = vperm.xlu0 %2584, %v2974_v7   ;;  %480 = vmatpush1.bf16.msra.mxu0 %v3104_v29 }
  0x2e   : > { %481 = vmatprep.subr.bf16.mxu0 %v3110_v30  ;;  %560 = vmatpush1.bf16.msra.mxu1 %v3104_v29 }
  0x2f   : > { %561 = vmatprep.subr.bf16.mxu1 %v3110_v30 }
  0x30   : > { %2581 = vset.pattern.permute.xlu1 %v2878_v31 }
  0x31   : > { %529 = vperm.xlu1 %2581, %v3017_v17   ;;  %2587 = vset.pattern.permute.xlu0 %v2879_v33 }
  0x32   : > { %686 = vperm.xlu0 %2587, %v2998_v12   ;;  %482 = vmatpush1.bf16.msra.mxu0 %v3120_v32 }
  0x33   : > { %483 = vmatprep.subr.bf16.mxu0 %v3127_v34  ;;  %562 = vmatpush1.bf16.msra.mxu1 %v3120_v32 }
  0x34   : > { %563 = vmatprep.subr.bf16.mxu1 %v3127_v34 }
  0x35   : > { %604 = vperm.xlu1 %2581, %v2998_v12  }
  0x36   : > { %2590 = vset.pattern.permute.xlu0 %v2880_v35  ;;  %484 = vmatpush1.bf16.msra.mxu0 %v3139_v36 }
  0x37   : > { %693 = vperm.xlu0 %2590, %v3017_v17   ;;  %485 = vmatprep.subr.bf16.mxu0 %v3146_v37 }
  0x38   : > { %564 = vmatpush1.bf16.msra.mxu1 %v3139_v36 }
  0x39   : > { %2583 = vset.pattern.permute.xlu1 %v2879_v33  ;;  %565 = vmatprep.subr.bf16.mxu1 %v3146_v37 }
  0x3a   : > { %611 = vperm.xlu1 %2583, %v3017_v17   ;;  %486 = vmatpush1.bf16.msra.mxu0 %v3156_v38 }
  0x3b   : > { %2593 = vset.pattern.permute.xlu0 %v2881_v39  ;;  %487 = vmatprep.subr.bf16.mxu0 %v3163_v40 }
  0x3c   : > { %775 = vperm.xlu0 %2593, %v3017_v17   ;;  %566 = vmatpush1.bf16.msra.mxu1 %v3156_v38 }
  0x3d   : > { %567 = vmatprep.subr.bf16.mxu1 %v3163_v40 }
  0x3e   : > { %2585 = vset.pattern.permute.xlu1 %v2877_v20  ;;  %488 = vmatpush1.bf16.msra.mxu0 %v3173_v41 }
  0x3f   : > { %672 = vperm.xlu1 %2585, %v2981_v9   ;;  %489 = vmatprep.subr.bf16.mxu0 %v3180_v42 }
  0x40   : > { %2596 = vset.pattern.permute.xlu0 %v2880_v35  ;;  %568 = vmatpush1.bf16.msra.mxu1 %v3173_v41 }
  0x41   : > { %843 = vperm.xlu0 %2596, %v2978_v8   ;;  %569 = vmatprep.subr.bf16.mxu1 %v3180_v42 }
  0x42   : > { %490 = vmatpush1.bf16.msra.mxu0 %v3189_v43 }
  0x43   : > { %2586 = vset.pattern.permute.xlu1 %v2878_v31  ;;  %491 = vmatprep.subr.bf16.mxu0 %v3196_v44 }
  0x44   : > { %679 = vperm.xlu1 %2586, %v2978_v8   ;;  %570 = vmatpush1.bf16.msra.mxu1 %v3189_v43 }
  0x45   : > { %918 = vperm.xlu0 %2596, %v2981_v9   ;;  %571 = vmatprep.subr.bf16.mxu1 %v3196_v44 }
  0x46   : > { %492 = vmatpush1.bf16.msra.mxu0 %v3206_v45 }
  0x47   : > { %623 = vmatprep.subr.bf16.mxu0 %v2937_v2 }
  0x48   : > { %2588 = vset.pattern.permute.xlu1 %v2877_v20  ;;  %572 = vmatpush1.bf16.msra.mxu1 %v3206_v45 }
  0x49   : > { %749 = vperm.xlu1 %2588, %v2974_v7   ;;  %2600 = vset.pattern.permute.xlu0 %v2881_v39 }
  0x4a   : > { %925 = vperm.xlu0 %2600, %v2978_v8   ;;  %705 = vmatprep.subr.bf16.mxu1 %v2937_v2 }
  0x4d   : > { %2589 = vset.pattern.permute.xlu1 %v2878_v31 }
  0x4e   : > { %754 = vperm.xlu1 %2589, %v2981_v9   ;;  %2602 = vset.pattern.permute.xlu0 %v2880_v35 }
  0x4f   : > { %995 = vperm.xlu0 %2602, %v2974_v7  }
  0x52   : > { %2591 = vset.pattern.permute.xlu1 %v2879_v33 }
  0x53   : > { %761 = vperm.xlu1 %2591, %v2978_v8   ;;  %2605 = vset.pattern.permute.xlu0 %v2882_v46 }
  0x54   : > { %1014 = vperm.xlu0 %2605, %v2998_v12  }
  0x57   : > { %2592 = vset.pattern.permute.xlu1 %v2880_v35  ;;  %v2887_v35 = vmov 13  }
  0x58   : > { %768 = vperm.xlu1 %2592, %v2998_v12   ;;  %2608 = vset.pattern.permute.xlu0 %v2883_v47 }
  0x59   : > { %1021 = vperm.xlu0 %2608, %v3017_v17  }
  0x5c   : > { %2594 = vset.pattern.permute.xlu1 %v2878_v31 }
  0x5d   : > { %831 = vperm.xlu1 %2594, %v2974_v7   ;;  %2611 = vset.pattern.permute.xlu0 %v2885_v51 }
  0x5e   : > { %1103 = vperm.xlu0 %2611, %v3017_v17  }
  0x61   : > { %2595 = vset.pattern.permute.xlu1 %v2879_v33 }
  0x62   : > { %836 = vperm.xlu1 %2595, %v2981_v9   ;;  %2614 = vset.pattern.permute.xlu0 %v2883_v47 }
  0x63   : > { %1171 = vperm.xlu0 %2614, %v2978_v8  }
  0x66   : > { %2597 = vset.pattern.permute.xlu1 %v2881_v39 }
  0x67   : > { %850 = vperm.xlu1 %2597, %v2998_v12   ;;  %1246 = vperm.xlu0 %2614, %v2981_v9  }
  0x6b   : > { %2598 = vset.pattern.permute.xlu1 %v2879_v33  ;;  %2618 = vset.pattern.permute.xlu0 %v2885_v51 }
  0x6c   : > { %913 = vperm.xlu1 %2598, %v2974_v7   ;;  %1253 = vperm.xlu0 %2618, %v2978_v8  }
  0x70   : > { %2599 = vset.pattern.permute.xlu1 %v2884_v48  ;;  %2620 = vset.pattern.permute.xlu0 %v2883_v47 }
  0x71   : > { %857 = vperm.xlu1 %2599, %v3017_v17   ;;  %1323 = vperm.xlu0 %2620, %v2974_v7  }
  0x75   : > { %932 = vperm.xlu1 %2599, %v2998_v12  }
  0x79   : > { %2601 = vset.pattern.permute.xlu1 %v2882_v46 }
  0x7a   : > { %939 = vperm.xlu1 %2601, %v3017_v17  }
  0x7e   : > { %2603 = vset.pattern.permute.xlu1 %v2881_v39 }
  0x7f   : > { %1000 = vperm.xlu1 %2603, %v2981_v9  }
  0x83   : > { %2604 = vset.pattern.permute.xlu1 %v2884_v48 }
  0x84   : > { %1007 = vperm.xlu1 %2604, %v2978_v8  }
  0x88   : > { %2606 = vset.pattern.permute.xlu1 %v2881_v39 }
  0x89   : > { %1077 = vperm.xlu1 %2606, %v2974_v7  }
  0x8d   : > { %2607 = vset.pattern.permute.xlu1 %v2884_v48 }
  0x8e   : > { %1082 = vperm.xlu1 %2607, %v2981_v9  }
  0x90   : > { %v260_v52 = vpop.permute.xlu0 %259 }
  0x91   : > { %vm261_vm0 = vcmp.eq.s32.totalorder %v3250_v50, %v260_v52  ;;  %vm262_vm1 = vcmp.eq.s32.totalorder %v3256_v54, %v260_v52 }
  0x92   : > { %v274_v53 = vpop.permute.xlu1 %273  ;;  %2609 = vset.pattern.permute.xlu1 %v2882_v46 }
  0x93   : > { %1089 = vperm.xlu1 %2609, %v2978_v8   ;;  %vm275_vm5 = vcmp.eq.s32.totalorder %v3250_v50, %v274_v53  ;;  %vm276_vm9 = vcmp.eq.s32.totalorder %v3256_v54, %v274_v53 }
  0x95   : > { %v266_v55 = vpop.permute.xlu0 %265 }
  0x96   : > { %vm267_vm2 = vcmp.eq.s32.totalorder %v3250_v50, %v266_v55  ;;  %vm268_vm3 = vcmp.eq.s32.totalorder %v3256_v54, %v266_v55 }
  0x97   : > { %vm269_vm4 = vmor %vm261_vm0, %vm267_vm2  ;;  %v282_v56 = vpop.permute.xlu1 %281  ;;  %2610 = vset.pattern.permute.xlu1 %v2883_v47 }
  0x98   : > { %vm270_vm6 = vmor %vm262_vm1, %vm268_vm3  ;;  %1096 = vperm.xlu1 %2610, %v2998_v12   ;;  %vm283_vm8 = vcmp.eq.s32.totalorder %v3250_v50, %v282_v56  ;;  %vm284_vm10 = vcmp.eq.s32.totalorder %v3256_v54, %v282_v56 }
  0x99   : > { %vm277_vm7 = vmor %vm269_vm4, %vm275_vm5  ;;  %v504_v0 = vpop.permute.xlu0 %503 }
  0x9a   : > { %vm278_vm11 = vmor %vm270_vm6, %vm276_vm9  ;;  %vm505_vm4 = vcmp.eq.s32.totalorder %v3250_v50, %v504_v0  ;;  %vm506_vm5 = vcmp.eq.s32.totalorder %v3256_v54, %v504_v0 }
  0x9b   : > { %vm285_vm12 = vmor %vm277_vm7, %vm283_vm8 }
  0x9c   : > { %v290_v57 = vpop.permute.xlu1 %289  ;;  %2612 = vset.pattern.permute.xlu1 %v2884_v48  ;;  %vm286_vm14 = vmor %vm278_vm11, %vm284_vm10 }
  0x9d   : > { %vm291_vm13 = vcmp.eq.s32.totalorder %v3250_v50, %v290_v57  ;;  %vm292_vm15 = vcmp.eq.s32.totalorder %v3256_v54, %v290_v57  ;;  %1159 = vperm.xlu1 %2612, %v2974_v7  }
  0x9e   : > { %vm293_vm0 = vmor %vm285_vm12, %vm291_vm13  ;;  %v516_v1 = vpop.permute.xlu0 %515 }
  0x9f   : > { %vm294_vm1 = vmor %vm286_vm14, %vm292_vm15  ;;  %v2407_v59 = vsel %vm293_vm0, 1.0, %v2886_v58  ;;  %vm517_vm7 = vcmp.eq.s32.totalorder %v3250_v50, %v516_v1  ;;  %vm518_vm9 = vcmp.eq.s32.totalorder %v3256_v54, %v516_v1 }
  0xa0   : > { %v2408_v60 = vsel %vm294_vm1, 1.0, %v2886_v58  ;;  %v299_v61 = vpack.c.bf16 %v2407_v59, %v2407_v59 }
  0xa1   : > { %v509_v62 = vpop.permute.xlu1 %508  ;;  %v300_v63 = vpack.c.bf16 %v2408_v60, %v2408_v60  ;;  %2613 = vset.pattern.permute.xlu1 %v2882_v46 }
  0xa2   : > { %1164 = vperm.xlu1 %2613, %v2981_v9   ;;  %vm510_vm2 = vcmp.eq.s32.totalorder %v3250_v50, %v509_v62  ;;  %vm511_vm3 = vcmp.eq.s32.totalorder %v3256_v54, %v509_v62  ;;  %v3294_v15 = vpop.permute.xlu0 %590 }
  0xa3   : > { %493 = vmatprep.mubr.bf16.mxu0 %v300_v63  ;;  %vm512_vm6 = vmor %vm505_vm4, %vm510_vm2  ;;  %vm593_vm15 = vcmp.eq.s32.totalorder %v3256_v54, %v3294_v15  ;;  %v2888_v63 = vmov 14  }
  0xa4   : > { %494 = vmatmul.mubr.bf16.vlgmr.msra.gmra.mrb[0].mxu0 %v299_v61  ;;  %vm513_vm8 = vmor %vm506_vm5, %vm511_vm3  ;;  %2623 = vset.pattern.permute.xlu0 %v2888_v63 }
  0xa5   : > { %624 = vmatpush1.bf16.msra.mxu0 %v2944_v3  ;;  %vm519_vm11 = vmor %vm512_vm6, %vm517_vm7  ;;  %1342 = vperm.xlu0 %2623, %v2998_v12  }
  0xa6   : > { %625 = vmatprep.subr.bf16.mxu0 %v2950_v4  ;;  %2615 = vset.pattern.permute.xlu1 %v2885_v51  ;;  %v523_v13 = vpop.permute.xlu1 %522  ;;  %vm520_vm13 = vmor %vm513_vm8, %vm518_vm9 }
  0xa7   : > { %1178 = vperm.xlu1 %2615, %v2998_v12   ;;  %vm524_vm10 = vcmp.eq.s32.totalorder %v3250_v50, %v523_v13  ;;  %vm525_vm12 = vcmp.eq.s32.totalorder %v3256_v54, %v523_v13  ;;  %v3309_v33 = vpop.permute.xlu0 %597 }
  0xa8   : > { %vm526_vm0 = vmor %vm519_vm11, %vm524_vm10  ;;  %vm600_vm7 = vcmp.eq.s32.totalorder %v3256_v54, %v3309_v33 }
  0xa9   : > { %626 = vmatpush1.bf16.msra.mxu0 %v2958_v5  ;;  %vm527_vm1 = vmor %vm520_vm13, %vm525_vm12 }
  0xaa   : > { %627 = vmatprep.subr.bf16.mxu0 %v2970_v6 }
  0xab   : > { %v3297_v20 = vpop.permute.xlu1 %585  ;;  %2616 = vset.pattern.permute.xlu1 %v2882_v46 }
  0xac   : > { %1241 = vperm.xlu1 %2616, %v2974_v7   ;;  %vm588_vm14 = vcmp.eq.s32.totalorder %v3256_v54, %v3297_v20  ;;  %v3334_v55 = vpop.permute.xlu0 %667 }
  0xad   : > { %628 = vmatpush1.bf16.msra.mxu0 %v2987_v10  ;;  %vm3315_vm4 = vmor %vm588_vm14, %vm593_vm15  ;;  %vm670_vm13 = vcmp.eq.s32.totalorder %v3256_v54, %v3334_v55 }
  0xae   : > { %629 = vmatprep.subr.bf16.mxu0 %v2995_v11  ;;  %vm602_vm9 = vmor %vm3315_vm4, %vm600_vm7 }
  0xb0   : > { %v530_v31 = vpop.permute.xlu1 %529  ;;  %2617 = vset.pattern.permute.xlu1 %v2887_v35 }
  0xb1   : > { %630 = vmatpush1.bf16.msra.mxu0 %v3006_v14  ;;  %vm531_vm2 = vcmp.eq.s32.totalorder %v3250_v50, %v530_v31  ;;  %vm532_vm3 = vcmp.eq.s32.totalorder %v3256_v54, %v530_v31  ;;  %1185 = vperm.xlu1 %2617, %v3017_v17   ;;  %v3351_v60 = vpop.permute.xlu0 %686 }
  0xb2   : > { %vm533_vm5 = vmor %vm526_vm0, %vm531_vm2  ;;  %631 = vmatprep.subr.bf16.mxu0 %v3012_v16 }
  0xb3   : > { %v2441_v46 = vsel %vm533_vm5, 1.0, %v2886_v58  ;;  %vm534_vm6 = vmor %vm527_vm1, %vm532_vm3  ;;  %vm689_vm1 = vcmp.eq.s32.totalorder %v3256_v54, %v3351_v60 }
  0xb4   : > { %v2442_v47 = vsel %vm534_vm6, 1.0, %v2886_v58  ;;  %v539_v48 = vpack.c.bf16 %v2441_v46, %v2441_v46  ;;  %v3325_v52 = vpop.permute.xlu1 %604 }
  0xb5   : > { %632 = vmatpush1.bf16.msra.mxu0 %v3025_v18  ;;  %v540_v53 = vpack.c.bf16 %v2442_v47, %v2442_v47  ;;  %1260 = vperm.xlu1 %2617, %v2998_v12   ;;  %vm607_vm8 = vcmp.eq.s32.totalorder %v3256_v54, %v3325_v52 }
  0xb6   : > { %633 = vmatprep.subr.bf16.mxu0 %v3031_v19  ;;  %vm609_vm10 = vmor %vm602_vm9, %vm607_vm8  ;;  %vm587_vm8 = vcmp.eq.s32.totalorder %v3250_v50, %v3297_v20  ;;  %vm592_vm9 = vcmp.eq.s32.totalorder %v3250_v50, %v3294_v15 }
  0xb7   : > { %573 = vmatprep.mubr.bf16.mxu1 %v540_v53  ;;  %v3717_v53 = vld [vmem:[%s5063_s1 + $0x74] ss:$8 sps:$4 sm:$0xff]  }
  0xb8   : > { %574 = vmatmul.mubr.bf16.vlgmr.msra.gmra.mrb[0].mxu1 %v539_v48  ;;  %v3474_v48 = vld [vmem:[%s5063_s1] ss:$8 sps:$4 sm:$0xff]  }
  0xb9   : > { %634 = vmatpush1.bf16.msra.mxu0 %v3041_v21  ;;  %706 = vmatpush1.bf16.msra.mxu1 %v2944_v3  ;;  %v3338_v56 = vpop.permute.xlu1 %611 }
  0xba   : > { %635 = vmatprep.subr.bf16.mxu0 %v3048_v22  ;;  %707 = vmatprep.subr.bf16.mxu1 %v2950_v4  ;;  %vm614_vm11 = vcmp.eq.s32.totalorder %v3256_v54, %v3338_v56 }
  0xbb   : > { %vm616_vm12 = vmor %vm609_vm10, %vm614_vm11  ;;  %2619 = vset.pattern.permute.xlu1 %v2888_v63 }
  0xbc   : > { %v2444_v57 = vsel %vm616_vm12, 1.0, %v2886_v58  ;;  %1267 = vperm.xlu1 %2619, %v3017_v17  }
  0xbd   : > { %636 = vmatpush1.bf16.msra.mxu0 %v3053_v23  ;;  %708 = vmatpush1.bf16.msra.mxu1 %v2958_v5  ;;  %v622_v3 = vpack.c.bf16 %v2444_v57, %v2444_v57  ;;  %v3365_v5 = vpop.permute.xlu0 %693 }
  0xbe   : > { %637 = vmatprep.subr.bf16.mxu0 %v3063_v24  ;;  %709 = vmatprep.subr.bf16.mxu1 %v2970_v6  ;;  %v3349_v59 = vpop.permute.xlu1 %672  ;;  %vm696_vm3 = vcmp.eq.s32.totalorder %v3256_v54, %v3365_v5 }
  0xbf   : > { %655 = vmatprep.mubr.bf16.mxu0 %v622_v3  ;;  %vm675_vm14 = vcmp.eq.s32.totalorder %v3256_v54, %v3349_v59 }
  0xc0   : > { %vm677_vm15 = vmor %vm670_vm13, %vm675_vm14  ;;  %vm599_vm14 = vcmp.eq.s32.totalorder %v3250_v50, %v3309_v33  ;;  %2621 = vset.pattern.permute.xlu1 %v2885_v51 }
  0xc1   : > { %638 = vmatpush1.bf16.msra.mxu0 %v3070_v25  ;;  %710 = vmatpush1.bf16.msra.mxu1 %v2987_v10  ;;  %vm3398_vm13 = vmor %vm587_vm8, %vm592_vm9  ;;  %v3434_v13 = vpop.permute.xlu0 %775  ;;  %vm613_vm8 = vcmp.eq.s32.totalorder %v3250_v50, %v3338_v56  ;;  %v3504_v56 = vld [vmem:[%s5063_s1 + $0x10] ss:$8 sps:$4 sm:$0xff]  }
  0xc2   : > { %639 = vmatprep.subr.bf16.mxu0 %v3076_v26  ;;  %711 = vmatprep.subr.bf16.mxu1 %v2995_v11 }
  0xc3   : > { %v3361_v4 = vpop.permute.xlu1 %679  ;;  %1328 = vperm.xlu1 %2621, %v2981_v9  }
  0xc4   : > { %vm682_vm0 = vcmp.eq.s32.totalorder %v3256_v54, %v3361_v4 }
  0xc5   : > { %640 = vmatpush1.bf16.msra.mxu0 %v3088_v27  ;;  %712 = vmatpush1.bf16.msra.mxu1 %v3006_v14  ;;  %vm684_vm2 = vmor %vm677_vm15, %vm682_vm0  ;;  %v844_v31 = vpop.permute.xlu0 %843 }
  0xc6   : > { %641 = vmatprep.subr.bf16.mxu0 %v3093_v28  ;;  %713 = vmatprep.subr.bf16.mxu1 %v3012_v16  ;;  %vm691_vm4 = vmor %vm684_vm2, %vm689_vm1 }
  0xc7   : > { %vm698_vm5 = vmor %vm691_vm4, %vm696_vm3  ;;  %vm606_vm3 = vcmp.eq.s32.totalorder %v3250_v50, %v3325_v52  ;;  %2622 = vset.pattern.permute.xlu1 %v2887_v35 }
  0xc8   : > { %v750_v6 = vpop.permute.xlu1 %749  ;;  %v2446_v10 = vsel %vm698_vm5, 1.0, %v2886_v58  ;;  %vm601_vm4 = vmor %vm3398_vm13, %vm599_vm14  ;;  %1335 = vperm.xlu1 %2622, %v2978_v8   ;;  %vm669_vm14 = vcmp.eq.s32.totalorder %v3250_v50, %v3334_v55 }
  0xc9   : > { %642 = vmatpush1.bf16.msra.mxu0 %v3104_v29  ;;  %714 = vmatpush1.bf16.msra.mxu1 %v3025_v18  ;;  %v704_v11 = vpack.c.bf16 %v2446_v10, %v2446_v10  ;;  %vm751_vm6 = vcmp.eq.s32.totalorder %v3250_v50, %v750_v6  ;;  %vm752_vm11 = vcmp.eq.s32.totalorder %v3256_v54, %v750_v6  ;;  %v3486_v52 = vpop.permute.xlu0 %918  ;;  %v3553_v10 = vld [vmem:[%s5063_s1 + $0x34] ss:$8 sps:$4 sm:$0xff]   ;;  %v3584_v18 = vld [vmem:[%s5063_s1 + $0x44] ss:$8 sps:$4 sm:$0xff]  }
  0xca   : > { %643 = vmatprep.subr.bf16.mxu0 %v3110_v30  ;;  %715 = vmatprep.subr.bf16.mxu1 %v3031_v19 }
  0xcb   : > { %737 = vmatprep.mubr.bf16.mxu1 %v704_v11  ;;  %v2889_v11 = vmov 15  }
  0xcc   : > { %2624 = vset.pattern.permute.xlu1 %v2885_v51  ;;  %2626 = vset.pattern.permute.xlu0 %v2889_v11 }
  0xcd   : > { %644 = vmatpush1.bf16.msra.mxu0 %v3120_v32  ;;  %716 = vmatpush1.bf16.msra.mxu1 %v3041_v21  ;;  %v755_v14 = vpop.permute.xlu1 %754 }
  0xce   : > { %645 = vmatprep.subr.bf16.mxu0 %v3127_v34  ;;  %717 = vmatprep.subr.bf16.mxu1 %v3048_v22  ;;  %vm756_vm7 = vcmp.eq.s32.totalorder %v3250_v50, %v755_v14  ;;  %vm757_vm12 = vcmp.eq.s32.totalorder %v3256_v54, %v755_v14 }
  0xcf   : > { %vm3390_vm10 = vmor %vm751_vm6, %vm756_vm7  ;;  %1405 = vperm.xlu1 %2624, %v2974_v7   ;;  %v3512_v7 = vld [vmem:[%s5063_s1 + $0x24] ss:$8 sps:$4 sm:$0xff]   ;;  %1349 = vperm.xlu0 %2626, %v3017_v17  }
  0xd0   : > { %vm3406_vm15 = vmor %vm752_vm11, %vm757_vm12 }
  0xd1   : > { %646 = vmatpush1.bf16.msra.mxu0 %v3139_v36  ;;  %718 = vmatpush1.bf16.msra.mxu1 %v3053_v23  ;;  %vm608_vm7 = vmor %vm601_vm4, %vm606_vm3 }
  0xd2   : > { %647 = vmatprep.subr.bf16.mxu0 %v3146_v37  ;;  %719 = vmatprep.subr.bf16.mxu1 %v3063_v24  ;;  %v762_v61 = vpop.permute.xlu1 %761  ;;  %vm615_vm11 = vmor %vm608_vm7, %vm613_vm8 }
  0xd3   : > { %vm763_vm0 = vcmp.eq.s32.totalorder %v3250_v50, %v762_v61  ;;  %vm764_vm1 = vcmp.eq.s32.totalorder %v3256_v54, %v762_v61  ;;  %v2443_v20 = vsel %vm615_vm11, 1.0, %v2886_v58  ;;  %vm688_vm11 = vcmp.eq.s32.totalorder %v3250_v50, %v3351_v60  ;;  %2625 = vset.pattern.permute.xlu1 %v2887_v35  ;;  %v3534_v60 = vpop.permute.xlu0 %925 }
  0xd4   : > { %vm3416_vm2 = vmor %vm3390_vm10, %vm763_vm0  ;;  %vm778_vm10 = vcmp.eq.s32.totalorder %v3256_v54, %v3434_v13  ;;  %v621_v46 = vpack.c.bf16 %v2443_v20, %v2443_v20  ;;  %1410 = vperm.xlu1 %2625, %v2981_v9   ;;  %v3600_v20 = vld [vmem:[%s5063_s1 + $0x40] ss:$8 sps:$4 sm:$0xff]  }
  0xd5   : > { %648 = vmatpush1.bf16.msra.mxu0 %v3156_v38  ;;  %720 = vmatpush1.bf16.msra.mxu1 %v3070_v25  ;;  %vm766_vm5 = vmor %vm3406_vm15, %vm764_vm1  ;;  %vm674_vm15 = vcmp.eq.s32.totalorder %v3250_v50, %v3349_v59  ;;  %vm845_vm1 = vcmp.eq.s32.totalorder %v3250_v50, %v844_v31  ;;  %v3769_v59 = vld [vmem:[%s5063_s1 + $0x94] ss:$8 sps:$4 sm:$0xff]  }
  0xd6   : > { %649 = vmatprep.subr.bf16.mxu0 %v3163_v40  ;;  %721 = vmatprep.subr.bf16.mxu1 %v3076_v26  ;;  %vm676_vm4 = vmor %vm669_vm14, %vm674_vm15  ;;  %vm846_vm14 = vcmp.eq.s32.totalorder %v3256_v54, %v844_v31  ;;  %vm920_vm15 = vcmp.eq.s32.totalorder %v3250_v50, %v3486_v52  ;;  %v3609_v31 = vld [vmem:[%s5063_s1 + $0x4] ss:$8 sps:$4 sm:$0xff]  }
  0xd7   : > { %v3432_v1 = vpop.permute.xlu1 %768 }
  0xd8   : > { %vm771_vm6 = vcmp.eq.s32.totalorder %v3256_v54, %v3432_v1  ;;  %2627 = vset.pattern.permute.xlu1 %v2888_v63 }
  0xd9   : > { %650 = vmatpush1.bf16.msra.mxu0 %v3173_v41  ;;  %722 = vmatpush1.bf16.msra.mxu1 %v3088_v27  ;;  %vm773_vm9 = vmor %vm766_vm5, %vm771_vm6  ;;  %vm681_vm5 = vcmp.eq.s32.totalorder %v3250_v50, %v3361_v4  ;;  %v3541_v4 = vld [vmem:[%s5063_s1 + $0x20] ss:$8 sps:$4 sm:$0xff]  }
  0xda   : > { %651 = vmatprep.subr.bf16.mxu0 %v3180_v42  ;;  %723 = vmatprep.subr.bf16.mxu1 %v3093_v28  ;;  %vm780_vm12 = vmor %vm773_vm9, %vm778_vm10 }
  0xdb   : > { %v2448_v33 = vsel %vm780_vm12, 1.0, %v2886_v58  ;;  %vm3488_vm9 = vmor %vm676_vm4, %vm681_vm5  ;;  %1417 = vperm.xlu1 %2627, %v2978_v8  }
  0xdc   : > { %v832_v15 = vpop.permute.xlu1 %831  ;;  %v786_v47 = vpack.c.bf16 %v2448_v33, %v2448_v33 }
  0xdd   : > { %652 = vmatpush1.bf16.msra.mxu0 %v3189_v43  ;;  %724 = vmatpush1.bf16.msra.mxu1 %v3104_v29  ;;  %vm833_vm13 = vcmp.eq.s32.totalorder %v3250_v50, %v832_v15  ;;  %vm834_vm7 = vcmp.eq.s32.totalorder %v3256_v54, %v832_v15 }
  0xde   : > { %653 = vmatprep.subr.bf16.mxu0 %v3196_v44  ;;  %725 = vmatprep.subr.bf16.mxu1 %v3110_v30 }
  0xdf   : > { %2628 = vset.pattern.permute.xlu1 %v2889_v11 }
  0xe0   : > { %1424 = vperm.xlu1 %2628, %v2998_v12  }
  0xe1   : > { %654 = vmatpush1.bf16.msra.mxu0 %v3206_v45  ;;  %726 = vmatpush1.bf16.msra.mxu1 %v3120_v32  ;;  %v837_v39 = vpop.permute.xlu1 %836 }
  0xe2   : > { %727 = vmatprep.subr.bf16.mxu1 %v3127_v34  ;;  %787 = vmatprep.subr.bf16.mxu0 %v2937_v2  ;;  %vm838_vm0 = vcmp.eq.s32.totalorder %v3250_v50, %v837_v39  ;;  %v3481_v2 = vld [vmem:[%s5063_s1 + $0x14] ss:$8 sps:$4 sm:$0xff]   ;;  %vm839_vm8 = vcmp.eq.s32.totalorder %v3256_v54, %v837_v39 }
  0xe3   : > { %vm840_vm3 = vmor %vm833_vm13, %vm838_vm0 }
  0xe4   : > { %656 = vmatmul.mubr.bf16.vlgmr.msra.gmra.mrb[4].mxu0 %v621_v46  ;;  %vm847_vm6 = vmor %vm840_vm3, %vm845_vm1  ;;  %vm695_vm1 = vcmp.eq.s32.totalorder %v3250_v50, %v3365_v5  ;;  %v3574_v5 = vld [vmem:[%s5063_s1 + $0x30] ss:$8 sps:$4 sm:$0xff]   ;;  %v3624_v46 = vpop.permute.xlu0 %995  ;;  %2630 = vset.pattern.permute.xlu1 %v2887_v35 }
  0xe5   : > { %728 = vmatpush1.bf16.msra.mxu1 %v3139_v36  ;;  %788 = vmatpush1.bf16.msra.mxu0 %v3474_v48  ;;  %vm841_vm13 = vmor %vm834_vm7, %vm839_vm8  ;;  %vm927_vm8 = vcmp.eq.s32.totalorder %v3250_v50, %v3534_v60 }
  0xe6   : > { %729 = vmatprep.subr.bf16.mxu1 %v3146_v37  ;;  %789 = vmatprep.subr.bf16.mxu0 %v3481_v2  ;;  %v851_v51 = vpop.permute.xlu1 %850  ;;  %vm3519_vm0 = vmor %vm3488_vm9, %vm688_vm11 }
  0xe7   : > { %819 = vmatprep.mubr.bf16.mxu0 %v786_v47  ;;  %vm852_vm10 = vcmp.eq.s32.totalorder %v3250_v50, %v851_v51  ;;  %vm3530_vm4 = vmor %vm841_vm13, %vm846_vm14  ;;  %vm853_vm5 = vcmp.eq.s32.totalorder %v3256_v54, %v851_v51  ;;  %v2890_v47 = vmov 16   ;;  %v3710_v51 = vld [vmem:[%s5063_s1 + $0x60] ss:$8 sps:$4 sm:$0xff]  }
  0xe8   : > { %vm3496_vm12 = vmor %vm847_vm6, %vm852_vm10  ;;  %2629 = vset.pattern.permute.xlu0 %v2890_v47 }
  0xe9   : > { %730 = vmatpush1.bf16.msra.mxu1 %v3156_v38  ;;  %790 = vmatpush1.bf16.msra.mxu0 %v3504_v56  ;;  %vm697_vm7 = vmor %vm3519_vm0, %vm695_vm1  ;;  %vm997_vm0 = vcmp.eq.s32.totalorder %v3250_v50, %v3624_v46 }
  0xea   : > { %731 = vmatprep.subr.bf16.mxu1 %v3163_v40  ;;  %791 = vmatprep.subr.bf16.mxu0 %v3512_v7  ;;  %vm855_vm9 = vmor %vm3530_vm4, %vm853_vm5  ;;  %v2445_v16 = vsel %vm697_vm7, 1.0, %v2886_v58 }
  0xeb   : > { %v3525_v3 = vpop.permute.xlu1 %913  ;;  %v703_v61 = vpack.c.bf16 %v2445_v16, %v2445_v16  ;;  %1431 = vperm.xlu0 %2629, %v3017_v17  }
  0xec   : > { %vm915_vm3 = vcmp.eq.s32.totalorder %v3250_v50, %v3525_v3 }
  0xed   : > { %732 = vmatpush1.bf16.msra.mxu1 %v3173_v41  ;;  %792 = vmatpush1.bf16.msra.mxu0 %v3541_v4  ;;  %vm3545_vm6 = vmor %vm915_vm3, %vm920_vm15 }
  0xee   : > { %733 = vmatprep.subr.bf16.mxu1 %v3180_v42  ;;  %793 = vmatprep.subr.bf16.mxu0 %v3553_v10  ;;  %vm929_vm11 = vmor %vm3545_vm6, %vm927_vm8 }
  0xef   : > { %2632 = vset.pattern.permute.xlu0 %v2889_v11 }
  0xf0   : > { %v3564_v14 = vpop.permute.xlu1 %857  ;;  %1499 = vperm.xlu0 %2632, %v2978_v8  }
  0xf1   : > { %734 = vmatpush1.bf16.msra.mxu1 %v3189_v43  ;;  %794 = vmatpush1.bf16.msra.mxu0 %v3574_v5  ;;  %vm860_vm10 = vcmp.eq.s32.totalorder %v3256_v54, %v3564_v14 }
  0xf2   : > { %735 = vmatprep.subr.bf16.mxu1 %v3196_v44  ;;  %795 = vmatprep.subr.bf16.mxu0 %v3584_v18  ;;  %vm862_vm13 = vmor %vm855_vm9, %vm860_vm10 }
  0xf3   : > { %v2450_v62 = vsel %vm862_vm13, 1.0, %v2886_v58  ;;  %vm921_vm13 = vcmp.eq.s32.totalorder %v3256_v54, %v3486_v52 }
  0xf4   : > { %v3594_v15 = vpop.permute.xlu1 %932  ;;  %v868_v39 = vpack.c.bf16 %v2450_v62, %v2450_v62  ;;  %1574 = vperm.xlu0 %2632, %v2981_v9  }
  0xf5   : > { %736 = vmatpush1.bf16.msra.mxu1 %v3206_v45  ;;  %796 = vmatpush1.bf16.msra.mxu0 %v3600_v20  ;;  %vm934_vm14 = vcmp.eq.s32.totalorder %v3250_v50, %v3594_v15 }
  0xf6   : > { %797 = vmatprep.subr.bf16.mxu0 %v3031_v19  ;;  %869 = vmatprep.subr.bf16.mxu1 %v3609_v31  ;;  %vm3612_vm15 = vmor %vm929_vm11, %vm934_vm14  ;;  %vm916_vm11 = vcmp.eq.s32.totalorder %v3256_v54, %v3525_v3  ;;  %v3738_v3 = vld [vmem:[%s5063_s1 + $0x70] ss:$8 sps:$4 sm:$0xff]  }
  0xf7   : > { %vm923_vm14 = vmor %vm916_vm11, %vm921_vm13 }
  0xf8   : > { %738 = vmatmul.mubr.bf16.vlgmr.msra.gmra.mrb[4].mxu1 %v703_v61  ;;  %2636 = vset.pattern.permute.xlu0 %v2890_v47 }
  0xf9   : > { %798 = vmatpush1.bf16.msra.mxu0 %v3041_v21  ;;  %870 = vmatpush1.bf16.msra.mxu1 %v3474_v48  ;;  %v3622_v19 = vpop.permute.xlu1 %939 }
  0xfa   : > { %799 = vmatprep.subr.bf16.mxu0 %v3048_v22  ;;  %871 = vmatprep.subr.bf16.mxu1 %v3481_v2  ;;  %v3638_v22 = vld [vmem:[%s2964_s6] sm:$0xff] }
  0xfb   : > { %901 = vmatprep.mubr.bf16.mxu1 %v868_v39  ;;  %1487 = vperm.xlu1 %2630, %v3638_v22  }
  0xfc   : > { %1581 = vperm.xlu0 %2636, %v2978_v8  }
  0xfd   : > { %800 = vmatpush1.bf16.msra.mxu0 %v3053_v23  ;;  %872 = vmatpush1.bf16.msra.mxu1 %v3504_v56  ;;  %v3645_v23 = vpop.permute.xlu0 %1014 }
  0xfe   : > { %801 = vmatprep.subr.bf16.mxu0 %v3063_v24  ;;  %873 = vmatprep.subr.bf16.mxu1 %v3512_v7  ;;  %v3633_v21 = vpop.permute.xlu1 %1000  ;;  %vm1016_vm4 = vcmp.eq.s32.totalorder %v3250_v50, %v3645_v23 }
  0xff   : > { %vm1002_vm1 = vcmp.eq.s32.totalorder %v3250_v50, %v3633_v21  ;;  %2631 = vset.pattern.permute.xlu1 %v2888_v63 }
 0x100   : > { %vm1004_vm3 = vmor %vm997_vm0, %vm1002_vm1  ;;  %1492 = vperm.xlu1 %2631, %v2981_v9   ;;  %vm928_vm1 = vcmp.eq.s32.totalorder %v3256_v54, %v3534_v60  ;;  %v3788_v60 = vld [vmem:[%s5063_s1 + $0xa4] ss:$8 sps:$4 sm:$0xff]   ;;  %2638 = vset.pattern.permute.xlu0 %v2889_v11 }
 0x101   : > { %802 = vmatpush1.bf16.msra.mxu0 %v3070_v25  ;;  %874 = vmatpush1.bf16.msra.mxu1 %v3541_v4 }
 0x102   : > { %803 = vmatprep.subr.bf16.mxu0 %v3076_v26  ;;  %875 = vmatprep.subr.bf16.mxu1 %v3553_v10 }
 0x103   : > { %v3647_v24 = vpop.permute.xlu1 %1007  ;;  %1651 = vperm.xlu0 %2638, %v3638_v22  }
 0x104   : > { %vm1009_vm5 = vcmp.eq.s32.totalorder %v3250_v50, %v3647_v24  ;;  %2633 = vset.pattern.permute.xlu1 %v2890_v47 }
 0x105   : > { %804 = vmatpush1.bf16.msra.mxu0 %v3088_v27  ;;  %876 = vmatpush1.bf16.msra.mxu1 %v3574_v5  ;;  %vm1011_vm6 = vmor %vm1004_vm3, %vm1009_vm5  ;;  %v3671_v27 = vld [vmem:[%s5063_s1 + $0x54] ss:$8 sps:$4 sm:$0xff]   ;;  %vm935_vm5 = vcmp.eq.s32.totalorder %v3256_v54, %v3594_v15 }
 0x106   : > { %805 = vmatprep.subr.bf16.mxu0 %v3093_v28  ;;  %877 = vmatprep.subr.bf16.mxu1 %v3584_v18  ;;  %vm3659_vm7 = vmor %vm1011_vm6, %vm1016_vm4  ;;  %v3680_v28 = vld [vmem:[%s5063_s1 + $0x50] ss:$8 sps:$4 sm:$0xff]   ;;  %vm770_vm4 = vcmp.eq.s32.totalorder %v3250_v50, %v3432_v1  ;;  %v3762_v1 = vld [vmem:[%s5063_s1 + $0x80] ss:$8 sps:$4 sm:$0xff]  }
 0x107   : > { %1506 = vperm.xlu1 %2633, %v2998_v12   ;;  %vm930_vm6 = vmor %vm923_vm14, %vm928_vm1  ;;  %vm1003_vm1 = vcmp.eq.s32.totalorder %v3256_v54, %v3633_v21  ;;  %v3908_v21 = vld [vmem:[%s5063_s1 + $0xb4] ss:$8 sps:$4 sm:$0xff]  }
 0x108   : > { %v3663_v26 = vpop.permute.xlu1 %1077 }
 0x109   : > { %806 = vmatpush1.bf16.msra.mxu0 %v3104_v29  ;;  %878 = vmatpush1.bf16.msra.mxu1 %v3600_v20  ;;  %vm1079_vm8 = vcmp.eq.s32.totalorder %v3250_v50, %v3663_v26 }
 0x10a   : > { %807 = vmatprep.subr.bf16.mxu0 %v3110_v30  ;;  %879 = vmatprep.subr.bf16.mxu1 %v3671_v27  ;;  %v3689_v30 = vld [vmem:[%s5063_s1 + $0x64] ss:$8 sps:$4 sm:$0xff]  }
 0x10b   : > { %2634 = vset.pattern.permute.xlu1 %v2888_v63  ;;  %v3747_v63 = vld [vmem:[%s5063_s1 + $0x84] ss:$8 sps:$4 sm:$0xff]  }
 0x10c   : > { %1569 = vperm.xlu1 %2634, %v3638_v22  }
 0x10d   : > { %808 = vmatpush1.bf16.msra.mxu0 %v3120_v32  ;;  %880 = vmatpush1.bf16.msra.mxu1 %v3680_v28  ;;  %v3683_v29 = vpop.permute.xlu1 %1082 }
 0x10e   : > { %809 = vmatprep.subr.bf16.mxu0 %v3127_v34  ;;  %881 = vmatprep.subr.bf16.mxu1 %v3689_v30  ;;  %vm1084_vm9 = vcmp.eq.s32.totalorder %v3250_v50, %v3683_v29 }
 0x10f   : > { %vm3694_vm10 = vmor %vm1079_vm8, %vm1084_vm9  ;;  %vm777_vm9 = vcmp.eq.s32.totalorder %v3250_v50, %v3434_v13  ;;  %v3781_v13 = vld [vmem:[%s5063_s1 + $0x90] ss:$8 sps:$4 sm:$0xff]  }
 0x110   : > { %vm772_vm8 = vmor %vm3416_vm2, %vm770_vm4 }
 0x111   : > { %810 = vmatpush1.bf16.msra.mxu0 %v3139_v36  ;;  %882 = vmatpush1.bf16.msra.mxu1 %v3710_v51  ;;  %vm937_vm2 = vmor %vm930_vm6, %vm935_vm5 }
 0x112   : > { %811 = vmatprep.subr.bf16.mxu0 %v3146_v37  ;;  %883 = vmatprep.subr.bf16.mxu1 %v3717_v53  ;;  %v3720_v52 = vpop.permute.xlu1 %1089  ;;  %vm779_vm11 = vmor %vm772_vm8, %vm777_vm9  ;;  %vm1010_vm8 = vcmp.eq.s32.totalorder %v3256_v54, %v3647_v24  ;;  %vm1017_vm9 = vcmp.eq.s32.totalorder %v3256_v54, %v3645_v23  ;;  %v3917_v23 = vld [vmem:[%s5063_s1 + $0xb0] ss:$8 sps:$4 sm:$0xff]  }
 0x113   : > { %vm1091_vm0 = vcmp.eq.s32.totalorder %v3250_v50, %v3720_v52  ;;  %v2447_v16 = vsel %vm779_vm11, 1.0, %v2886_v58 }
 0x114   : > { %vm3728_vm3 = vmor %vm3694_vm10, %vm1091_vm0  ;;  %vm942_vm10 = vcmp.eq.s32.totalorder %v3256_v54, %v3622_v19  ;;  %v785_v62 = vpack.c.bf16 %v2447_v16, %v2447_v16  ;;  %vm998_vm0 = vcmp.eq.s32.totalorder %v3256_v54, %v3624_v46  ;;  %v3932_v16 = vld [vmem:[%s5063_s1 + $0xc4] ss:$8 sps:$4 sm:$0xff]  }
 0x115   : > { %812 = vmatpush1.bf16.msra.mxu0 %v3156_v38  ;;  %884 = vmatpush1.bf16.msra.mxu1 %v3738_v3  ;;  %vm944_vm13 = vmor %vm937_vm2, %vm942_vm10  ;;  %vm859_vm10 = vcmp.eq.s32.totalorder %v3250_v50, %v3564_v14 }
 0x116   : > { %813 = vmatprep.subr.bf16.mxu0 %v3163_v40  ;;  %885 = vmatprep.subr.bf16.mxu1 %v3747_v63  ;;  %v2452_v61 = vsel %vm944_vm13, 1.0, %v2886_v58  ;;  %vm1005_vm6 = vmor %vm998_vm0, %vm1003_vm1 }
 0x117   : > { %v3774_v0 = vpop.permute.xlu1 %1096  ;;  %v950_v15 = vpack.c.bf16 %v2452_v61, %v2452_v61  ;;  %vm1012_vm2 = vmor %vm1005_vm6, %vm1010_vm8  ;;  %v4368_v61 = vld [vmem:[%s5063_s1 + $0x14] ss:$8 sps:$4 sm:$0xff]  }
 0x118   : > { %vm1019_vm11 = vmor %vm1012_vm2, %vm1017_vm9  ;;  %vm1080_vm2 = vcmp.eq.s32.totalorder %v3256_v54, %v3663_v26  ;;  %v2892_v26 = vmov 18  }
 0x119   : > { %814 = vmatpush1.bf16.msra.mxu0 %v3173_v41  ;;  %886 = vmatpush1.bf16.msra.mxu1 %v3762_v1 }
 0x11a   : > { %815 = vmatprep.subr.bf16.mxu0 %v3180_v42  ;;  %887 = vmatprep.subr.bf16.mxu1 %v3769_v59 }
 0x11b   : > { %2641 = vset.pattern.permute.xlu0 %v2892_v26 }
 0x11c   : > { %v3791_v6 = vpop.permute.xlu1 %1159  ;;  %1670 = vperm.xlu0 %2641, %v2998_v12  }
 0x11d   : > { %816 = vmatpush1.bf16.msra.mxu0 %v3189_v43  ;;  %888 = vmatpush1.bf16.msra.mxu1 %v3781_v13  ;;  %vm1161_vm14 = vcmp.eq.s32.totalorder %v3250_v50, %v3791_v6 }
 0x11e   : > { %817 = vmatprep.subr.bf16.mxu0 %v3196_v44  ;;  %889 = vmatprep.subr.bf16.mxu1 %v3788_v60 }
 0x121   : > { %818 = vmatpush1.bf16.msra.mxu0 %v3206_v45  ;;  %890 = vmatpush1.bf16.msra.mxu1 %v3120_v32  ;;  %v3807_v39 = vpop.permute.xlu1 %1164  ;;  %v3812_v32 = vpop.permute.xlu0 %1021 }
 0x122   : > { %891 = vmatprep.subr.bf16.mxu1 %v3127_v34  ;;  %951 = vmatprep.subr.bf16.mxu0 %v3609_v31  ;;  %vm1166_vm4 = vcmp.eq.s32.totalorder %v3250_v50, %v3807_v39  ;;  %vm1024_vm13 = vcmp.eq.s32.totalorder %v3256_v54, %v3812_v32  ;;  %v3998_v34 = vld [vmem:[%s5063_s1 + $0xf4] ss:$8 sps:$4 sm:$0xff]  }
 0x123   : > { %vm3818_vm5 = vmor %vm1161_vm14, %vm1166_vm4 }
 0x124   : > { %820 = vmatmul.mubr.bf16.vlgmr.msra.gmra.mrb[8].mxu0 %v785_v62  ;;  %vm861_vm14 = vmor %vm3496_vm12, %vm859_vm10  ;;  %vm1085_vm10 = vcmp.eq.s32.totalorder %v3256_v54, %v3683_v29  ;;  %v3949_v29 = vld [vmem:[%s5063_s1 + $0xc0] ss:$8 sps:$4 sm:$0xff]   ;;  %v3972_v62 = vld [vmem:[%s5063_s1 + $0xd0] ss:$8 sps:$4 sm:$0xff]  }
 0x125   : > { %892 = vmatpush1.bf16.msra.mxu1 %v3139_v36  ;;  %952 = vmatpush1.bf16.msra.mxu0 %v3474_v48  ;;  %v3827_v36 = vpop.permute.xlu0 %1103  ;;  %vm1026_vm6 = vmor %vm1019_vm11, %vm1024_vm13 }
 0x126   : > { %893 = vmatprep.subr.bf16.mxu1 %v3146_v37  ;;  %953 = vmatprep.subr.bf16.mxu0 %v3481_v2  ;;  %v3839_v37 = vpop.permute.xlu1 %1178  ;;  %v2454_v11 = vsel %vm1026_vm6, 1.0, %v2886_v58 }
 0x127   : > { %983 = vmatprep.mubr.bf16.mxu0 %v950_v15  ;;  %vm1180_vm0 = vcmp.eq.s32.totalorder %v3250_v50, %v3839_v37  ;;  %v3979_v15 = vld [vmem:[%s5063_s1 + $0xe4] ss:$8 sps:$4 sm:$0xff]  }
 0x129   : > { %894 = vmatpush1.bf16.msra.mxu1 %v3156_v38  ;;  %954 = vmatpush1.bf16.msra.mxu0 %v3504_v56  ;;  %v3841_v38 = vpop.permute.xlu0 %1171 }
 0x12a   : > { %895 = vmatprep.subr.bf16.mxu1 %v3163_v40  ;;  %955 = vmatprep.subr.bf16.mxu0 %v3512_v7  ;;  %vm1173_vm1 = vcmp.eq.s32.totalorder %v3250_v50, %v3841_v38  ;;  %v2891_v40 = vmov 17  }
 0x12b   : > { %vm1175_vm4 = vmor %vm3818_vm5, %vm1173_vm1  ;;  %2635 = vset.pattern.permute.xlu1 %v2891_v40  ;;  %vm1092_vm1 = vcmp.eq.s32.totalorder %v3256_v54, %v3720_v52  ;;  %v3960_v52 = vld [vmem:[%s5063_s1 + $0xd4] ss:$8 sps:$4 sm:$0xff]  }
 0x12c   : > { %1513 = vperm.xlu1 %2635, %v3017_v17   ;;  %vm3858_vm12 = vmor %vm1175_vm4, %vm1180_vm0 }
 0x12d   : > { %896 = vmatpush1.bf16.msra.mxu1 %v3173_v41  ;;  %956 = vmatpush1.bf16.msra.mxu0 %v3541_v4  ;;  %v2449_v41 = vsel %vm861_vm14, 1.0, %v2886_v58  ;;  %v3903_v46 = vpop.permute.xlu0 %1246  ;;  %vm1087_vm0 = vmor %vm1080_vm2, %vm1085_vm10  ;;  %vm1106_vm2 = vcmp.eq.s32.totalorder %v3256_v54, %v3827_v36 }
 0x12e   : > { %897 = vmatprep.subr.bf16.mxu1 %v3180_v42  ;;  %957 = vmatprep.subr.bf16.mxu0 %v3553_v10  ;;  %v867_v55 = vpack.c.bf16 %v2449_v41, %v2449_v41  ;;  %vm1248_vm8 = vcmp.eq.s32.totalorder %v3250_v50, %v3903_v46  ;;  %vm1094_vm6 = vmor %vm1087_vm0, %vm1092_vm1  ;;  %vm1174_vm0 = vcmp.eq.s32.totalorder %v3256_v54, %v3841_v38 }
 0x12f   : > { %vm1181_vm1 = vcmp.eq.s32.totalorder %v3256_v54, %v3839_v37 }
 0x130   : > { %1588 = vperm.xlu1 %2635, %v2998_v12  }
 0x131   : > { %898 = vmatpush1.bf16.msra.mxu1 %v3189_v43  ;;  %958 = vmatpush1.bf16.msra.mxu0 %v3574_v5  ;;  %v1032_v43 = vpack.c.bf16 %v2454_v11, %v2454_v11  ;;  %v3927_v35 = vpop.permute.xlu0 %1253 }
 0x132   : > { %899 = vmatprep.subr.bf16.mxu1 %v3196_v44  ;;  %959 = vmatprep.subr.bf16.mxu0 %v3584_v18  ;;  %v3886_v44 = vpop.permute.xlu1 %1241  ;;  %vm1255_vm13 = vcmp.eq.s32.totalorder %v3250_v50, %v3927_v35 }
 0x133   : > { %vm1243_vm5 = vcmp.eq.s32.totalorder %v3250_v50, %v3886_v44 }
 0x134   : > { %vm1250_vm9 = vmor %vm1243_vm5, %vm1248_vm8  ;;  %2637 = vset.pattern.permute.xlu1 %v2892_v26  ;;  %vm1099_vm5 = vcmp.eq.s32.totalorder %v3256_v54, %v3774_v0  ;;  %vm941_vm8 = vcmp.eq.s32.totalorder %v3250_v50, %v3622_v19  ;;  %v3991_v19 = vld [vmem:[%s5063_s1 + $0xe0] ss:$8 sps:$4 sm:$0xff]  }
 0x135   : > { %900 = vmatpush1.bf16.msra.mxu1 %v3206_v45  ;;  %960 = vmatpush1.bf16.msra.mxu0 %v3600_v20  ;;  %v3897_v45 = vld [vmem:[%s5063_s1 + $0xa0] ss:$8 sps:$4 sm:$0xff]   ;;  %vm1257_vm14 = vmor %vm1250_vm9, %vm1255_vm13  ;;  %vm1167_vm13 = vcmp.eq.s32.totalorder %v3256_v54, %v3807_v39 }
 0x136   : > { %961 = vmatprep.subr.bf16.mxu0 %v3671_v27  ;;  %1033 = vmatprep.subr.bf16.mxu1 %v3609_v31  ;;  %v3901_v14 = vpop.permute.xlu1 %1185  ;;  %vm1101_vm9 = vmor %vm1094_vm6, %vm1099_vm5 }
 0x137   : > { %1595 = vperm.xlu1 %2637, %v3017_v17   ;;  %vm943_vm10 = vmor %vm3612_vm15, %vm941_vm8  ;;  %vm1162_vm15 = vcmp.eq.s32.totalorder %v3256_v54, %v3791_v6 }
 0x138   : > { %902 = vmatmul.mubr.bf16.vlgmr.msra.gmra.mrb[8].mxu1 %v867_v55  ;;  %v2451_v33 = vsel %vm943_vm10, 1.0, %v2886_v58  ;;  %v4009_v55 = vld [vmem:[%s5063_s1 + $0xf0] ss:$8 sps:$4 sm:$0xff]  }
 0x139   : > { %962 = vmatpush1.bf16.msra.mxu0 %v3680_v28  ;;  %1034 = vmatpush1.bf16.msra.mxu1 %v3474_v48  ;;  %v949_v11 = vpack.c.bf16 %v2451_v33, %v2451_v33 }
 0x13a   : > { %963 = vmatprep.subr.bf16.mxu0 %v3689_v30  ;;  %1035 = vmatprep.subr.bf16.mxu1 %v3481_v2  ;;  %v3925_v24 = vpop.permute.xlu1 %1260 }
 0x13b   : > { %1065 = vmatprep.mubr.bf16.mxu1 %v1032_v43  ;;  %vm1262_vm11 = vcmp.eq.s32.totalorder %v3250_v50, %v3925_v24  ;;  %2639 = vset.pattern.permute.xlu1 %v2890_v47 }
 0x13c   : > { %vm3953_vm4 = vmor %vm1257_vm14, %vm1262_vm11  ;;  %1656 = vperm.xlu1 %2639, %v2981_v9  }
 0x13d   : > { %964 = vmatpush1.bf16.msra.mxu0 %v3710_v51  ;;  %1036 = vmatpush1.bf16.msra.mxu1 %v3504_v56  ;;  %vm1108_vm11 = vmor %vm1101_vm9, %vm1106_vm2  ;;  %vm1023_vm9 = vcmp.eq.s32.totalorder %v3250_v50, %v3812_v32 }
 0x13e   : > { %965 = vmatprep.subr.bf16.mxu0 %v3717_v53  ;;  %1037 = vmatprep.subr.bf16.mxu1 %v3512_v7  ;;  %v2456_v41 = vsel %vm1108_vm11, 1.0, %v2886_v58  ;;  %v4022_v49 = vpop.permute.xlu1 %1267  ;;  %vm1169_vm14 = vmor %vm1162_vm15, %vm1167_vm13  ;;  %vm1188_vm11 = vcmp.eq.s32.totalorder %v3256_v54, %v3901_v14 }
 0x13f   : > { %v1114_v43 = vpack.c.bf16 %v2456_v41, %v2456_v41  ;;  %vm1176_vm6 = vmor %vm1169_vm14, %vm1174_vm0 }
 0x140   : > { %2640 = vset.pattern.permute.xlu1 %v2891_v40  ;;  %vm1183_vm10 = vmor %vm1176_vm6, %vm1181_vm1 }
 0x141   : > { %966 = vmatpush1.bf16.msra.mxu0 %v3738_v3  ;;  %1038 = vmatpush1.bf16.msra.mxu1 %v3541_v4  ;;  %vm1025_vm15 = vmor %vm3659_vm7, %vm1023_vm9 }
 0x142   : > { %967 = vmatprep.subr.bf16.mxu0 %v3747_v63  ;;  %1039 = vmatprep.subr.bf16.mxu1 %v3553_v10  ;;  %v4033_v6 = vpop.permute.xlu1 %1328  ;;  %vm1190_vm1 = vmor %vm1183_vm10, %vm1188_vm11  ;;  %v2453_v25 = vsel %vm1025_vm15, 1.0, %v2886_v58  ;;  %vm1244_vm10 = vcmp.eq.s32.totalorder %v3256_v54, %v3886_v44  ;;  %vm1249_vm11 = vcmp.eq.s32.totalorder %v3256_v54, %v3903_v46 }
 0x143   : > { %1663 = vperm.xlu1 %2640, %v2978_v8   ;;  %vm1330_vm8 = vcmp.eq.s32.totalorder %v3250_v50, %v4033_v6  ;;  %v1031_v37 = vpack.c.bf16 %v2453_v25, %v2453_v25  ;;  %v2458_v38 = vsel %vm1190_vm1, 1.0, %v2886_v58  ;;  %vm1251_vm15 = vmor %vm1244_vm10, %vm1249_vm11  ;;  %v4589_v25 = vld [vmem:[%s5063_s1 + $0x90] ss:$8 sps:$4 sm:$0xff]  }
 0x145   : > { %968 = vmatpush1.bf16.msra.mxu0 %v3762_v1  ;;  %1040 = vmatpush1.bf16.msra.mxu1 %v3574_v5 }
 0x146   : > { %969 = vmatprep.subr.bf16.mxu0 %v3769_v59  ;;  %1041 = vmatprep.subr.bf16.mxu1 %v3584_v18 }
 0x147   : > { %2642 = vset.pattern.permute.xlu1 %v2890_v47  ;;  %v4031_v47 = vpop.permute.xlu0 %1323  ;;  %v4053_v39 = vpop.permute.xlu1 %1335 }
 0x148   : > { %1733 = vperm.xlu1 %2642, %v3638_v22   ;;  %vm1325_vm5 = vcmp.eq.s32.totalorder %v3250_v50, %v4031_v47  ;;  %vm1337_vm14 = vcmp.eq.s32.totalorder %v3250_v50, %v4053_v39 }
 0x149   : > { %970 = vmatpush1.bf16.msra.mxu0 %v3781_v13  ;;  %1042 = vmatpush1.bf16.msra.mxu1 %v3600_v20  ;;  %vm1332_vm2 = vmor %vm1325_vm5, %vm1330_vm8 }
 0x14a   : > { %971 = vmatprep.subr.bf16.mxu0 %v3788_v60  ;;  %1043 = vmatprep.subr.bf16.mxu1 %v3671_v27  ;;  %vm1339_vm0 = vmor %vm1332_vm2, %vm1337_vm14  ;;  %vm1098_vm14 = vcmp.eq.s32.totalorder %v3250_v50, %v3774_v0 }
 0x14b   : > { %v4051_v22 = vpop.permute.xlu0 %1342 }
 0x14c   : > { %2643 = vset.pattern.permute.xlu1 %v2891_v40  ;;  %vm1344_vm13 = vcmp.eq.s32.totalorder %v3250_v50, %v4051_v22 }
 0x14d   : > { %972 = vmatpush1.bf16.msra.mxu0 %v3897_v45  ;;  %1044 = vmatpush1.bf16.msra.mxu1 %v3680_v28  ;;  %vm4068_vm7 = vmor %vm1339_vm0, %vm1344_vm13  ;;  %vm1256_vm13 = vcmp.eq.s32.totalorder %v3256_v54, %v3927_v35  ;;  %vm1263_vm0 = vcmp.eq.s32.totalorder %v3256_v54, %v3925_v24 }
 0x14e   : > { %973 = vmatprep.subr.bf16.mxu0 %v3908_v21  ;;  %1045 = vmatprep.subr.bf16.mxu1 %v3689_v30  ;;  %vm1258_vm1 = vmor %vm1251_vm15, %vm1256_vm13  ;;  %vm1326_vm15 = vcmp.eq.s32.totalorder %v3256_v54, %v4031_v47  ;;  %vm1331_vm13 = vcmp.eq.s32.totalorder %v3256_v54, %v4033_v6 }
 0x14f   : > { %1738 = vperm.xlu1 %2643, %v2981_v9   ;;  %v2893_v9 = vmov 19   ;;  %v4192_v35 = vpop.permute.xlu0 %1349 }
 0x150   : > { %2644 = vset.pattern.permute.xlu0 %v2893_v9 }
 0x151   : > { %974 = vmatpush1.bf16.msra.mxu0 %v3917_v23  ;;  %1046 = vmatpush1.bf16.msra.mxu1 %v3710_v51 }
 0x152   : > { %975 = vmatprep.subr.bf16.mxu0 %v3932_v16  ;;  %1047 = vmatprep.subr.bf16.mxu1 %v3717_v53 }
 0x153   : > { %1677 = vperm.xlu0 %2644, %v3017_v17   ;;  %2645 = vset.pattern.permute.xlu1 %v2892_v26  ;;  %v1196_v26 = vpack.c.bf16 %v2458_v38, %v2458_v38 }
 0x154   : > { %1745 = vperm.xlu1 %2645, %v2978_v8  }
 0x155   : > { %976 = vmatpush1.bf16.msra.mxu0 %v3949_v29  ;;  %1048 = vmatpush1.bf16.msra.mxu1 %v3738_v3 }
 0x156   : > { %977 = vmatprep.subr.bf16.mxu0 %v3960_v52  ;;  %1049 = vmatprep.subr.bf16.mxu1 %v3747_v63 }
 0x158   : > { %2646 = vset.pattern.permute.xlu1 %v2893_v9 }
 0x159   : > { %978 = vmatpush1.bf16.msra.mxu0 %v3972_v62  ;;  %1050 = vmatpush1.bf16.msra.mxu1 %v3762_v1 }
 0x15a   : > { %979 = vmatprep.subr.bf16.mxu0 %v3979_v15  ;;  %1051 = vmatprep.subr.bf16.mxu1 %v3769_v59 }
 0x15b   : > { %1752 = vperm.xlu1 %2646, %v2998_v12   ;;  %v4095_v12 = vpop.permute.xlu1 %1405 }
 0x15c   : > { %vm1407_vm6 = vcmp.eq.s32.totalorder %v3250_v50, %v4095_v12 }
 0x15d   : > { %980 = vmatpush1.bf16.msra.mxu0 %v3991_v19  ;;  %1052 = vmatpush1.bf16.msra.mxu1 %v3781_v13 }
 0x15e   : > { %981 = vmatprep.subr.bf16.mxu0 %v3998_v34  ;;  %1053 = vmatprep.subr.bf16.mxu1 %v3788_v60 }
 0x161   : > { %982 = vmatpush1.bf16.msra.mxu0 %v4009_v55  ;;  %1054 = vmatpush1.bf16.msra.mxu1 %v3897_v45 }
 0x162   : > { %1055 = vmatprep.subr.bf16.mxu1 %v3908_v21  ;;  %1115 = vmatprep.subr.bf16.mxu0 %v3609_v31 }
 0x164   : > { %984 = vmatmul.mubr.bf16.vlgmr.msra.gmra.mrb[12].mxu0 %v949_v11  ;;  %v4103_v11 = vpop.permute.xlu1 %1410 }
 0x165   : > { %1056 = vmatpush1.bf16.msra.mxu1 %v3917_v23  ;;  %1116 = vmatpush1.bf16.msra.mxu0 %v3474_v48  ;;  %vm1412_vm5 = vcmp.eq.s32.totalorder %v3250_v50, %v4103_v11 }
 0x166   : > { %1057 = vmatprep.subr.bf16.mxu1 %v3932_v16  ;;  %1117 = vmatprep.subr.bf16.mxu0 %v3481_v2  ;;  %vm4109_vm8 = vmor %vm1407_vm6, %vm1412_vm5  ;;  %vm1105_vm5 = vcmp.eq.s32.totalorder %v3250_v50, %v3827_v36 }
 0x167   : > { %1147 = vmatprep.mubr.bf16.mxu0 %v1114_v43  ;;  %vm1100_vm6 = vmor %vm3728_vm3, %vm1098_vm14 }
 0x168   : > { %v4123_v38 = vpop.permute.xlu1 %1417  ;;  %vm1107_vm10 = vmor %vm1100_vm6, %vm1105_vm5  ;;  %vm1338_vm6 = vcmp.eq.s32.totalorder %v3256_v54, %v4053_v39  ;;  %vm1345_vm5 = vcmp.eq.s32.totalorder %v3256_v54, %v4051_v22 }
 0x169   : > { %1058 = vmatpush1.bf16.msra.mxu1 %v3949_v29  ;;  %1118 = vmatpush1.bf16.msra.mxu0 %v3504_v56  ;;  %vm1419_vm9 = vcmp.eq.s32.totalorder %v3250_v50, %v4123_v38  ;;  %v2455_v0 = vsel %vm1107_vm10, 1.0, %v2886_v58 }
 0x16a   : > { %1059 = vmatprep.subr.bf16.mxu1 %v3960_v52  ;;  %1119 = vmatprep.subr.bf16.mxu0 %v3512_v7  ;;  %vm4135_vm2 = vmor %vm4109_vm8, %vm1419_vm9  ;;  %vm1270_vm9 = vcmp.eq.s32.totalorder %v3256_v54, %v4022_v49  ;;  %v1113_v44 = vpack.c.bf16 %v2455_v0, %v2455_v0  ;;  %v4206_v6 = vpop.permute.xlu0 %1431 }
 0x16b   : > { %vm1265_vm8 = vmor %vm1258_vm1, %vm1263_vm0 }
 0x16c   : > { %vm1272_vm3 = vmor %vm1265_vm8, %vm1270_vm9  ;;  %vm1187_vm9 = vcmp.eq.s32.totalorder %v3250_v50, %v3901_v14 }
 0x16d   : > { %1060 = vmatpush1.bf16.msra.mxu1 %v3972_v62  ;;  %1120 = vmatpush1.bf16.msra.mxu0 %v3541_v4  ;;  %v2460_v36 = vsel %vm1272_vm3, 1.0, %v2886_v58  ;;  %vm1333_vm1 = vmor %vm1326_vm15, %vm1331_vm13  ;;  %vm1352_vm3 = vcmp.eq.s32.totalorder %v3256_v54, %v4192_v35 }
 0x16e   : > { %1061 = vmatprep.subr.bf16.mxu1 %v3979_v15  ;;  %1121 = vmatprep.subr.bf16.mxu0 %v3553_v10  ;;  %v1278_v46 = vpack.c.bf16 %v2460_v36, %v2460_v36  ;;  %vm1340_vm8 = vmor %vm1333_vm1, %vm1338_vm6 }
 0x16f   : > { %vm1347_vm10 = vmor %vm1340_vm8, %vm1345_vm5  ;;  %v4220_v43 = vpop.permute.xlu0 %1499  ;;  %vm1408_vm8 = vcmp.eq.s32.totalorder %v3256_v54, %v4095_v12 }
 0x170   : > { %vm1501_vm13 = vcmp.eq.s32.totalorder %v3250_v50, %v4220_v43  ;;  %vm1354_vm1 = vmor %vm1347_vm10, %vm1352_vm3 }
 0x171   : > { %1062 = vmatpush1.bf16.msra.mxu1 %v3991_v19  ;;  %1122 = vmatpush1.bf16.msra.mxu0 %v3574_v5 }
 0x172   : > { %1063 = vmatprep.subr.bf16.mxu1 %v3998_v34  ;;  %1123 = vmatprep.subr.bf16.mxu0 %v3584_v18 }
 0x175   : > { %1064 = vmatpush1.bf16.msra.mxu1 %v4009_v55  ;;  %1124 = vmatpush1.bf16.msra.mxu0 %v3600_v20 }
 0x176   : > { %1125 = vmatprep.subr.bf16.mxu0 %v3671_v27  ;;  %1197 = vmatprep.subr.bf16.mxu1 %v3609_v31 }
 0x177   : > { %v4080_v40 = vpop.f32.mrb[0].mxu0 }
 0x178   : > { %1066 = vmatmul.mubr.bf16.vlgmr.msra.gmra.mrb[12].mxu1 %v1031_v37  ;;  %v4082_v33 = vpop.f32.mrb[1].mxu0 }
 0x179   : > { %1126 = vmatpush1.bf16.msra.mxu0 %v3680_v28  ;;  %1198 = vmatpush1.bf16.msra.mxu1 %v3474_v48  ;;  %v499_v8 = vpop.f32.mrb[2].mxu0 }
 0x17a   : > { %v500_v41 = vpop.f32.mrb[3].mxu0  ;;  %1127 = vmatprep.subr.bf16.mxu0 %v3689_v30  ;;  %1199 = vmatprep.subr.bf16.mxu1 %v3481_v2 }
 0x17b   : > { %1229 = vmatprep.mubr.bf16.mxu1 %v1196_v26  ;;  %v2894_v26 = vmov 20  }
 0x17c   : > { %2647 = vset.pattern.permute.xlu0 %v2894_v26  ;;  %v2462_v26 = vsel %vm1354_vm1, 1.0, %v2886_v58 }
 0x17d   : > { %1128 = vmatpush1.bf16.msra.mxu0 %v3710_v51  ;;  %1200 = vmatpush1.bf16.msra.mxu1 %v3504_v56 }
 0x17e   : > { %1129 = vmatprep.subr.bf16.mxu0 %v3717_v53  ;;  %1201 = vmatprep.subr.bf16.mxu1 %v3512_v7 }
 0x17f   : > { %1759 = vperm.xlu0 %2647, %v3017_v17   ;;  %v4168_v17 = vpop.permute.xlu1 %1424 }
 0x181   : > { %1130 = vmatpush1.bf16.msra.mxu0 %v3738_v3  ;;  %1202 = vmatpush1.bf16.msra.mxu1 %v3541_v4 }
 0x182   : > { %1131 = vmatprep.subr.bf16.mxu0 %v3747_v63  ;;  %1203 = vmatprep.subr.bf16.mxu1 %v3553_v10 }
 0x183   : > { %v4174_v57 = vpop.permute.xlu1 %1487 }
 0x184   : > { %vm1489_vm11 = vcmp.eq.s32.totalorder %v3250_v50, %v4174_v57 }
 0x185   : > { %1132 = vmatpush1.bf16.msra.mxu0 %v3762_v1  ;;  %1204 = vmatpush1.bf16.msra.mxu1 %v3574_v5 }
 0x186   : > { %1133 = vmatprep.subr.bf16.mxu0 %v3769_v59  ;;  %1205 = vmatprep.subr.bf16.mxu1 %v3584_v18 }
 0x187   : > { %v4188_v24 = vpop.permute.xlu1 %1492 }
 0x188   : > { %vm1494_vm14 = vcmp.eq.s32.totalorder %v3250_v50, %v4188_v24 }
 0x189   : > { %1134 = vmatpush1.bf16.msra.mxu0 %v3781_v13  ;;  %1206 = vmatpush1.bf16.msra.mxu1 %v3600_v20  ;;  %vm4198_vm0 = vmor %vm1489_vm11, %vm1494_vm14 }
 0x18a   : > { %1135 = vmatprep.subr.bf16.mxu0 %v3788_v60  ;;  %1207 = vmatprep.subr.bf16.mxu1 %v3671_v27  ;;  %vm1189_vm11 = vmor %vm3858_vm12, %vm1187_vm9  ;;  %vm1413_vm9 = vcmp.eq.s32.totalorder %v3256_v54, %v4103_v11  ;;  %v4388_v11 = vld [vmem:[%s5063_s1 + $0x24] ss:$8 sps:$4 sm:$0xff]  }
 0x18b   : > { %v4117_v9 = vpop.f32.mrb[0].mxu1  ;;  %v4218_v39 = vpop.permute.xlu1 %1506  ;;  %vm1503_vm14 = vmor %vm4198_vm0, %vm1501_vm13  ;;  %v2457_v14 = vsel %vm1189_vm11, 1.0, %v2886_v58  ;;  %vm1420_vm13 = vcmp.eq.s32.totalorder %v3256_v54, %v4123_v38 }
 0x18c   : > { %v4121_v37 = vpop.f32.mrb[1].mxu1  ;;  %vm1508_vm15 = vcmp.eq.s32.totalorder %v3250_v50, %v4218_v39  ;;  %v1195_v42 = vpack.c.bf16 %v2457_v14, %v2457_v14  ;;  %v5113_v0 = vmax.f32 %v4080_v40, %v4117_v9  ;;  %v4377_v40 = vld [vmem:[%s5063_s1 + $0x10] ss:$8 sps:$4 sm:$0xff]   ;;  %v4403_v9 = vld [vmem:[%s5063_s1 + $0x20] ss:$8 sps:$4 sm:$0xff]  }
 0x18d   : > { %1136 = vmatpush1.bf16.msra.mxu0 %v3897_v45  ;;  %1208 = vmatpush1.bf16.msra.mxu1 %v3680_v28  ;;  %v579_v8 = vpop.f32.mrb[2].mxu1  ;;  %vm4235_vm6 = vmor %vm1503_vm14, %vm1508_vm15 }
 0x18e   : > { %v580_v41 = vpop.f32.mrb[3].mxu1  ;;  %1137 = vmatprep.subr.bf16.mxu0 %v3908_v21  ;;  %1209 = vmatprep.subr.bf16.mxu1 %v3689_v30  ;;  %vm1415_vm15 = vmor %vm1408_vm8, %vm1413_vm9  ;;  %vm1434_vm8 = vcmp.eq.s32.totalorder %v3256_v54, %v4206_v6 }
 0x18f   : > { %v1360_v41 = vpack.c.bf16 %v2462_v26, %v2462_v26  ;;  %vm1422_vm1 = vmor %vm1415_vm15, %vm1420_vm13  ;;  %vm1502_vm15 = vcmp.eq.s32.totalorder %v3256_v54, %v4220_v43  ;;  %vm1509_vm13 = vcmp.eq.s32.totalorder %v3256_v54, %v4218_v39  ;;  %v4441_v39 = vld [vmem:[%s5063_s1 + $0x44] ss:$8 sps:$4 sm:$0xff]   ;;  %v4449_v26 = vld [vmem:[%s5063_s1 + $0x40] ss:$8 sps:$4 sm:$0xff]  }
 0x191   : > { %1138 = vmatpush1.bf16.msra.mxu0 %v3917_v23  ;;  %1210 = vmatpush1.bf16.msra.mxu1 %v3710_v51 }
 0x192   : > { %1139 = vmatprep.subr.bf16.mxu0 %v3932_v16  ;;  %1211 = vmatprep.subr.bf16.mxu1 %v3717_v53 }
 0x195   : > { %1140 = vmatpush1.bf16.msra.mxu0 %v3949_v29  ;;  %1212 = vmatpush1.bf16.msra.mxu1 %v3738_v3 }
 0x196   : > { %1141 = vmatprep.subr.bf16.mxu0 %v3960_v52  ;;  %1213 = vmatprep.subr.bf16.mxu1 %v3747_v63 }
 0x199   : > { %1142 = vmatpush1.bf16.msra.mxu0 %v3972_v62  ;;  %1214 = vmatpush1.bf16.msra.mxu1 %v3762_v1 }
 0x19a   : > { %1143 = vmatprep.subr.bf16.mxu0 %v3979_v15  ;;  %1215 = vmatprep.subr.bf16.mxu1 %v3769_v59 }
 0x19d   : > { %1144 = vmatpush1.bf16.msra.mxu0 %v3991_v19  ;;  %1216 = vmatpush1.bf16.msra.mxu1 %v3781_v13 }
 0x19e   : > { %1145 = vmatprep.subr.bf16.mxu0 %v3998_v34  ;;  %1217 = vmatprep.subr.bf16.mxu1 %v3788_v60 }
 0x1a1   : > { %1146 = vmatpush1.bf16.msra.mxu0 %v4009_v55  ;;  %1218 = vmatpush1.bf16.msra.mxu1 %v3897_v45 }
 0x1a2   : > { %1219 = vmatprep.subr.bf16.mxu1 %v3908_v21  ;;  %1279 = vmatprep.subr.bf16.mxu0 %v3609_v31 }
 0x1a4   : > { %1148 = vmatmul.mubr.bf16.vlgmr.msra.gmra.mrb[16].mxu0 %v1113_v44 }
 0x1a5   : > { %1220 = vmatpush1.bf16.msra.mxu1 %v3917_v23  ;;  %1280 = vmatpush1.bf16.msra.mxu0 %v3474_v48 }
 0x1a6   : > { %1221 = vmatprep.subr.bf16.mxu1 %v3932_v16  ;;  %1281 = vmatprep.subr.bf16.mxu0 %v3481_v2 }
 0x1a7   : > { %1311 = vmatprep.mubr.bf16.mxu0 %v1278_v46  ;;  %v5114_v46 = vmax.f32 %v4082_v33, %v4121_v37 }
 0x1a9   : > { %1222 = vmatpush1.bf16.msra.mxu1 %v3949_v29  ;;  %1282 = vmatpush1.bf16.msra.mxu0 %v3504_v56 }
 0x1aa   : > { %1223 = vmatprep.subr.bf16.mxu1 %v3960_v52  ;;  %1283 = vmatprep.subr.bf16.mxu0 %v3512_v7 }
 0x1ad   : > { %1224 = vmatpush1.bf16.msra.mxu1 %v3972_v62  ;;  %1284 = vmatpush1.bf16.msra.mxu0 %v3541_v4 }
 0x1ae   : > { %1225 = vmatprep.subr.bf16.mxu1 %v3979_v15  ;;  %1285 = vmatprep.subr.bf16.mxu0 %v3553_v10 }
 0x1b1   : > { %1226 = vmatpush1.bf16.msra.mxu1 %v3991_v19  ;;  %1286 = vmatpush1.bf16.msra.mxu0 %v3574_v5 }
 0x1b2   : > { %1227 = vmatprep.subr.bf16.mxu1 %v3998_v34  ;;  %1287 = vmatprep.subr.bf16.mxu0 %v3584_v18 }
 0x1b5   : > { %1228 = vmatpush1.bf16.msra.mxu1 %v4009_v55  ;;  %1288 = vmatpush1.bf16.msra.mxu0 %v3600_v20 }
 0x1b6   : > { %1289 = vmatprep.subr.bf16.mxu0 %v3671_v27  ;;  %1361 = vmatprep.subr.bf16.mxu1 %v3609_v31 }
 0x1b7   : > { %v657_v8 = vpop.f32.mrb[4].mxu0 }
 0x1b8   : > { %v4249_v36 = vmax.f32 %v5113_v0, %v657_v8  ;;  %v659_v44 = vpop.f32.mrb[5].mxu0  ;;  %1230 = vmatmul.mubr.bf16.vlgmr.msra.gmra.mrb[16].mxu1 %v1195_v42  ;;  %v4455_v8 = vld [vmem:[%s5063_s1 + $0x54] ss:$8 sps:$4 sm:$0xff]  }
 0x1b9   : > { %v4254_v47 = vmax.f32 %v5114_v46, %v659_v44  ;;  %v661_v14 = vpop.f32.mrb[6].mxu0  ;;  %1290 = vmatpush1.bf16.msra.mxu0 %v3680_v28  ;;  %1362 = vmatpush1.bf16.msra.mxu1 %v3474_v48  ;;  %v4272_v48 = vpop.permute.xlu1 %1569 }
 0x1ba   : > { %v662_v31 = vpop.f32.mrb[7].mxu0  ;;  %1291 = vmatprep.subr.bf16.mxu0 %v3689_v30  ;;  %1363 = vmatprep.subr.bf16.mxu1 %v3481_v2  ;;  %vm1571_vm12 = vcmp.eq.s32.totalorder %v3250_v50, %v4272_v48 }
 0x1bb   : > { %1393 = vmatprep.mubr.bf16.mxu1 %v1360_v41 }
 0x1bd   : > { %1292 = vmatpush1.bf16.msra.mxu0 %v3710_v51  ;;  %1364 = vmatpush1.bf16.msra.mxu1 %v3504_v56 }
 0x1be   : > { %1293 = vmatprep.subr.bf16.mxu0 %v3717_v53  ;;  %1365 = vmatprep.subr.bf16.mxu1 %v3512_v7 }
 0x1c1   : > { %1294 = vmatpush1.bf16.msra.mxu0 %v3738_v3  ;;  %1366 = vmatpush1.bf16.msra.mxu1 %v3541_v4  ;;  %v4286_v4 = vpop.permute.xlu1 %1513 }
 0x1c2   : > { %1295 = vmatprep.subr.bf16.mxu0 %v3747_v63  ;;  %1367 = vmatprep.subr.bf16.mxu1 %v3553_v10 }
 0x1c5   : > { %1296 = vmatpush1.bf16.msra.mxu0 %v3762_v1  ;;  %1368 = vmatpush1.bf16.msra.mxu1 %v3574_v5 }
 0x1c6   : > { %1297 = vmatprep.subr.bf16.mxu0 %v3769_v59  ;;  %1369 = vmatprep.subr.bf16.mxu1 %v3584_v18  ;;  %v4292_v18 = vpop.permute.xlu0 %1574 }
 0x1c7   : > { %vm1576_vm0 = vcmp.eq.s32.totalorder %v3250_v50, %v4292_v18 }
 0x1c8   : > { %vm1578_vm5 = vmor %vm1571_vm12, %vm1576_vm0  ;;  %vm1427_vm12 = vcmp.eq.s32.totalorder %v3256_v54, %v4168_v17  ;;  %vm1269_vm0 = vcmp.eq.s32.totalorder %v3250_v50, %v4022_v49 }
 0x1c9   : > { %1298 = vmatpush1.bf16.msra.mxu0 %v3781_v13  ;;  %1370 = vmatpush1.bf16.msra.mxu1 %v3600_v20  ;;  %vm1271_vm9 = vmor %vm3953_vm4, %vm1269_vm0  ;;  %vm1490_vm4 = vcmp.eq.s32.totalorder %v3256_v54, %v4174_v57  ;;  %v4416_v57 = vld [vmem:[%s5063_s1 + $0x34] ss:$8 sps:$4 sm:$0xff]  }
 0x1ca   : > { %1299 = vmatprep.subr.bf16.mxu0 %v3788_v60  ;;  %1371 = vmatprep.subr.bf16.mxu1 %v3671_v27  ;;  %v4304_v27 = vpop.permute.xlu1 %1588  ;;  %v2459_v49 = vsel %vm1271_vm9, 1.0, %v2886_v58 }
 0x1cb   : > { %v4278_v2 = vpop.f32.mrb[4].mxu1  ;;  %vm1590_vm10 = vcmp.eq.s32.totalorder %v3250_v50, %v4304_v27 }
 0x1cc   : > { %v746_v56 = vmax.f32 %v4249_v36, %v4278_v2  ;;  %v4282_v7 = vpop.f32.mrb[5].mxu1  ;;  %v4479_v2 = vld [vmem:[%s5063_s1 + $0x64] ss:$8 sps:$4 sm:$0xff]  }
 0x1cd   : > { %v747_v10 = vmax.f32 %v4254_v47, %v4282_v7  ;;  %1300 = vmatpush1.bf16.msra.mxu0 %v3897_v45  ;;  %1372 = vmatpush1.bf16.msra.mxu1 %v3680_v28  ;;  %v743_v5 = vpop.f32.mrb[6].mxu1  ;;  %v4306_v28 = vpop.permute.xlu0 %1581  ;;  %v4486_v47 = vld [vmem:[%s5063_s1 + $0x60] ss:$8 sps:$4 sm:$0xff]   ;;  %v4500_v7 = vld [vmem:[%s5063_s1 + $0x70] ss:$8 sps:$4 sm:$0xff]  }
 0x1ce   : > { %1301 = vmatprep.subr.bf16.mxu0 %v3908_v21  ;;  %1373 = vmatprep.subr.bf16.mxu1 %v3689_v30  ;;  %v744_v20 = vpop.f32.mrb[7].mxu1  ;;  %vm1583_vm3 = vcmp.eq.s32.totalorder %v3250_v50, %v4306_v28  ;;  %v4472_v5 = vld [vmem:[%s5063_s1 + $0x50] ss:$8 sps:$4 sm:$0xff]  }
 0x1cf   : > { %vm1585_vm11 = vmor %vm1578_vm5, %vm1583_vm3  ;;  %vm1495_vm3 = vcmp.eq.s32.totalorder %v3256_v54, %v4188_v24  ;;  %v4429_v24 = vld [vmem:[%s5063_s1 + $0x30] ss:$8 sps:$4 sm:$0xff]   ;;  %v4509_v20 = vld [vmem:[%s5063_s1 + $0x84] ss:$8 sps:$4 sm:$0xff]  }
 0x1d0   : > { %vm4318_vm14 = vmor %vm1585_vm11, %vm1590_vm10 }
 0x1d1   : > { %1302 = vmatpush1.bf16.msra.mxu0 %v3917_v23  ;;  %1374 = vmatpush1.bf16.msra.mxu1 %v3710_v51  ;;  %vm1429_vm5 = vmor %vm1422_vm1, %vm1427_vm12  ;;  %v4380_v33 = vpop.permute.xlu0 %1651 }
 0x1d2   : > { %1303 = vmatprep.subr.bf16.mxu0 %v3932_v16  ;;  %1375 = vmatprep.subr.bf16.mxu1 %v3717_v53  ;;  %vm1436_vm10 = vmor %vm1429_vm5, %vm1434_vm8  ;;  %v1277_v53 = vpack.c.bf16 %v2459_v49, %v2459_v49  ;;  %vm1653_vm12 = vcmp.eq.s32.totalorder %v3250_v50, %v4380_v33  ;;  %vm1351_vm5 = vcmp.eq.s32.totalorder %v3250_v50, %v4192_v35  ;;  %v4518_v49 = vld [vmem:[%s5063_s1 + $0x80] ss:$8 sps:$4 sm:$0xff]  }
 0x1d3   : > { %v2464_v51 = vsel %vm1436_vm10, 1.0, %v2886_v58  ;;  %vm1497_vm11 = vmor %vm1490_vm4, %vm1495_vm3  ;;  %vm1516_vm10 = vcmp.eq.s32.totalorder %v3256_v54, %v4286_v4 }
 0x1d4   : > { %vm1504_vm1 = vmor %vm1497_vm11, %vm1502_vm15 }
 0x1d5   : > { %1304 = vmatpush1.bf16.msra.mxu0 %v3949_v29  ;;  %1376 = vmatpush1.bf16.msra.mxu1 %v3738_v3  ;;  %v4348_v3 = vld [vmem:[%s5063_s1 + $0x4] ss:$8 sps:$4 sm:$0xff]   ;;  %vm1511_vm9 = vmor %vm1504_vm1, %vm1509_vm13  ;;  %v4408_v37 = vpop.permute.xlu0 %1670 }
 0x1d6   : > { %1305 = vmatprep.subr.bf16.mxu0 %v3960_v52  ;;  %1377 = vmatprep.subr.bf16.mxu1 %v3747_v63  ;;  %v1442_v63 = vpack.c.bf16 %v2464_v51, %v2464_v51  ;;  %vm1353_vm4 = vmor %vm4068_vm7, %vm1351_vm5  ;;  %vm1672_vm3 = vcmp.eq.s32.totalorder %v3250_v50, %v4408_v37 }
 0x1d7   : > { %vm1518_vm13 = vmor %vm1511_vm9, %vm1516_vm10  ;;  %v2461_v32 = vsel %vm1353_vm4, 1.0, %v2886_v58  ;;  %vm1572_vm9 = vcmp.eq.s32.totalorder %v3256_v54, %v4272_v48  ;;  %vm1577_vm10 = vcmp.eq.s32.totalorder %v3256_v54, %v4292_v18 }
 0x1d8   : > { %v1359_v43 = vpack.c.bf16 %v2461_v32, %v2461_v32  ;;  %v2466_v42 = vsel %vm1518_vm13, 1.0, %v2886_v58  ;;  %vm1579_vm4 = vmor %vm1572_vm9, %vm1577_vm10  ;;  %vm1654_vm10 = vcmp.eq.s32.totalorder %v3256_v54, %v4380_v33 }
 0x1d9   : > { %1306 = vmatpush1.bf16.msra.mxu0 %v3972_v62  ;;  %1378 = vmatpush1.bf16.msra.mxu1 %v3762_v1  ;;  %v4359_v1 = vld [vmem:[%s5063_s1] ss:$8 sps:$4 sm:$0xff]   ;;  %v1524_v0 = vpack.c.bf16 %v2466_v42, %v2466_v42 }
 0x1da   : > { %1307 = vmatprep.subr.bf16.mxu0 %v3979_v15  ;;  %1379 = vmatprep.subr.bf16.mxu1 %v3769_v59  ;;  %v4362_v59 = vpop.permute.xlu1 %1595 }
 0x1dd   : > { %1308 = vmatpush1.bf16.msra.mxu0 %v3991_v19  ;;  %1380 = vmatpush1.bf16.msra.mxu1 %v3781_v13 }
 0x1de   : > { %1309 = vmatprep.subr.bf16.mxu0 %v3998_v34  ;;  %1381 = vmatprep.subr.bf16.mxu1 %v3788_v60  ;;  %v4382_v12 = vpop.permute.xlu1 %1656 }
 0x1df   : > { %vm1658_vm0 = vcmp.eq.s32.totalorder %v3250_v50, %v4382_v12 }
 0x1e0   : > { %vm1660_vm8 = vmor %vm1653_vm12, %vm1658_vm0 }
 0x1e1   : > { %1310 = vmatpush1.bf16.msra.mxu0 %v4009_v55  ;;  %1382 = vmatpush1.bf16.msra.mxu1 %v3897_v45 }
 0x1e2   : > { %1383 = vmatprep.subr.bf16.mxu1 %v3908_v21  ;;  %1443 = vmatprep.subr.bf16.mxu0 %v4348_v3  ;;  %v4410_v38 = vpop.permute.xlu1 %1663 }
 0x1e3   : > { %vm1665_vm11 = vcmp.eq.s32.totalorder %v3250_v50, %v4410_v38 }
 0x1e4   : > { %1312 = vmatmul.mubr.bf16.vlgmr.msra.gmra.mrb[20].mxu0 %v1277_v53  ;;  %vm1667_vm15 = vmor %vm1660_vm8, %vm1665_vm11  ;;  %v4527_v53 = vld [vmem:[%s5063_s1 + $0x94] ss:$8 sps:$4 sm:$0xff]   ;;  %vm1426_vm11 = vcmp.eq.s32.totalorder %v3250_v50, %v4168_v17  ;;  %v4596_v17 = vld [vmem:[%s5063_s1 + $0xa4] ss:$8 sps:$4 sm:$0xff]  }
 0x1e5   : > { %1384 = vmatpush1.bf16.msra.mxu1 %v3917_v23  ;;  %1444 = vmatpush1.bf16.msra.mxu0 %v4359_v1  ;;  %vm4433_vm7 = vmor %vm1667_vm15, %vm1672_vm3  ;;  %vm1584_vm3 = vcmp.eq.s32.totalorder %v3256_v54, %v4306_v28  ;;  %vm1591_vm15 = vcmp.eq.s32.totalorder %v3256_v54, %v4304_v27 }
 0x1e6   : > { %1385 = vmatprep.subr.bf16.mxu1 %v3932_v16  ;;  %1445 = vmatprep.subr.bf16.mxu0 %v4368_v61  ;;  %vm1586_vm13 = vmor %vm1579_vm4, %vm1584_vm3  ;;  %vm1659_vm4 = vcmp.eq.s32.totalorder %v3256_v54, %v4382_v12  ;;  %v4684_v12 = vld [vmem:[%s5063_s1 + $0xa0] ss:$8 sps:$4 sm:$0xff]  }
 0x1e7   : > { %1475 = vmatprep.mubr.bf16.mxu0 %v1442_v63  ;;  %vm1661_vm3 = vmor %vm1654_vm10, %vm1659_vm4 }
 0x1e9   : > { %1386 = vmatpush1.bf16.msra.mxu1 %v3949_v29  ;;  %1446 = vmatpush1.bf16.msra.mxu0 %v4377_v40 }
 0x1ea   : > { %1387 = vmatprep.subr.bf16.mxu1 %v3960_v52  ;;  %1447 = vmatprep.subr.bf16.mxu0 %v4388_v11 }
 0x1ed   : > { %1388 = vmatpush1.bf16.msra.mxu1 %v3972_v62  ;;  %1448 = vmatpush1.bf16.msra.mxu0 %v4403_v9 }
 0x1ee   : > { %1389 = vmatprep.subr.bf16.mxu1 %v3979_v15  ;;  %1449 = vmatprep.subr.bf16.mxu0 %v4416_v57 }
 0x1f1   : > { %1390 = vmatpush1.bf16.msra.mxu1 %v3991_v19  ;;  %1450 = vmatpush1.bf16.msra.mxu0 %v4429_v24 }
 0x1f2   : > { %1391 = vmatprep.subr.bf16.mxu1 %v3998_v34  ;;  %1451 = vmatprep.subr.bf16.mxu0 %v4441_v39 }
 0x1f5   : > { %1392 = vmatpush1.bf16.msra.mxu1 %v4009_v55  ;;  %1452 = vmatpush1.bf16.msra.mxu0 %v4449_v26 }
 0x1f6   : > { %1453 = vmatprep.subr.bf16.mxu0 %v4455_v8  ;;  %1525 = vmatprep.subr.bf16.mxu1 %v4348_v3 }
 0x1f7   : > { %v821_v41 = vpop.f32.mrb[8].mxu0 }
 0x1f8   : > { %v4462_v44 = vmax.f32 %v746_v56, %v821_v41  ;;  %v823_v46 = vpop.f32.mrb[9].mxu0  ;;  %1394 = vmatmul.mubr.bf16.vlgmr.msra.gmra.mrb[20].mxu1 %v1359_v43  ;;  %v4493_v56 = vld [vmem:[%s5063_s1 + $0x74] ss:$8 sps:$4 sm:$0xff]  }
 0x1f9   : > { %v4467_v14 = vmax.f32 %v747_v10, %v823_v46  ;;  %v825_v31 = vpop.f32.mrb[10].mxu0  ;;  %1454 = vmatpush1.bf16.msra.mxu0 %v4472_v5  ;;  %1526 = vmatpush1.bf16.msra.mxu1 %v4359_v1  ;;  %v4504_v10 = vpop.permute.xlu1 %1733  ;;  %v4698_v46 = vld [vmem:[%s5063_s1 + $0xb0] ss:$8 sps:$4 sm:$0xff]  }
 0x1fa   : > { %v826_v36 = vpop.f32.mrb[11].mxu0  ;;  %1455 = vmatprep.subr.bf16.mxu0 %v4479_v2  ;;  %1527 = vmatprep.subr.bf16.mxu1 %v4368_v61  ;;  %vm1735_vm1 = vcmp.eq.s32.totalorder %v3250_v50, %v4504_v10 }
 0x1fb   : > { %1557 = vmatprep.mubr.bf16.mxu1 %v1524_v0  ;;  %v4720_v36 = vld [vmem:[%s5063_s1 + $0xc0] ss:$8 sps:$4 sm:$0xff]  }
 0x1fd   : > { %1456 = vmatpush1.bf16.msra.mxu0 %v4486_v47  ;;  %1528 = vmatpush1.bf16.msra.mxu1 %v4377_v40  ;;  %v4522_v51 = vpop.permute.xlu1 %1738 }
 0x1fe   : > { %1457 = vmatprep.subr.bf16.mxu0 %v4493_v56  ;;  %1529 = vmatprep.subr.bf16.mxu1 %v4388_v11  ;;  %vm1740_vm12 = vcmp.eq.s32.totalorder %v3250_v50, %v4522_v51 }
 0x1ff   : > { %vm1742_vm0 = vmor %vm1735_vm1, %vm1740_vm12  ;;  %vm1433_vm12 = vcmp.eq.s32.totalorder %v3250_v50, %v4206_v6 }
 0x200   : > { %vm1428_vm1 = vmor %vm4135_vm2, %vm1426_vm11  ;;  %vm1666_vm11 = vcmp.eq.s32.totalorder %v3256_v54, %v4410_v38  ;;  %v4691_v38 = vld [vmem:[%s5063_s1 + $0xb4] ss:$8 sps:$4 sm:$0xff]  }
 0x201   : > { %1458 = vmatpush1.bf16.msra.mxu0 %v4500_v7  ;;  %1530 = vmatpush1.bf16.msra.mxu1 %v4403_v9  ;;  %v4535_v63 = vpop.permute.xlu1 %1745  ;;  %vm1435_vm9 = vmor %vm1428_vm1, %vm1433_vm12 }
 0x202   : > { %1459 = vmatprep.subr.bf16.mxu0 %v4509_v20  ;;  %1531 = vmatprep.subr.bf16.mxu1 %v4416_v57  ;;  %vm1747_vm5 = vcmp.eq.s32.totalorder %v3250_v50, %v4535_v63  ;;  %v2463_v6 = vsel %vm1435_vm9, 1.0, %v2886_v58  ;;  %vm1668_vm1 = vmor %vm1661_vm3, %vm1666_vm11  ;;  %vm1748_vm4 = vcmp.eq.s32.totalorder %v3256_v54, %v4535_v63  ;;  %v4740_v63 = vld [vmem:[%s5063_s1 + $0xd0] ss:$8 sps:$4 sm:$0xff]  }
 0x203   : > { %vm4551_vm8 = vmor %vm1742_vm0, %vm1747_vm5  ;;  %vm1598_vm5 = vcmp.eq.s32.totalorder %v3256_v54, %v4362_v59  ;;  %v1441_v18 = vpack.c.bf16 %v2463_v6, %v2463_v6  ;;  %v2704_v6 = vld [vmem:[%s5065_s3 + $0x24] ss:$16 sps:$4 sm:$0xff]  }
 0x204   : > { %vm1593_vm0 = vmor %vm1586_vm13, %vm1591_vm15  ;;  %vm1515_vm15 = vcmp.eq.s32.totalorder %v3250_v50, %v4286_v4  ;;  %vm1673_vm13 = vcmp.eq.s32.totalorder %v3256_v54, %v4408_v37 }
 0x205   : > { %1460 = vmatpush1.bf16.msra.mxu0 %v4518_v49  ;;  %1532 = vmatpush1.bf16.msra.mxu1 %v4429_v24  ;;  %vm1600_vm2 = vmor %vm1593_vm0, %vm1598_vm5  ;;  %v4715_v31 = vpop.permute.xlu1 %1752 }
 0x206   : > { %1461 = vmatprep.subr.bf16.mxu0 %v4527_v53  ;;  %1533 = vmatprep.subr.bf16.mxu1 %v4441_v39  ;;  %v2468_v48 = vsel %vm1600_vm2, 1.0, %v2886_v58  ;;  %vm1517_vm12 = vmor %vm4235_vm6, %vm1515_vm15  ;;  %vm1736_vm6 = vcmp.eq.s32.totalorder %v3256_v54, %v4504_v10  ;;  %vm1741_vm2 = vcmp.eq.s32.totalorder %v3256_v54, %v4522_v51  ;;  %v4727_v10 = vld [vmem:[%s5063_s1 + $0xd4] ss:$8 sps:$4 sm:$0xff]   ;;  %vm1755_vm11 = vcmp.eq.s32.totalorder %v3256_v54, %v4715_v31 }
 0x207   : > { %v1606_v27 = vpack.c.bf16 %v2468_v48, %v2468_v48  ;;  %vm1675_vm0 = vmor %vm1668_vm1, %vm1673_vm13  ;;  %vm1597_vm15 = vcmp.eq.s32.totalorder %v3250_v50, %v4362_v59  ;;  %v4758_v59 = vld [vmem:[%s5063_s1 + $0xe0] ss:$8 sps:$4 sm:$0xff]   ;;  %v2707_v48 = vld [vmem:[%s5065_s3 + $0x2c] ss:$16 sps:$4 sm:$0xff]  }
 0x208   : > { %vm1743_vm10 = vmor %vm1736_vm6, %vm1741_vm2 }
 0x209   : > { %1462 = vmatpush1.bf16.msra.mxu0 %v3781_v13  ;;  %1534 = vmatpush1.bf16.msra.mxu1 %v4449_v26  ;;  %vm1750_vm3 = vmor %vm1743_vm10, %vm1748_vm4 }
 0x20a   : > { %1463 = vmatprep.subr.bf16.mxu0 %v3788_v60  ;;  %1535 = vmatprep.subr.bf16.mxu1 %v4455_v8  ;;  %vm1757_vm13 = vmor %vm1750_vm3, %vm1755_vm11 }
 0x20b   : > { %v4541_v32 = vpop.f32.mrb[8].mxu1 }
 0x20c   : > { %v910_v43 = vmax.f32 %v4462_v44, %v4541_v32  ;;  %v4545_v42 = vpop.f32.mrb[9].mxu1  ;;  %v4747_v32 = vld [vmem:[%s5063_s1 + $0xe4] ss:$8 sps:$4 sm:$0xff]  }
 0x20d   : > { %v911_v13 = vmax.f32 %v4467_v14, %v4545_v42  ;;  %1464 = vmatpush1.bf16.msra.mxu0 %v3897_v45  ;;  %1536 = vmatpush1.bf16.msra.mxu1 %v4472_v5  ;;  %v907_v60 = vpop.f32.mrb[10].mxu1  ;;  %v4709_v14 = vld [vmem:[%s5063_s1 + $0xc4] ss:$8 sps:$4 sm:$0xff]   ;;  %v4774_v42 = vld [vmem:[%s5063_s1 + $0xf0] ss:$8 sps:$4 sm:$0xff]  }
 0x20e   : > { %1465 = vmatprep.subr.bf16.mxu0 %v3908_v21  ;;  %1537 = vmatprep.subr.bf16.mxu1 %v4479_v2  ;;  %v908_v0 = vpop.f32.mrb[11].mxu1 }
 0x20f   : > { %v2696_v0 = vld [vmem:[%s5065_s3] ss:$16 sps:$4 sm:$0xff]  }
 0x211   : > { %1466 = vmatpush1.bf16.msra.mxu0 %v3917_v23  ;;  %1538 = vmatpush1.bf16.msra.mxu1 %v4486_v47 }
 0x212   : > { %1467 = vmatprep.subr.bf16.mxu0 %v3932_v16  ;;  %1539 = vmatprep.subr.bf16.mxu1 %v4493_v56 }
 0x215   : > { %1468 = vmatpush1.bf16.msra.mxu0 %v3949_v29  ;;  %1540 = vmatpush1.bf16.msra.mxu1 %v4500_v7 }
 0x216   : > { %1469 = vmatprep.subr.bf16.mxu0 %v3960_v52  ;;  %1541 = vmatprep.subr.bf16.mxu1 %v4509_v20 }
 0x219   : > { %1470 = vmatpush1.bf16.msra.mxu0 %v3972_v62  ;;  %1542 = vmatpush1.bf16.msra.mxu1 %v4518_v49 }
 0x21a   : > { %1471 = vmatprep.subr.bf16.mxu0 %v3979_v15  ;;  %1543 = vmatprep.subr.bf16.mxu1 %v4527_v53 }
 0x21d   : > { %1472 = vmatpush1.bf16.msra.mxu0 %v3991_v19  ;;  %1544 = vmatpush1.bf16.msra.mxu1 %v4589_v25 }
 0x21e   : > { %1473 = vmatprep.subr.bf16.mxu0 %v3998_v34  ;;  %1545 = vmatprep.subr.bf16.mxu1 %v4596_v17 }
 0x221   : > { %1474 = vmatpush1.bf16.msra.mxu0 %v4009_v55  ;;  %1546 = vmatpush1.bf16.msra.mxu1 %v3897_v45  ;;  %v4623_v45 = vpop.permute.xlu0 %1677 }
 0x222   : > { %1547 = vmatprep.subr.bf16.mxu1 %v3908_v21  ;;  %1607 = vmatprep.subr.bf16.mxu0 %v4348_v3  ;;  %vm1680_vm5 = vcmp.eq.s32.totalorder %v3256_v54, %v4623_v45  ;;  %v2465_v21 = vsel %vm1517_vm12, 1.0, %v2886_v58  ;;  %vm1599_vm12 = vmor %vm4318_vm14, %vm1597_vm15  ;;  %vm1679_vm14 = vcmp.eq.s32.totalorder %v3250_v50, %v4623_v45  ;;  %v2710_v45 = vld [vmem:[%s5065_s3 + $0x44] ss:$16 sps:$4 sm:$0xff]  }
 0x223   : > { %vm1682_vm9 = vmor %vm1675_vm0, %vm1680_vm5 }
 0x224   : > { %1476 = vmatmul.mubr.bf16.vlgmr.msra.gmra.mrb[24].mxu0 %v1441_v18  ;;  %vm1681_vm5 = vmor %vm4433_vm7, %vm1679_vm14  ;;  %vm1754_vm7 = vcmp.eq.s32.totalorder %v3250_v50, %v4715_v31  ;;  %v2702_v18 = vld [vmem:[%s5065_s3 + $0x20] ss:$16 sps:$4 sm:$0xff]   ;;  %v2729_v31 = vld [vmem:[%s5065_s3 + $0xa8] ss:$16 sps:$4 sm:$0xff]  }
 0x225   : > { %1548 = vmatpush1.bf16.msra.mxu1 %v3917_v23  ;;  %1608 = vmatpush1.bf16.msra.mxu0 %v4359_v1  ;;  %v1523_v23 = vpack.c.bf16 %v2465_v21, %v2465_v21  ;;  %v4733_v51 = vpop.permute.xlu0 %1759  ;;  %v2713_v21 = vld [vmem:[%s5065_s3 + $0x4c] ss:$16 sps:$4 sm:$0xff]  }
 0x226   : > { %1549 = vmatprep.subr.bf16.mxu1 %v3932_v16  ;;  %1609 = vmatprep.subr.bf16.mxu0 %v4368_v61  ;;  %v2470_v16 = vsel %vm1682_vm9, 1.0, %v2886_v58  ;;  %vm1762_vm1 = vcmp.eq.s32.totalorder %v3256_v54, %v4733_v51  ;;  %v2467_v54 = vsel %vm1599_vm12, 1.0, %v2886_v58  ;;  %vm1756_vm9 = vmor %vm4551_vm8, %vm1754_vm7  ;;  %vm1761_vm6 = vcmp.eq.s32.totalorder %v3250_v50, %v4733_v51  ;;  %v2732_v51 = vld [vmem:[%s5065_s3 + $0xc0] ss:$16 sps:$4 sm:$0xff]  }
 0x227   : > { %1639 = vmatprep.mubr.bf16.mxu0 %v1606_v27  ;;  %vm1764_vm0 = vmor %vm1757_vm13, %vm1762_vm1  ;;  %v2705_v27 = vld [vmem:[%s5065_s3 + $0x28] ss:$16 sps:$4 sm:$0xff]  }
 0x228   : > { %v2472_v30 = vsel %vm1764_vm0, 1.0, %v2886_v58  ;;  %vm1763_vm2 = vmor %vm1756_vm9, %vm1761_vm6 }
 0x229   : > { %1550 = vmatpush1.bf16.msra.mxu1 %v3949_v29  ;;  %1610 = vmatpush1.bf16.msra.mxu0 %v4377_v40  ;;  %v1770_v60 = vpack.c.bf16 %v2472_v30, %v2472_v30  ;;  %v2746_v30 = vld [vmem:[%s5065_s3 + $0x104] ss:$16 sps:$4 sm:$0xff]  }
 0x22a   : > { %1551 = vmatprep.subr.bf16.mxu1 %v3960_v52  ;;  %1611 = vmatprep.subr.bf16.mxu0 %v4388_v11  ;;  %v1688_v52 = vpack.c.bf16 %v2470_v16, %v2470_v16  ;;  %v2711_v16 = vld [vmem:[%s5065_s3 + $0x48] ss:$16 sps:$4 sm:$0xff]  }
 0x22d   : > { %1552 = vmatpush1.bf16.msra.mxu1 %v3972_v62  ;;  %1612 = vmatpush1.bf16.msra.mxu0 %v4403_v9 }
 0x22e   : > { %1553 = vmatprep.subr.bf16.mxu1 %v3979_v15  ;;  %1613 = vmatprep.subr.bf16.mxu0 %v4416_v57 }
 0x231   : > { %1554 = vmatpush1.bf16.msra.mxu1 %v3991_v19  ;;  %1614 = vmatpush1.bf16.msra.mxu0 %v4429_v24 }
 0x232   : > { %1555 = vmatprep.subr.bf16.mxu1 %v3998_v34  ;;  %1615 = vmatprep.subr.bf16.mxu0 %v4441_v39 }
 0x235   : > { %1556 = vmatpush1.bf16.msra.mxu1 %v4009_v55  ;;  %1616 = vmatpush1.bf16.msra.mxu0 %v4449_v26 }
 0x236   : > { %1617 = vmatprep.subr.bf16.mxu0 %v4455_v8  ;;  %1689 = vmatprep.subr.bf16.mxu1 %v4348_v3 }
 0x237   : > { %v985_v29 = vpop.f32.mrb[12].mxu0 }
 0x238   : > { %v4646_v62 = vmax.f32 %v910_v43, %v985_v29  ;;  %v987_v15 = vpop.f32.mrb[13].mxu0  ;;  %1558 = vmatmul.mubr.bf16.vlgmr.msra.gmra.mrb[24].mxu1 %v1523_v23  ;;  %v4765_v43 = vld [vmem:[%s5063_s1 + $0xf4] ss:$8 sps:$4 sm:$0xff]   ;;  %v2708_v23 = vld [vmem:[%s5065_s3 + $0x40] ss:$16 sps:$4 sm:$0xff]  }
 0x239   : > { %v4651_v19 = vmax.f32 %v911_v13, %v987_v15  ;;  %v989_v34 = vpop.f32.mrb[14].mxu0  ;;  %1618 = vmatpush1.bf16.msra.mxu0 %v4472_v5  ;;  %1690 = vmatpush1.bf16.msra.mxu1 %v4359_v1  ;;  %v1605_v13 = vpack.c.bf16 %v2467_v54, %v2467_v54  ;;  %v2741_v54 = vld [vmem:[%s5065_s3 + $0xe8] ss:$16 sps:$4 sm:$0xff]  }
 0x23a   : > { %v990_v55 = vpop.f32.mrb[15].mxu0  ;;  %1619 = vmatprep.subr.bf16.mxu0 %v4479_v2  ;;  %1691 = vmatprep.subr.bf16.mxu1 %v4368_v61  ;;  %v2714_v34 = vld [vmem:[%s5065_s3 + $0x60] ss:$16 sps:$4 sm:$0xff]  }
 0x23b   : > { %1721 = vmatprep.mubr.bf16.mxu1 %v1688_v52  ;;  %v2716_v55 = vld [vmem:[%s5065_s3 + $0x64] ss:$16 sps:$4 sm:$0xff]  }
 0x23d   : > { %1620 = vmatpush1.bf16.msra.mxu0 %v4486_v47  ;;  %1692 = vmatpush1.bf16.msra.mxu1 %v4377_v40 }
 0x23e   : > { %1621 = vmatprep.subr.bf16.mxu0 %v4493_v56  ;;  %1693 = vmatprep.subr.bf16.mxu1 %v4388_v11 }
 0x241   : > { %1622 = vmatpush1.bf16.msra.mxu0 %v4500_v7  ;;  %1694 = vmatpush1.bf16.msra.mxu1 %v4403_v9 }
 0x242   : > { %1623 = vmatprep.subr.bf16.mxu0 %v4509_v20  ;;  %1695 = vmatprep.subr.bf16.mxu1 %v4416_v57 }
 0x245   : > { %1624 = vmatpush1.bf16.msra.mxu0 %v4518_v49  ;;  %1696 = vmatpush1.bf16.msra.mxu1 %v4429_v24 }
 0x246   : > { %1625 = vmatprep.subr.bf16.mxu0 %v4527_v53  ;;  %1697 = vmatprep.subr.bf16.mxu1 %v4441_v39 }
 0x249   : > { %1626 = vmatpush1.bf16.msra.mxu0 %v4589_v25  ;;  %1698 = vmatpush1.bf16.msra.mxu1 %v4449_v26 }
 0x24a   : > { %1627 = vmatprep.subr.bf16.mxu0 %v4596_v17  ;;  %1699 = vmatprep.subr.bf16.mxu1 %v4455_v8 }
 0x24b   : > { %v4673_v22 = vpop.f32.mrb[12].mxu1 }
 0x24c   : > { %v1074_v4 = vmax.f32 %v4646_v62, %v4673_v22  ;;  %v4677_v28 = vpop.f32.mrb[13].mxu1 }
 0x24d   : > { %v1075_v33 = vmax.f32 %v4651_v19, %v4677_v28  ;;  %1628 = vmatpush1.bf16.msra.mxu0 %v4684_v12  ;;  %1700 = vmatpush1.bf16.msra.mxu1 %v4472_v5  ;;  %v1071_v37 = vpop.f32.mrb[14].mxu1  ;;  %v2719_v28 = vld [vmem:[%s5065_s3 + $0x6c] ss:$16 sps:$4 sm:$0xff]  }
 0x24e   : > { %1629 = vmatprep.subr.bf16.mxu0 %v4691_v38  ;;  %1701 = vmatprep.subr.bf16.mxu1 %v4479_v2  ;;  %v1072_v44 = vpop.f32.mrb[15].mxu1  ;;  %v2725_v37 = vld [vmem:[%s5065_s3 + $0x8c] ss:$16 sps:$4 sm:$0xff]  }
 0x24f   : > { %v2728_v44 = vld [vmem:[%s5065_s3 + $0xa4] ss:$16 sps:$4 sm:$0xff]  }
 0x251   : > { %1630 = vmatpush1.bf16.msra.mxu0 %v4698_v46  ;;  %1702 = vmatpush1.bf16.msra.mxu1 %v4486_v47 }
 0x252   : > { %1631 = vmatprep.subr.bf16.mxu0 %v4709_v14  ;;  %1703 = vmatprep.subr.bf16.mxu1 %v4493_v56 }
 0x255   : > { %1632 = vmatpush1.bf16.msra.mxu0 %v4720_v36  ;;  %1704 = vmatpush1.bf16.msra.mxu1 %v4500_v7 }
 0x256   : > { %1633 = vmatprep.subr.bf16.mxu0 %v4727_v10  ;;  %1705 = vmatprep.subr.bf16.mxu1 %v4509_v20 }
 0x259   : > { %1634 = vmatpush1.bf16.msra.mxu0 %v4740_v63  ;;  %1706 = vmatpush1.bf16.msra.mxu1 %v4518_v49 }
 0x25a   : > { %1635 = vmatprep.subr.bf16.mxu0 %v4747_v32  ;;  %1707 = vmatprep.subr.bf16.mxu1 %v4527_v53 }
 0x25d   : > { %1636 = vmatpush1.bf16.msra.mxu0 %v4758_v59  ;;  %1708 = vmatpush1.bf16.msra.mxu1 %v4589_v25 }
 0x25e   : > { %1637 = vmatprep.subr.bf16.mxu0 %v4765_v43  ;;  %1709 = vmatprep.subr.bf16.mxu1 %v4596_v17 }
 0x261   : > { %1638 = vmatpush1.bf16.msra.mxu0 %v4774_v42  ;;  %1710 = vmatpush1.bf16.msra.mxu1 %v4684_v12 }
 0x262   : > { %1711 = vmatprep.subr.bf16.mxu1 %v4691_v38  ;;  %1771 = vmatprep.subr.bf16.mxu0 %v4348_v3  ;;  %v2469_v3 = vsel %vm1681_vm5, 1.0, %v2886_v58 }
 0x264   : > { %1640 = vmatmul.mubr.bf16.vlgmr.msra.gmra.mrb[28].mxu0 %v1605_v13  ;;  %v2744_v13 = vld [vmem:[%s5065_s3 + $0x100] ss:$16 sps:$4 sm:$0xff]  }
 0x265   : > { %1712 = vmatpush1.bf16.msra.mxu1 %v4698_v46  ;;  %1772 = vmatpush1.bf16.msra.mxu0 %v4359_v1  ;;  %v1687_v1 = vpack.c.bf16 %v2469_v3, %v2469_v3  ;;  %v2752_v3 = vld [vmem:[%s5065_s3 + $0x124] ss:$16 sps:$4 sm:$0xff]  }
 0x266   : > { %1713 = vmatprep.subr.bf16.mxu1 %v4709_v14  ;;  %1773 = vmatprep.subr.bf16.mxu0 %v4368_v61 }
 0x267   : > { %1803 = vmatprep.mubr.bf16.mxu0 %v1770_v60  ;;  %v2747_v60 = vld [vmem:[%s5065_s3 + $0x108] ss:$16 sps:$4 sm:$0xff]  }
 0x269   : > { %1714 = vmatpush1.bf16.msra.mxu1 %v4720_v36  ;;  %1774 = vmatpush1.bf16.msra.mxu0 %v4377_v40 }
 0x26a   : > { %1715 = vmatprep.subr.bf16.mxu1 %v4727_v10  ;;  %1775 = vmatprep.subr.bf16.mxu0 %v4388_v11 }
 0x26d   : > { %1716 = vmatpush1.bf16.msra.mxu1 %v4740_v63  ;;  %1776 = vmatpush1.bf16.msra.mxu0 %v4403_v9 }
 0x26e   : > { %1717 = vmatprep.subr.bf16.mxu1 %v4747_v32  ;;  %1777 = vmatprep.subr.bf16.mxu0 %v4416_v57 }
 0x271   : > { %1718 = vmatpush1.bf16.msra.mxu1 %v4758_v59  ;;  %1778 = vmatpush1.bf16.msra.mxu0 %v4429_v24 }
 0x272   : > { %1719 = vmatprep.subr.bf16.mxu1 %v4765_v43  ;;  %1779 = vmatprep.subr.bf16.mxu0 %v4441_v39 }
 0x275   : > { %1720 = vmatpush1.bf16.msra.mxu1 %v4774_v42  ;;  %1780 = vmatpush1.bf16.msra.mxu0 %v4449_v26 }
 0x276   : > { %1781 = vmatprep.subr.bf16.mxu0 %v4455_v8 }
 0x277   : > { %v1149_v61 = vpop.f32.mrb[16].mxu0 }
 0x278   : > { %v1156_v40 = vmax.f32 %v1074_v4, %v1149_v61  ;;  %v1151_v11 = vpop.f32.mrb[17].mxu0  ;;  %1722 = vmatmul.mubr.bf16.vlgmr.msra.gmra.mrb[28].mxu1 %v1687_v1  ;;  %v2717_v4 = vld [vmem:[%s5065_s3 + $0x68] ss:$16 sps:$4 sm:$0xff]   ;;  %v2755_v1 = vld [vmem:[%s5065_s3 + $0x12c] ss:$16 sps:$4 sm:$0xff]  }
 0x279   : > { %v1157_v9 = vmax.f32 %v1075_v33, %v1151_v11  ;;  %v1153_v57 = vpop.f32.mrb[18].mxu0  ;;  %1782 = vmatpush1.bf16.msra.mxu0 %v4472_v5  ;;  %v2722_v33 = vld [vmem:[%s5065_s3 + $0x84] ss:$16 sps:$4 sm:$0xff]   ;;  %v2750_v61 = vld [vmem:[%s5065_s3 + $0x120] ss:$16 sps:$4 sm:$0xff]  }
 0x27a   : > { %v1154_v24 = vpop.f32.mrb[19].mxu0  ;;  %1783 = vmatprep.subr.bf16.mxu0 %v4479_v2  ;;  %v2758_v11 = vld [vmem:[%s5065_s3 + $0x144] ss:$16 sps:$4 sm:$0xff]   ;;  %v2756_v57 = vld [vmem:[%s5065_s3 + $0x140] ss:$16 sps:$4 sm:$0xff]  }
 0x27b   : > { %v2759_v24 = vld [vmem:[%s5065_s3 + $0x148] ss:$16 sps:$4 sm:$0xff]  }
 0x27d   : > { %1784 = vmatpush1.bf16.msra.mxu0 %v4486_v47  ;;  %v2471_v47 = vsel %vm1763_vm2, 1.0, %v2886_v58  ;;  %v2698_v58 = vld [vmem:[%s5065_s3 + $0x4] ss:$16 sps:$4 sm:$0xff]  }
 0x27e   : > { %1785 = vmatprep.subr.bf16.mxu0 %v4493_v56  ;;  %v1769_v56 = vpack.c.bf16 %v2471_v47, %v2471_v47  ;;  %2238 = vmatprep.subr.bf16.mxu1 %v2698_v58  ;;  %v2768_v47 = vld [vmem:[%s5065_s3 + $0x180] ss:$16 sps:$4 sm:$0xff]  }
 0x27f   : > { %2239 = vmatpush1.bf16.msra.mxu1 %v2696_v0 }
 0x280   : > { %2240 = vmatprep.subr.bf16.mxu1 %v2704_v6 }
 0x281   : > { %1786 = vmatpush1.bf16.msra.mxu0 %v4500_v7 }
 0x282   : > { %1787 = vmatprep.subr.bf16.mxu0 %v4509_v20 }
 0x283   : > { %2241 = vmatpush1.bf16.msra.mxu1 %v2702_v18  ;;  %v2785_v18 = vld [vmem:[%s5065_s3 + $0x1cc] ss:$16 sps:$4 sm:$0xff]  }
 0x284   : > { %2242 = vmatprep.subr.bf16.mxu1 %v2710_v45  ;;  %v2788_v45 = vld [vmem:[%s5065_s3 + $0x1e4] ss:$16 sps:$4 sm:$0xff]  }
 0x285   : > { %1788 = vmatpush1.bf16.msra.mxu0 %v4518_v49 }
 0x286   : > { %1789 = vmatprep.subr.bf16.mxu0 %v4527_v53 }
 0x287   : > { %2243 = vmatpush1.bf16.msra.mxu1 %v2708_v23  ;;  %v2786_v23 = vld [vmem:[%s5065_s3 + $0x1e0] ss:$16 sps:$4 sm:$0xff]  }
 0x288   : > { %2244 = vmatprep.subr.bf16.mxu1 %v2716_v55 }
 0x289   : > { %1790 = vmatpush1.bf16.msra.mxu0 %v4589_v25  ;;  %v2699_v25 = vld [vmem:[%s5065_s3 + $0x8] ss:$16 sps:$4 sm:$0xff]  }
 0x28a   : > { %1791 = vmatprep.subr.bf16.mxu0 %v4596_v17  ;;  %v2701_v17 = vld [vmem:[%s5065_s3 + $0xc] ss:$16 sps:$4 sm:$0xff]  }
 0x28b   : > { %v1231_v35 = vpop.f32.mrb[16].mxu1  ;;  %2245 = vmatpush1.bf16.msra.mxu1 %v2714_v34 }
 0x28c   : > { %v1238_v39 = vmax.f32 %v1156_v40, %v1231_v35  ;;  %v1233_v26 = vpop.f32.mrb[17].mxu1  ;;  %2246 = vmatprep.subr.bf16.mxu1 %v2722_v33  ;;  %v2753_v40 = vld [vmem:[%s5065_s3 + $0x128] ss:$16 sps:$4 sm:$0xff]   ;;  %v2764_v35 = vld [vmem:[%s5065_s3 + $0x164] ss:$16 sps:$4 sm:$0xff]  }
 0x28d   : > { %v1239_v8 = vmax.f32 %v1157_v9, %v1233_v26  ;;  %1792 = vmatpush1.bf16.msra.mxu0 %v4684_v12  ;;  %v1235_v5 = vpop.f32.mrb[18].mxu1  ;;  %v2720_v12 = vld [vmem:[%s5065_s3 + $0x80] ss:$16 sps:$4 sm:$0xff]   ;;  %v2761_v9 = vld [vmem:[%s5065_s3 + $0x14c] ss:$16 sps:$4 sm:$0xff]  }
 0x28e   : > { %1793 = vmatprep.subr.bf16.mxu0 %v4691_v38  ;;  %v1236_v2 = vpop.f32.mrb[19].mxu1  ;;  %v2723_v38 = vld [vmem:[%s5065_s3 + $0x88] ss:$16 sps:$4 sm:$0xff]   ;;  %v2762_v26 = vld [vmem:[%s5065_s3 + $0x160] ss:$16 sps:$4 sm:$0xff]  }
 0x28f   : > { %2247 = vmatpush1.bf16.msra.mxu1 %v2720_v12  ;;  %v2770_v5 = vld [vmem:[%s5065_s3 + $0x184] ss:$16 sps:$4 sm:$0xff]   ;;  %v2773_v2 = vld [vmem:[%s5065_s3 + $0x18c] ss:$16 sps:$4 sm:$0xff]  }
 0x290   : > { %2248 = vmatprep.subr.bf16.mxu1 %v2728_v44 }
 0x291   : > { %1794 = vmatpush1.bf16.msra.mxu0 %v4698_v46  ;;  %v2731_v46 = vld [vmem:[%s5065_s3 + $0xac] ss:$16 sps:$4 sm:$0xff]  }
 0x292   : > { %1795 = vmatprep.subr.bf16.mxu0 %v4709_v14  ;;  %v2726_v14 = vld [vmem:[%s5065_s3 + $0xa0] ss:$16 sps:$4 sm:$0xff]  }
 0x293   : > { %2249 = vmatpush1.bf16.msra.mxu1 %v2726_v14 }
 0x295   : > { %1796 = vmatpush1.bf16.msra.mxu0 %v4720_v36  ;;  %v2734_v36 = vld [vmem:[%s5065_s3 + $0xc4] ss:$16 sps:$4 sm:$0xff]  }
 0x296   : > { %1797 = vmatprep.subr.bf16.mxu0 %v4727_v10  ;;  %v2737_v10 = vld [vmem:[%s5065_s3 + $0xcc] ss:$16 sps:$4 sm:$0xff]   ;;  %2250 = vmatprep.subr.bf16.mxu1 %v2734_v36  ;;  %v5121_v36 = vlaneseq }
 0x297   : > { %2251 = vmatpush1.bf16.msra.mxu1 %v2732_v51 }
 0x299   : > { %1798 = vmatpush1.bf16.msra.mxu0 %v4740_v63  ;;  %v2735_v63 = vld [vmem:[%s5065_s3 + $0xc8] ss:$16 sps:$4 sm:$0xff]  }
 0x29a   : > { %1799 = vmatprep.subr.bf16.mxu0 %v4747_v32  ;;  %v2740_v32 = vld [vmem:[%s5065_s3 + $0xe4] ss:$16 sps:$4 sm:$0xff]  }
 0x29b   : > { %2252 = vmatprep.subr.bf16.mxu1 %v2740_v32 }
 0x29d   : > { %1800 = vmatpush1.bf16.msra.mxu0 %v4758_v59  ;;  %v2743_v59 = vld [vmem:[%s5065_s3 + $0xec] ss:$16 sps:$4 sm:$0xff]  }
 0x29e   : > { %1801 = vmatprep.subr.bf16.mxu0 %v4765_v43  ;;  %v2738_v43 = vld [vmem:[%s5065_s3 + $0xe0] ss:$16 sps:$4 sm:$0xff]  }
 0x29f   : > { %2253 = vmatpush1.bf16.msra.mxu1 %v2738_v43 }
 0x2a0   : > { %2254 = vmatprep.subr.bf16.mxu1 %v2746_v30 }
 0x2a1   : > { %1802 = vmatpush1.bf16.msra.mxu0 %v4774_v42  ;;  %v2749_v42 = vld [vmem:[%s5065_s3 + $0x10c] ss:$16 sps:$4 sm:$0xff]  }
 0x2a2   : > { %2279 = vmatprep.subr.bf16.mxu0 %v2701_v17 }
 0x2a3   : > { %2255 = vmatpush1.bf16.msra.mxu1 %v2744_v13 }
 0x2a4   : > { %1804 = vmatmul.mubr.bf16.vlgmr.msra.gmra.mrb[32].mxu0 %v1769_v56  ;;  %2256 = vmatprep.subr.bf16.mxu1 %v2752_v3  ;;  %v2771_v56 = vld [vmem:[%s5065_s3 + $0x188] ss:$16 sps:$4 sm:$0xff]  }
 0x2a5   : > { %2280 = vmatpush1.bf16.msra.mxu0 %v2699_v25 }
 0x2a6   : > { %2281 = vmatprep.subr.bf16.mxu0 %v2707_v48  ;;  %v2782_v48 = vld [vmem:[%s5065_s3 + $0x1c4] ss:$16 sps:$4 sm:$0xff]  }
 0x2a7   : > { %2257 = vmatpush1.bf16.msra.mxu1 %v2750_v61 }
 0x2a8   : > { %2258 = vmatprep.subr.bf16.mxu1 %v2758_v11 }
 0x2a9   : > { %2282 = vmatpush1.bf16.msra.mxu0 %v2705_v27 }
 0x2aa   : > { %2283 = vmatprep.subr.bf16.mxu0 %v2713_v21  ;;  %v2791_v21 = vld [vmem:[%s5065_s3 + $0x1ec] ss:$16 sps:$4 sm:$0xff]  }
 0x2ab   : > { %2259 = vmatpush1.bf16.msra.mxu1 %v2756_v57 }
 0x2ac   : > { %2260 = vmatprep.subr.bf16.mxu1 %v2764_v35  ;;  %v1896_v35 = vld [vmem:[%s5066_s4] sm:$0xf] }
 0x2ad   : > { %2284 = vmatpush1.bf16.msra.mxu0 %v2711_v16  ;;  %v2789_v16 = vld [vmem:[%s5065_s3 + $0x1e8] ss:$16 sps:$4 sm:$0xff]  }
 0x2ae   : > { %2285 = vmatprep.subr.bf16.mxu0 %v2719_v28 }
 0x2af   : > { %2261 = vmatpush1.bf16.msra.mxu1 %v2762_v26 }
 0x2b0   : > { %2262 = vmatprep.subr.bf16.mxu1 %v2770_v5 }
 0x2b1   : > { %2286 = vmatpush1.bf16.msra.mxu0 %v2717_v4 }
 0x2b2   : > { %2287 = vmatprep.subr.bf16.mxu0 %v2725_v37 }
 0x2b3   : > { %2263 = vmatpush1.bf16.msra.mxu1 %v2768_v47 }
 0x2b5   : > { %2288 = vmatpush1.bf16.msra.mxu0 %v2723_v38 }
 0x2b6   : > { %2289 = vmatprep.subr.bf16.mxu0 %v2731_v46 }
 0x2b7   : > { %v1313_v7 = vpop.f32.mrb[20].mxu0 }
 0x2b8   : > { %v4838_v20 = vmax.f32 %v1238_v39, %v1313_v7  ;;  %v1315_v49 = vpop.f32.mrb[21].mxu0  ;;  %v2767_v39 = vld [vmem:[%s5065_s3 + $0x16c] ss:$16 sps:$4 sm:$0xff]   ;;  %v2776_v7 = vld [vmem:[%s5065_s3 + $0x1a4] ss:$16 sps:$4 sm:$0xff]  }
 0x2b9   : > { %v4840_v50 = vmax.f32 %v1239_v8, %v1315_v49  ;;  %v1317_v53 = vpop.f32.mrb[22].mxu0  ;;  %2290 = vmatpush1.bf16.msra.mxu0 %v2729_v31  ;;  %v2765_v8 = vld [vmem:[%s5065_s3 + $0x168] ss:$16 sps:$4 sm:$0xff]   ;;  %v2779_v49 = vld [vmem:[%s5065_s3 + $0x1ac] ss:$16 sps:$4 sm:$0xff]   ;;  %2264 = vmatprep.subr.bf16.mxu1 %v2776_v7 }
 0x2ba   : > { %v1318_v41 = vpop.f32.mrb[23].mxu0  ;;  %2291 = vmatprep.subr.bf16.mxu0 %v2737_v10  ;;  %v2774_v53 = vld [vmem:[%s5065_s3 + $0x1a0] ss:$16 sps:$4 sm:$0xff]   ;;  %v1817_v10 = vshrl.u32 %v5121_v36, 7 }
 0x2bb   : > { %v2777_v41 = vld [vmem:[%s5065_s3 + $0x1a8] ss:$16 sps:$4 sm:$0xff]   ;;  %2265 = vmatpush1.bf16.msra.mxu1 %v2774_v53 }
 0x2bc   : > { %2266 = vmatprep.subr.bf16.mxu1 %v2782_v48  ;;  %v1818_v51 = vsub.s32 0, %v1817_v10  ;;  %v1822_v32 = vsub.s32 1, %v1817_v10 }
 0x2bd   : > { %2292 = vmatpush1.bf16.msra.mxu0 %v2735_v63  ;;  %v1814_v63 = vld [vmem:[%s5064_s2] sm:$0x3] }
 0x2be   : > { %2293 = vmatprep.subr.bf16.mxu0 %v2743_v59  ;;  %v1819_v59 = vrot.slane %v1814_v63, %v1818_v51  ;;  %v1901_v26 = vrot.slane %v1896_v35, %v1818_v51 }
 0x2c1   : > { %2294 = vmatpush1.bf16.msra.mxu0 %v2741_v54  ;;  %v1823_v54 = vrot.slane %v1814_v63, %v1822_v32 }
 0x2c2   : > { %2295 = vmatprep.subr.bf16.mxu0 %v2749_v42 }
 0x2c5   : > { %2296 = vmatpush1.bf16.msra.mxu0 %v2747_v60 }
 0x2c6   : > { %2297 = vmatprep.subr.bf16.mxu0 %v2755_v1 }
 0x2c9   : > { %2298 = vmatpush1.bf16.msra.mxu0 %v2753_v40 }
 0x2ca   : > { %2299 = vmatprep.subr.bf16.mxu0 %v2761_v9 }
 0x2cb   : > { %v4878_v29 = vpop.f32.mrb[20].mxu1 }
 0x2cc   : > { %v1402_v52 = vmax.f32 %v4838_v20, %v4878_v29  ;;  %v4882_v62 = vpop.f32.mrb[21].mxu1  ;;  %v2780_v20 = vld [vmem:[%s5065_s3 + $0x1c0] ss:$16 sps:$4 sm:$0xff]  }
 0x2cd   : > { %v1403_v15 = vmax.f32 %v4840_v50, %v4882_v62  ;;  %v1399_v19 = vpop.f32.mrb[22].mxu1  ;;  %2300 = vmatpush1.bf16.msra.mxu0 %v2759_v24  ;;  %v2783_v50 = vld [vmem:[%s5065_s3 + $0x1c8] ss:$16 sps:$4 sm:$0xff]   ;;  %2267 = vmatpush1.bf16.msra.mxu1 %v2780_v20  ;;  %v1908_v24 = vsub.s32 2, %v1817_v10 }
 0x2ce   : > { %v1400_v22 = vpop.f32.mrb[23].mxu1  ;;  %2301 = vmatprep.subr.bf16.mxu0 %v2767_v39  ;;  %2268 = vmatprep.subr.bf16.mxu1 %v2788_v45  ;;  %v1912_v39 = vsub.s32 3, %v1817_v10  ;;  %v1905_v45 = vrot.slane %v1896_v35, %v1822_v32 }
 0x2d0   : > { %v1913_v5 = vrot.slane %v1896_v35, %v1912_v39 }
 0x2d1   : > { %2302 = vmatpush1.bf16.msra.mxu0 %v2765_v8  ;;  %2269 = vmatpush1.bf16.msra.mxu1 %v2786_v23  ;;  %v1909_v8 = vrot.slane %v1896_v35, %v1908_v24 }
 0x2d2   : > { %2303 = vmatprep.subr.bf16.mxu0 %v2773_v2 }
 0x2d5   : > { %2304 = vmatpush1.bf16.msra.mxu0 %v2771_v56 }
 0x2d6   : > { %2305 = vmatprep.subr.bf16.mxu0 %v2779_v49 }
 0x2d9   : > { %2306 = vmatpush1.bf16.msra.mxu0 %v2777_v41 }
 0x2da   : > { %2307 = vmatprep.subr.bf16.mxu0 %v2785_v18 }
 0x2dd   : > { %2308 = vmatpush1.bf16.msra.mxu0 %v2783_v50 }
 0x2de   : > { %2309 = vmatprep.subr.bf16.mxu0 %v2791_v21 }
 0x2e1   : > { %2310 = vmatpush1.bf16.msra.mxu0 %v2789_v16 }
 0x2f7   : > { %v1477_v0 = vpop.f32.mrb[24].mxu0 }
 0x2f8   : > { %v1484_v58 = vmax.f32 %v1402_v52, %v1477_v0  ;;  %v1479_v25 = vpop.f32.mrb[25].mxu0 }
 0x2f9   : > { %v1485_v17 = vmax.f32 %v1403_v15, %v1479_v25  ;;  %v1481_v6 = vpop.f32.mrb[26].mxu0 }
 0x2fa   : > { %v1482_v27 = vpop.f32.mrb[27].mxu0 }
 0x30b   : > { %v1559_v29 = vpop.f32.mrb[24].mxu1 }
 0x30c   : > { %v1566_v52 = vmax.f32 %v1484_v58, %v1559_v29  ;;  %v1561_v62 = vpop.f32.mrb[25].mxu1 }
 0x30d   : > { %v1567_v15 = vmax.f32 %v1485_v17, %v1561_v62  ;;  %v1563_v19 = vpop.f32.mrb[26].mxu1 }
 0x30e   : > { %v1564_v34 = vpop.f32.mrb[27].mxu1 }
 0x337   : > { %v1641_v55 = vpop.f32.mrb[28].mxu0 }
 0x338   : > { %v1648_v22 = vmax.f32 %v1566_v52, %v1641_v55  ;;  %v1643_v4 = vpop.f32.mrb[29].mxu0 }
 0x339   : > { %v1649_v28 = vmax.f32 %v1567_v15, %v1643_v4  ;;  %v1645_v33 = vpop.f32.mrb[30].mxu0 }
 0x33a   : > { %v1646_v12 = vpop.f32.mrb[31].mxu0 }
 0x34b   : > { %v1723_v37 = vpop.f32.mrb[28].mxu1 }
 0x34c   : > { %v1730_v38 = vmax.f32 %v1648_v22, %v1723_v37  ;;  %v1725_v44 = vpop.f32.mrb[29].mxu1 }
 0x34d   : > { %v1731_v46 = vmax.f32 %v1649_v28, %v1725_v44  ;;  %v1727_v14 = vpop.f32.mrb[30].mxu1 }
 0x34e   : > { %v1728_v31 = vpop.f32.mrb[31].mxu1 }
 0x377   : > { %v1805_v43 = vpop.f32.mrb[32].mxu0 }
 0x378   : > { %v1812_v30 = vmax.f32 %v1730_v38, %v1805_v43  ;;  %v1807_v42 = vpop.f32.mrb[33].mxu0 }
 0x379   : > { %v1813_v13 = vmax.f32 %v1731_v46, %v1807_v42  ;;  %v1809_v60 = vpop.f32.mrb[34].mxu0 }
 0x37a   : > { %v1826_v3 = vadd.f32 %v1819_v59, %v1812_v30  ;;  %v1810_v1 = vpop.f32.mrb[35].mxu0 }
 0x37b   : > { %v1827_v61 = vadd.f32 %v1823_v54, %v1813_v13 }
 0x37c   : > { %v1828_v40 = vmax.f32 %v1826_v3, 0.0 }
 0x37d   : > { %v1829_v11 = vmax.f32 %v1827_v61, 0.0 }
 0x37e   : > { %v1830_v57 = vpack.c.bf16 %v1828_v40, %v1828_v40 }
 0x37f   : > { %v1831_v9 = vpack.c.bf16 %v1829_v11, %v1829_v11 }
 0x381   : > { %2270 = vmatprep.mubr.bf16.mxu1 %v1831_v9  ;;  %2311 = vmatprep.mubr.bf16.mxu0 %v1831_v9 }
 0x382   : > { %2271 = vmatmul.mubr.bf16.vlgmr.msra.gmra.mrb[32].mxu1 %v1830_v57  ;;  %2312 = vmatmul.mubr.bf16.vlgmr.msra.gmra.mrb[36].mxu0 %v1830_v57 }
 0x455   : > { %v2272_v2 = vpop.f32.mrb[32].mxu1  ;;  %v2313_v47 = vpop.f32.mrb[36].mxu0 }
 0x456   : > { %v2273_v56 = vadd.f32 %v2272_v2, %v1901_v26  ;;  %v2314_v7 = vadd.f32 %v2313_v47, %v1909_v8  ;;  %v2274_v49 = vpop.f32.mrb[33].mxu1  ;;  %v2315_v53 = vpop.f32.mrb[37].mxu0 }
 0x457   : > { %v2316_v41 = vadd.f32 %v2315_v53, %v1913_v5  ;;  %v2276_v0 = vpop.f32.mrb[34].mxu1  ;;  %v2317_v58 = vpop.f32.mrb[38].mxu0  ;;  %v2275_v21 = vadd.f32 %v2274_v49, %v1905_v45 }
 0x458   : > { %v2537_v25 = vmul.f32 -1.442695, %v2314_v7  ;;  %v2277_v17 = vpop.f32.mrb[35].mxu1  ;;  %v2318_v6 = vpop.f32.mrb[39].mxu0  ;;  %v2320_v23 = vmax.f32 %v2273_v56, 0.0 }
 0x459   : > { %v2538_v48 = vmul.f32 -1.442695, %v2316_v41  ;;  %v2321_v29 = vmax.f32 %v2275_v21, 0.0 }
 0x45a   : > { %2792 = vpow2.f32 %v2537_v25 }
 0x45b   : > { %2794 = vpow2.f32 %v2538_v48 }
 0x464   : > { %v2793_v18 = vpop.eup %2792 }
 0x465   : > { %v2795_v27 = vpop.eup %2794  ;;  %v2328_v20 = vadd.f32 1.0, %v2793_v18 }
 0x466   : > { %v2329_v50 = vadd.f32 1.0, %v2795_v27 }
 0x467   : > { %2796 = vrcp.f32 %v2328_v20 }
 0x468   : > { %2798 = vrcp.f32 %v2329_v50 }
 0x471   : > { %v2797_v16 = vpop.eup %2796 }
 0x472   : > { %v2799_v52 = vpop.eup %2798  ;;  %v2334_v62 = vmul.f32 %v2797_v16, %v2320_v23  ;;  %v2336_v15 = vsub.f32 1.0, %v2797_v16 }
 0x473   : > { %v2335_v19 = vmul.f32 %v2799_v52, %v2321_v29  ;;  %v2337_v34 = vsub.f32 1.0, %v2799_v52 }
 0x474   : > { %v2338_v55 = vmul.f32 %v2336_v15, %v1828_v40 }
 0x475   : > { %v2339_v22 = vmul.f32 %v2337_v34, %v1829_v11 }
 0x476   : > { %v2340_v4 = vadd.f32 %v2338_v55, %v2334_v62 }
 0x477   : > { %v2341_v28 = vadd.f32 %v2339_v22, %v2335_v19 }
 0x478   : > { %2342 = vst [vmem:[%s221_s7] sm:$0xff] %v2340_v4 }
 0x479   : > { %2343 = vst [vmem:[%s221_s7 + $0x8] sm:$0xff] %v2341_v28 }
 0x47a PF: > { %s15_s18 = sadd.s32 1, %s2871_s18  }
 0x47b   : > { %p12_p4 = scmp.ge.s32.totalorder %s15_s18, 4  }
 0x47d   :  { %14 = sbr.rel (!%p12_p4) target bundleno = 1 (0x1), region = 70 }

</bundles_post_ra>
